<compile_context>
chip_gen: v7x
topology: tpu7x:2x2x1
jax: 0.10.0
libtpu: 0.0.40
codegen_flags: <defaults>
</compile_context>

<pallas_src>
import jax
import jax.numpy as jnp
from jax import lax
from jax.experimental import pallas as pl
from jax.experimental.pallas import tpu as pltpu

_LANE = 128   # lane width / channel padding target
_COL0 = 8     # sublane-aligned column where the image interior starts in scratch


def _round_up(x, m):
    return (x + m - 1) // m * m


# ---------------------------------------------------------------------------
# Fused BasicBlock kernel (one grid step == one image)
# ---------------------------------------------------------------------------
def _basic_block_kernel(x_ref, w1_ref, w2_ref, s1_ref, b1_ref, s2_ref, b2_ref,
                        o_ref, pad_ref):
    # x_ref  : (1, H, W, Cp)            channel-padded f32 NHWC input tile
    # w*_ref : (9, Cp, Cp)              3x3 taps (dy*3+dx, Cin, Cout), compute dtype
    # s*/b*  : (1, Cp)                  fused BatchNorm affine (f32)
    # o_ref  : (1, H, W, Cp)            lane-dense f32 output tile
    # pad_ref: (H+2, W+2*_COL0, Cp)     compute-dtype halo scratch, shared by both convs
    _, H, W, Cp = x_ref.shape
    C0 = _COL0
    W2 = W + 2 * C0

    # Zero ONLY the 1-pixel halo ring the 3x3 windows read; the interior is fully
    # overwritten below and the ring stays zero across both convs.  (Doing this per
    # step -- instead of once under pl.when(program_id==0) -- keeps it correct when
    # the batch axis is sharded across TensorCores.)
    zrow = jnp.zeros((1, W2, Cp), dtype=pad_ref.dtype)
    zcol = jnp.zeros((H, 2, Cp), dtype=pad_ref.dtype)
    pad_ref[0:1, :, :] = zrow                        # top halo row
    pad_ref[H + 1:H + 2, :, :] = zrow                # bottom halo row
    pad_ref[1:H + 1, C0 - 2:C0, :] = zcol            # left halo column (covers C0-1)
    pad_ref[1:H + 1, C0 + W:C0 + W + 2, :] = zcol    # right halo column (covers C0+W)

    def conv3x3(w_ref):
        # Split-K im2col: 3 matmuls of K = 3*Cp (grouped by dy), accumulated in f32.
        # 3x smaller transient patch than a single K = 9*Cp concat, and the scheduler
        # can overlap building group dy+1 with the matmul of group dy.
        acc = None
        for dy in range(3):
            windows = [pad_ref[dy:dy + H, C0 - 1 + dx:C0 - 1 + dx + W, :]
                       for dx in range(3)]
            patch = jnp.concatenate(windows, axis=-1).reshape(H * W, 3 * Cp)
            part = jnp.dot(patch, w_ref[3 * dy:3 * dy + 3].reshape(3 * Cp, Cp),
                           preferred_element_type=jnp.float32)
            acc = part if acc is None else acc + part
        return acc

    # Stage x into the halo scratch; the cast to the compute dtype happens here,
    # once, at H*W*Cp granularity (no duplicated 9x-expanded patch).
    pad_ref[1:H + 1, C0:C0 + W, :] = x_ref[0].astype(pad_ref.dtype)

    # conv1 -> fused BN1 -> ReLU (f32 epilogue)
    y1 = conv3x3(w1_ref)
    y1 = jnp.maximum(y1 * s1_ref[...] + b1_ref[...], 0.0)

    # Reuse the SAME halo scratch for conv2's input (halo ring is still zero).
    pad_ref[1:H + 1, C0:C0 + W, :] = y1.reshape(H, W, Cp).astype(pad_ref.dtype)

    # conv2 -> fused BN2 -> residual add -> ReLU.  The identity comes from the
    # still-resident f32 input block (full precision, no extra scratch read).
    y2 = conv3x3(w2_ref) * s2_ref[...] + b2_ref[...]
    identity = x_ref[0].reshape(H * W, Cp)
    out = jnp.maximum(y2 + identity, 0.0)
    o_ref[0] = out.reshape(H, W, Cp).astype(o_ref.dtype)


# ---------------------------------------------------------------------------
# Wrapper around pallas_call
# ---------------------------------------------------------------------------
def _vmem_limit_bytes():
    # Per-generation VMEM budget: ~3/4 of physical (v5e/v6e: ~96 MiB of 128 MiB,
    # v7x: 48 MiB of 64 MiB), capped at 100 MiB.
    try:
        phys = pltpu.get_tpu_info().vmem_capacity_bytes
    except Exception:
        phys = 64 * 1024 * 1024          # conservative fallback (safe on all gens)
    return int(min(phys * 3 // 4, 100 * 1024 * 1024))


def basic_block_pallas(x_nhwc, w1_oihw, w2_oihw, scale1, bias1, scale2, bias2,
                       *, compute_dtype=jnp.float32):
    N, H, W, Cin = x_nhwc.shape
    planes, inplanes = w1_oihw.shape[0], w1_oihw.shape[1]
    assert inplanes == Cin and planes == Cin, \
        "stride=1 / downsample=None BasicBlock requires inplanes == planes"
    Cp = _round_up(planes, _LANE)

    x_p = x_nhwc.astype(jnp.float32)
    if Cin != Cp:
        x_p = jnp.pad(x_p, ((0, 0), (0, 0), (0, 0), (0, Cp - Cin)))

    def prep_w(w_oihw, cin):
        # OIHW -> HWIO -> (9, Cin, Cout), zero-padded to (9, Cp, Cp), compute dtype.
        w = jnp.transpose(w_oihw, (2, 3, 1, 0)).reshape(9, cin, planes)
        w = jnp.pad(w, ((0, 0), (0, Cp - cin), (0, Cp - planes)))
        return w.astype(compute_dtype)

    def prep_affine(v):
        return jnp.pad(v.astype(jnp.float32), (0, Cp - planes)).reshape(1, Cp)

    w1 = prep_w(w1_oihw, Cin)
    w2 = prep_w(w2_oihw, planes)
    s1, b1, s2, b2 = map(prep_affine, (scale1, bias1, scale2, bias2))

    out = pl.pallas_call(
        _basic_block_kernel,
        out_shape=jax.ShapeDtypeStruct((N, H, W, Cp), jnp.float32),
        grid_spec=pltpu.PrefetchScalarGridSpec(
            num_scalar_prefetch=0,
            grid=(N,),
            in_specs=[
                pl.BlockSpec((1, H, W, Cp), lambda n: (n, 0, 0, 0)),   # x
                pl.BlockSpec((9, Cp, Cp), lambda n: (0, 0, 0)),        # w1 (resident)
                pl.BlockSpec((9, Cp, Cp), lambda n: (0, 0, 0)),        # w2 (resident)
                pl.BlockSpec((1, Cp), lambda n: (0, 0)),               # scale1
                pl.BlockSpec((1, Cp), lambda n: (0, 0)),               # bias1
                pl.BlockSpec((1, Cp), lambda n: (0, 0)),               # scale2
                pl.BlockSpec((1, Cp), lambda n: (0, 0)),               # bias2
            ],
            out_specs=pl.BlockSpec((1, H, W, Cp), lambda n: (n, 0, 0, 0)),
            scratch_shapes=[
                # single shared halo scratch, stored in the compute dtype
                pltpu.VMEM((H + 2, W + 2 * _COL0, Cp), compute_dtype),
            ],
        ),
        compiler_params=pltpu.CompilerParams(
            dimension_semantics=("parallel",),          # megacore on v7x
            vmem_limit_bytes=_vmem_limit_bytes(),
        ),
    )(x_p, w1, w2, s1, b1, s2, b2)

    return out[..., :planes]


# ---------------------------------------------------------------------------
# Parameter construction (deterministic, matches BasicBlock.__init__ shapes)
# ---------------------------------------------------------------------------
_BN_EPS = 1e-5
# (a, k) -> BN index used by the forward pass (bn1{i} / bn2{i})
_BN_INDEX = {(2, 8): 0, (2, 10): 1, (2, 12): 2, (2, 14): 3,
             (3, 14): 4, (3, 16): 5, (3, 18): 6, (3, 20): 7}


def init_basic_block(key, inplanes, planes):
    k_w1, k_w2, k_bn = jax.random.split(key, 3)
    w1 = jax.random.normal(k_w1, (planes, inplanes, 3, 3), jnp.float32) * 0.1
    w2 = jax.random.normal(k_w2, (planes, planes, 3, 3), jnp.float32) * 0.1

    def make_bn_set(key, n):
        ks = jax.random.split(key, 4)
        gamma = 1.0 + 0.3 * jax.random.normal(ks[0], (n, planes), jnp.float32)
        beta = 0.1 * jax.random.normal(ks[1], (n, planes), jnp.float32)
        mean = 0.1 * jax.random.normal(ks[2], (n, planes), jnp.float32)
        var = 0.5 + jax.random.uniform(ks[3], (n, planes), jnp.float32)
        return gamma, beta, mean, var

    k_bn1, k_bn2 = jax.random.split(k_bn)
    return {"w1": w1, "w2": w2,
            "bn1": make_bn_set(k_bn1, 9),   # bn10 .. bn18
            "bn2": make_bn_set(k_bn2, 9)}   # bn20 .. bn28


def _bn_fused(bn_set, idx, planes):
    # idx is None when (a, k) matches no branch -> PyTorch forward skips BN entirely,
    # so the fused affine degenerates to identity (scale=1, bias=0).
    if idx is None:
        return jnp.ones((planes,), jnp.float32), jnp.zeros((planes,), jnp.float32)
    gamma, beta, mean, var = bn_set
    scale = gamma[idx] / jnp.sqrt(var[idx] + _BN_EPS)
    bias = beta[idx] - mean[idx] * scale
    return scale, bias


def basic_block_forward(params, x_nchw, a, k, compute_dtype=jnp.float32):
    """Mirrors BasicBlock.forward(x, a, k) with downsample=None, stride=1."""
    planes = params["w1"].shape[0]
    idx = _BN_INDEX.get((a, k), None)
    s1, b1 = _bn_fused(params["bn1"], idx, planes)
    s2, b2 = _bn_fused(params["bn2"], idx, planes)

    x_nhwc = jnp.transpose(x_nchw, (0, 2, 3, 1)).astype(jnp.float32)
    out = basic_block_pallas(x_nhwc, params["w1"], params["w2"], s1, b1, s2, b2,
                             compute_dtype=compute_dtype)
    return jnp.transpose(out, (0, 3, 1, 2)), a, k


# ---------------------------------------------------------------------------
# Pure-JAX reference (NCHW, same math / same cast points) for correctness checks
# ---------------------------------------------------------------------------
def _reference_forward(params, x_nchw, a, k, compute_dtype=jnp.float32):
    planes = params["w1"].shape[0]
    idx = _BN_INDEX.get((a, k), None)
    s1, b1 = _bn_fused(params["bn1"], idx, planes)
    s2, b2 = _bn_fused(params["bn2"], idx, planes)

    def conv(x_, w_):
        return lax.conv_general_dilated(
            x_.astype(compute_dtype), w_.astype(compute_dtype),
            window_strides=(1, 1), padding=((1, 1), (1, 1)),
            dimension_numbers=("NCHW", "OIHW", "NCHW"),
            precision=lax.Precision.HIGHEST,
            preferred_element_type=jnp.float32)

    identity = x_nchw
    out = conv(x_nchw, params["w1"])
    out = out * s1[None, :, None, None] + b1[None, :, None, None]
    out = jnp.maximum(out, 0.0)
    out = conv(out, params["w2"])
    out = out * s2[None, :, None, None] + b2[None, :, None, None]
    out = jnp.maximum(out + identity, 0.0)
    return out


# ---------------------------------------------------------------------------
if __name__ == "__main__":
    key = jax.random.PRNGKey(0)
    k_param, k_x = jax.random.split(key)

    N, C, H, W = 2, 4, 16, 16          # inplanes = planes = 4
    a, kk = 2, 8                       # selects bn10 / bn20

    params = init_basic_block(k_param, C, C)
    x = jax.random.normal(k_x, (N, C, H, W), jnp.float32)

    # f32 compute path (strict check)
    out, a_out, k_out = basic_block_forward(params, x, a, kk)
    out = jax.block_until_ready(out)
    ref = jax.block_until_ready(_reference_forward(params, x, a, kk))
    assert out.shape == (N, C, H, W)
    assert a_out == a and k_out == kk
    assert jnp.allclose(out, ref, atol=1e-4, rtol=1e-4), "f32 mismatch vs reference"

    # bf16 MXU compute path (bf16 scratch / weights, f32 epilogue + f32 identity)
    out_bf, _, _ = basic_block_forward(params, x, a, kk, compute_dtype=jnp.bfloat16)
    out_bf = jax.block_until_ready(out_bf)
    ref_bf = jax.block_until_ready(
        _reference_forward(params, x, a, kk, compute_dtype=jnp.bfloat16))
    assert jnp.allclose(out_bf, ref_bf, atol=1e-2, rtol=1e-2), "bf16 mismatch vs reference"

    print("KERNEL_OK")
</pallas_src>

<mosaic_0001>
module attributes {stable_mosaic.version = 11 : i64} {
  func.func @_basic_block_kernel(%arg0: i32, %arg1: memref<1x16x16x128xf32, #tpu.memory_space<vmem>>, %arg2: memref<9x128x128xf32, #tpu.memory_space<vmem>>, %arg3: memref<9x128x128xf32, #tpu.memory_space<vmem>>, %arg4: memref<1x128xf32, #tpu.memory_space<vmem>>, %arg5: memref<1x128xf32, #tpu.memory_space<vmem>>, %arg6: memref<1x128xf32, #tpu.memory_space<vmem>>, %arg7: memref<1x128xf32, #tpu.memory_space<vmem>>, %arg8: memref<1x16x16x128xf32, #tpu.memory_space<vmem>>, %arg9: memref<18x32x128xf32, #tpu.memory_space<vmem>>) attributes {dimension_semantics = [#tpu.dimension_semantics<parallel>], iteration_bounds = array<i64: 2>, scalar_prefetch = 0 : i64, scratch_operands = 1 : i64, tpu.core_type = #tpu.core_type<tc>, window_params = [{transform_indices = @transform_0, window_bounds = array<i64: 1, 16, 16, 128>}, {pipeline_mode = #tpu.pipeline_mode<synchronous>, transform_indices = @transform_1, window_bounds = array<i64: 9, 128, 128>}, {pipeline_mode = #tpu.pipeline_mode<synchronous>, transform_indices = @transform_2, window_bounds = array<i64: 9, 128, 128>}, {pipeline_mode = #tpu.pipeline_mode<synchronous>, transform_indices = @transform_3, window_bounds = array<i64: 1, 128>}, {pipeline_mode = #tpu.pipeline_mode<synchronous>, transform_indices = @transform_4, window_bounds = array<i64: 1, 128>}, {pipeline_mode = #tpu.pipeline_mode<synchronous>, transform_indices = @transform_5, window_bounds = array<i64: 1, 128>}, {pipeline_mode = #tpu.pipeline_mode<synchronous>, transform_indices = @transform_6, window_bounds = array<i64: 1, 128>}, {transform_indices = @transform_7, window_bounds = array<i64: 1, 16, 16, 128>}]} {
    %cst = arith.constant 0.000000e+00 : f32
    %0 = vector.broadcast %cst : f32 to vector<1x32x128xf32>
    %cst_0 = arith.constant 0.000000e+00 : f32
    %1 = vector.broadcast %cst_0 : f32 to vector<16x2x128xf32>
    %c0 = arith.constant 0 : index
    %c0_1 = arith.constant 0 : index
    %c0_2 = arith.constant 0 : index
    %2 = vector.load %arg9[%c0, %c0_1, %c0_2] : memref<18x32x128xf32, #tpu.memory_space<vmem>>, vector<1x32x128xf32>
    tpu.vector_store %arg9[%c0, %c0_1, %c0_2], %0 {strides = array<i32>} : memref<18x32x128xf32, #tpu.memory_space<vmem>>, vector<1x32x128xf32>,
    %c17 = arith.constant 17 : index
    %c0_3 = arith.constant 0 : index
    %c0_4 = arith.constant 0 : index
    %3 = vector.load %arg9[%c17, %c0_3, %c0_4] : memref<18x32x128xf32, #tpu.memory_space<vmem>>, vector<1x32x128xf32>
    tpu.vector_store %arg9[%c17, %c0_3, %c0_4], %0 {strides = array<i32>} : memref<18x32x128xf32, #tpu.memory_space<vmem>>, vector<1x32x128xf32>,
    %c1 = arith.constant 1 : index
    %c6 = arith.constant 6 : index
    %c0_5 = arith.constant 0 : index
    %4 = vector.load %arg9[%c1, %c6, %c0_5] : memref<18x32x128xf32, #tpu.memory_space<vmem>>, vector<16x2x128xf32>
    tpu.vector_store %arg9[%c1, %c6, %c0_5], %1 {strides = array<i32>} : memref<18x32x128xf32, #tpu.memory_space<vmem>>, vector<16x2x128xf32>,
    %c1_6 = arith.constant 1 : index
    %c24 = arith.constant 24 : index
    %c0_7 = arith.constant 0 : index
    %5 = vector.load %arg9[%c1_6, %c24, %c0_7] : memref<18x32x128xf32, #tpu.memory_space<vmem>>, vector<16x2x128xf32>
    tpu.vector_store %arg9[%c1_6, %c24, %c0_7], %1 {strides = array<i32>} : memref<18x32x128xf32, #tpu.memory_space<vmem>>, vector<16x2x128xf32>,
    %c0_8 = arith.constant 0 : index
    %c0_9 = arith.constant 0 : index
    %c0_10 = arith.constant 0 : index
    %c0_11 = arith.constant 0 : index
    %6 = vector.load %arg1[%c0_8, %c0_9, %c0_10, %c0_11] : memref<1x16x16x128xf32, #tpu.memory_space<vmem>>, vector<1x16x16x128xf32>
    %7 = vector.shape_cast %6 : vector<1x16x16x128xf32> to vector<16x16x128xf32>
    %c1_12 = arith.constant 1 : index
    %c8 = arith.constant 8 : index
    %c0_13 = arith.constant 0 : index
    %8 = vector.load %arg9[%c1_12, %c8, %c0_13] : memref<18x32x128xf32, #tpu.memory_space<vmem>>, vector<16x16x128xf32>
    tpu.vector_store %arg9[%c1_12, %c8, %c0_13], %7 {strides = array<i32>} : memref<18x32x128xf32, #tpu.memory_space<vmem>>, vector<16x16x128xf32>,
    %c0_14 = arith.constant 0 : index
    %c7 = arith.constant 7 : index
    %c0_15 = arith.constant 0 : index
    %9 = vector.load %arg9[%c0_14, %c7, %c0_15] : memref<18x32x128xf32, #tpu.memory_space<vmem>>, vector<16x16x128xf32>
    %c0_16 = arith.constant 0 : index
    %c8_17 = arith.constant 8 : index
    %c0_18 = arith.constant 0 : index
    %10 = vector.load %arg9[%c0_16, %c8_17, %c0_18] : memref<18x32x128xf32, #tpu.memory_space<vmem>>, vector<16x16x128xf32>
    %c0_19 = arith.constant 0 : index
    %c9 = arith.constant 9 : index
    %c0_20 = arith.constant 0 : index
    %11 = vector.load %arg9[%c0_19, %c9, %c0_20] : memref<18x32x128xf32, #tpu.memory_space<vmem>>, vector<16x16x128xf32>
    %12 = tpu.concatenate %9, %10, %11 in 2 : vector<16x16x128xf32>, vector<16x16x128xf32>, vector<16x16x128xf32> -> vector<16x16x384xf32>
    %13 = vector.shape_cast %12 : vector<16x16x384xf32> to vector<256x384xf32>
    %c0_21 = arith.constant 0 : index
    %c0_22 = arith.constant 0 : index
    %c0_23 = arith.constant 0 : index
    %14 = vector.load %arg2[%c0_21, %c0_22, %c0_23] : memref<9x128x128xf32, #tpu.memory_space<vmem>>, vector<3x128x128xf32>
    %15 = vector.shape_cast %14 : vector<3x128x128xf32> to vector<384x128xf32>
    %cst_24 = arith.constant dense<0.000000e+00> : vector<256x128xf32>
    %16 = tpu.matmul %13, %15, %cst_24 {dimension_numbers = #tpu.dot_dimension_numbers<[1], [0], [0], [1], [0, 0, 1, 1], [], []>} : vector<256x384xf32>, vector<384x128xf32>, vector<256x128xf32> -> vector<256x128xf32>
    %c1_25 = arith.constant 1 : index
    %c7_26 = arith.constant 7 : index
    %c0_27 = arith.constant 0 : index
    %17 = vector.load %arg9[%c1_25, %c7_26, %c0_27] : memref<18x32x128xf32, #tpu.memory_space<vmem>>, vector<16x16x128xf32>
    %c1_28 = arith.constant 1 : index
    %c8_29 = arith.constant 8 : index
    %c0_30 = arith.constant 0 : index
    %18 = vector.load %arg9[%c1_28, %c8_29, %c0_30] : memref<18x32x128xf32, #tpu.memory_space<vmem>>, vector<16x16x128xf32>
    %c1_31 = arith.constant 1 : index
    %c9_32 = arith.constant 9 : index
    %c0_33 = arith.constant 0 : index
    %19 = vector.load %arg9[%c1_31, %c9_32, %c0_33] : memref<18x32x128xf32, #tpu.memory_space<vmem>>, vector<16x16x128xf32>
    %20 = tpu.concatenate %17, %18, %19 in 2 : vector<16x16x128xf32>, vector<16x16x128xf32>, vector<16x16x128xf32> -> vector<16x16x384xf32>
    %21 = vector.shape_cast %20 : vector<16x16x384xf32> to vector<256x384xf32>
    %c3 = arith.constant 3 : index
    %c0_34 = arith.constant 0 : index
    %c0_35 = arith.constant 0 : index
    %22 = vector.load %arg2[%c3, %c0_34, %c0_35] : memref<9x128x128xf32, #tpu.memory_space<vmem>>, vector<3x128x128xf32>
    %23 = vector.shape_cast %22 : vector<3x128x128xf32> to vector<384x128xf32>
    %cst_36 = arith.constant dense<0.000000e+00> : vector<256x128xf32>
    %24 = tpu.matmul %21, %23, %cst_36 {dimension_numbers = #tpu.dot_dimension_numbers<[1], [0], [0], [1], [0, 0, 1, 1], [], []>} : vector<256x384xf32>, vector<384x128xf32>, vector<256x128xf32> -> vector<256x128xf32>
    %25 = arith.addf %16, %24 : vector<256x128xf32>
    %c2 = arith.constant 2 : index
    %c7_37 = arith.constant 7 : index
    %c0_38 = arith.constant 0 : index
    %26 = vector.load %arg9[%c2, %c7_37, %c0_38] : memref<18x32x128xf32, #tpu.memory_space<vmem>>, vector<16x16x128xf32>
    %c2_39 = arith.constant 2 : index
    %c8_40 = arith.constant 8 : index
    %c0_41 = arith.constant 0 : index
    %27 = vector.load %arg9[%c2_39, %c8_40, %c0_41] : memref<18x32x128xf32, #tpu.memory_space<vmem>>, vector<16x16x128xf32>
    %c2_42 = arith.constant 2 : index
    %c9_43 = arith.constant 9 : index
    %c0_44 = arith.constant 0 : index
    %28 = vector.load %arg9[%c2_42, %c9_43, %c0_44] : memref<18x32x128xf32, #tpu.memory_space<vmem>>, vector<16x16x128xf32>
    %29 = tpu.concatenate %26, %27, %28 in 2 : vector<16x16x128xf32>, vector<16x16x128xf32>, vector<16x16x128xf32> -> vector<16x16x384xf32>
    %30 = vector.shape_cast %29 : vector<16x16x384xf32> to vector<256x384xf32>
    %c6_45 = arith.constant 6 : index
    %c0_46 = arith.constant 0 : index
    %c0_47 = arith.constant 0 : index
    %31 = vector.load %arg2[%c6_45, %c0_46, %c0_47] : memref<9x128x128xf32, #tpu.memory_space<vmem>>, vector<3x128x128xf32>
    %32 = vector.shape_cast %31 : vector<3x128x128xf32> to vector<384x128xf32>
    %cst_48 = arith.constant dense<0.000000e+00> : vector<256x128xf32>
    %33 = tpu.matmul %30, %32, %cst_48 {dimension_numbers = #tpu.dot_dimension_numbers<[1], [0], [0], [1], [0, 0, 1, 1], [], []>} : vector<256x384xf32>, vector<384x128xf32>, vector<256x128xf32> -> vector<256x128xf32>
    %34 = arith.addf %25, %33 : vector<256x128xf32>
    %c0_49 = arith.constant 0 : index
    %c0_50 = arith.constant 0 : index
    %35 = vector.load %arg4[%c0_49, %c0_50] : memref<1x128xf32, #tpu.memory_space<vmem>>, vector<1x128xf32>
    %36 = vector.broadcast %35 : vector<1x128xf32> to vector<256x128xf32>
    %37 = arith.mulf %34, %36 : vector<256x128xf32>
    %c0_51 = arith.constant 0 : index
    %c0_52 = arith.constant 0 : index
    %38 = vector.load %arg5[%c0_51, %c0_52] : memref<1x128xf32, #tpu.memory_space<vmem>>, vector<1x128xf32>
    %39 = vector.broadcast %38 : vector<1x128xf32> to vector<256x128xf32>
    %40 = arith.addf %37, %39 : vector<256x128xf32>
    %cst_53 = arith.constant 0.000000e+00 : f32
    %41 = vector.broadcast %cst_53 : f32 to vector<256x128xf32>
    %42 = arith.maximumf %40, %41 : vector<256x128xf32>
    %43 = vector.shape_cast %42 : vector<256x128xf32> to vector<16x16x128xf32>
    %c1_54 = arith.constant 1 : index
    %c8_55 = arith.constant 8 : index
    %c0_56 = arith.constant 0 : index
    %44 = vector.load %arg9[%c1_54, %c8_55, %c0_56] : memref<18x32x128xf32, #tpu.memory_space<vmem>>, vector<16x16x128xf32>
    tpu.vector_store %arg9[%c1_54, %c8_55, %c0_56], %43 {strides = array<i32>} : memref<18x32x128xf32, #tpu.memory_space<vmem>>, vector<16x16x128xf32>,
    %c0_57 = arith.constant 0 : index
    %c7_58 = arith.constant 7 : index
    %c0_59 = arith.constant 0 : index
    %45 = vector.load %arg9[%c0_57, %c7_58, %c0_59] : memref<18x32x128xf32, #tpu.memory_space<vmem>>, vector<16x16x128xf32>
    %c0_60 = arith.constant 0 : index
    %c8_61 = arith.constant 8 : index
    %c0_62 = arith.constant 0 : index
    %46 = vector.load %arg9[%c0_60, %c8_61, %c0_62] : memref<18x32x128xf32, #tpu.memory_space<vmem>>, vector<16x16x128xf32>
    %c0_63 = arith.constant 0 : index
    %c9_64 = arith.constant 9 : index
    %c0_65 = arith.constant 0 : index
    %47 = vector.load %arg9[%c0_63, %c9_64, %c0_65] : memref<18x32x128xf32, #tpu.memory_space<vmem>>, vector<16x16x128xf32>
    %48 = tpu.concatenate %45, %46, %47 in 2 : vector<16x16x128xf32>, vector<16x16x128xf32>, vector<16x16x128xf32> -> vector<16x16x384xf32>
    %49 = vector.shape_cast %48 : vector<16x16x384xf32> to vector<256x384xf32>
    %c0_66 = arith.constant 0 : index
    %c0_67 = arith.constant 0 : index
    %c0_68 = arith.constant 0 : index
    %50 = vector.load %arg3[%c0_66, %c0_67, %c0_68] : memref<9x128x128xf32, #tpu.memory_space<vmem>>, vector<3x128x128xf32>
    %51 = vector.shape_cast %50 : vector<3x128x128xf32> to vector<384x128xf32>
    %cst_69 = arith.constant dense<0.000000e+00> : vector<256x128xf32>
    %52 = tpu.matmul %49, %51, %cst_69 {dimension_numbers = #tpu.dot_dimension_numbers<[1], [0], [0], [1], [0, 0, 1, 1], [], []>} : vector<256x384xf32>, vector<384x128xf32>, vector<256x128xf32> -> vector<256x128xf32>
    %c1_70 = arith.constant 1 : index
    %c7_71 = arith.constant 7 : index
    %c0_72 = arith.constant 0 : index
    %53 = vector.load %arg9[%c1_70, %c7_71, %c0_72] : memref<18x32x128xf32, #tpu.memory_space<vmem>>, vector<16x16x128xf32>
    %c1_73 = arith.constant 1 : index
    %c8_74 = arith.constant 8 : index
    %c0_75 = arith.constant 0 : index
    %54 = vector.load %arg9[%c1_73, %c8_74, %c0_75] : memref<18x32x128xf32, #tpu.memory_space<vmem>>, vector<16x16x128xf32>
    %c1_76 = arith.constant 1 : index
    %c9_77 = arith.constant 9 : index
    %c0_78 = arith.constant 0 : index
    %55 = vector.load %arg9[%c1_76, %c9_77, %c0_78] : memref<18x32x128xf32, #tpu.memory_space<vmem>>, vector<16x16x128xf32>
    %56 = tpu.concatenate %53, %54, %55 in 2 : vector<16x16x128xf32>, vector<16x16x128xf32>, vector<16x16x128xf32> -> vector<16x16x384xf32>
    %57 = vector.shape_cast %56 : vector<16x16x384xf32> to vector<256x384xf32>
    %c3_79 = arith.constant 3 : index
    %c0_80 = arith.constant 0 : index
    %c0_81 = arith.constant 0 : index
    %58 = vector.load %arg3[%c3_79, %c0_80, %c0_81] : memref<9x128x128xf32, #tpu.memory_space<vmem>>, vector<3x128x128xf32>
    %59 = vector.shape_cast %58 : vector<3x128x128xf32> to vector<384x128xf32>
    %cst_82 = arith.constant dense<0.000000e+00> : vector<256x128xf32>
    %60 = tpu.matmul %57, %59, %cst_82 {dimension_numbers = #tpu.dot_dimension_numbers<[1], [0], [0], [1], [0, 0, 1, 1], [], []>} : vector<256x384xf32>, vector<384x128xf32>, vector<256x128xf32> -> vector<256x128xf32>
    %61 = arith.addf %52, %60 : vector<256x128xf32>
    %c2_83 = arith.constant 2 : index
    %c7_84 = arith.constant 7 : index
    %c0_85 = arith.constant 0 : index
    %62 = vector.load %arg9[%c2_83, %c7_84, %c0_85] : memref<18x32x128xf32, #tpu.memory_space<vmem>>, vector<16x16x128xf32>
    %c2_86 = arith.constant 2 : index
    %c8_87 = arith.constant 8 : index
    %c0_88 = arith.constant 0 : index
    %63 = vector.load %arg9[%c2_86, %c8_87, %c0_88] : memref<18x32x128xf32, #tpu.memory_space<vmem>>, vector<16x16x128xf32>
    %c2_89 = arith.constant 2 : index
    %c9_90 = arith.constant 9 : index
    %c0_91 = arith.constant 0 : index
    %64 = vector.load %arg9[%c2_89, %c9_90, %c0_91] : memref<18x32x128xf32, #tpu.memory_space<vmem>>, vector<16x16x128xf32>
    %65 = tpu.concatenate %62, %63, %64 in 2 : vector<16x16x128xf32>, vector<16x16x128xf32>, vector<16x16x128xf32> -> vector<16x16x384xf32>
    %66 = vector.shape_cast %65 : vector<16x16x384xf32> to vector<256x384xf32>
    %c6_92 = arith.constant 6 : index
    %c0_93 = arith.constant 0 : index
    %c0_94 = arith.constant 0 : index
    %67 = vector.load %arg3[%c6_92, %c0_93, %c0_94] : memref<9x128x128xf32, #tpu.memory_space<vmem>>, vector<3x128x128xf32>
    %68 = vector.shape_cast %67 : vector<3x128x128xf32> to vector<384x128xf32>
    %cst_95 = arith.constant dense<0.000000e+00> : vector<256x128xf32>
    %69 = tpu.matmul %66, %68, %cst_95 {dimension_numbers = #tpu.dot_dimension_numbers<[1], [0], [0], [1], [0, 0, 1, 1], [], []>} : vector<256x384xf32>, vector<384x128xf32>, vector<256x128xf32> -> vector<256x128xf32>
    %70 = arith.addf %61, %69 : vector<256x128xf32>
    %c0_96 = arith.constant 0 : index
    %c0_97 = arith.constant 0 : index
    %71 = vector.load %arg6[%c0_96, %c0_97] : memref<1x128xf32, #tpu.memory_space<vmem>>, vector<1x128xf32>
    %72 = vector.broadcast %71 : vector<1x128xf32> to vector<256x128xf32>
    %73 = arith.mulf %70, %72 : vector<256x128xf32>
    %c0_98 = arith.constant 0 : index
    %c0_99 = arith.constant 0 : index
    %74 = vector.load %arg7[%c0_98, %c0_99] : memref<1x128xf32, #tpu.memory_space<vmem>>, vector<1x128xf32>
    %75 = vector.broadcast %74 : vector<1x128xf32> to vector<256x128xf32>
    %76 = arith.addf %73, %75 : vector<256x128xf32>
    %c0_100 = arith.constant 0 : index
    %c0_101 = arith.constant 0 : index
    %c0_102 = arith.constant 0 : index
    %c0_103 = arith.constant 0 : index
    %77 = vector.load %arg1[%c0_100, %c0_101, %c0_102, %c0_103] : memref<1x16x16x128xf32, #tpu.memory_space<vmem>>, vector<1x16x16x128xf32>
    %78 = vector.shape_cast %77 : vector<1x16x16x128xf32> to vector<16x16x128xf32>
    %79 = vector.shape_cast %78 : vector<16x16x128xf32> to vector<256x128xf32>
    %80 = arith.addf %76, %79 : vector<256x128xf32>
    %cst_104 = arith.constant 0.000000e+00 : f32
    %81 = vector.broadcast %cst_104 : f32 to vector<256x128xf32>
    %82 = arith.maximumf %80, %81 : vector<256x128xf32>
    %83 = vector.shape_cast %82 : vector<256x128xf32> to vector<16x16x128xf32>
    %c0_105 = arith.constant 0 : index
    %c0_106 = arith.constant 0 : index
    %c0_107 = arith.constant 0 : index
    %c0_108 = arith.constant 0 : index
    %84 = vector.load %arg8[%c0_105, %c0_106, %c0_107, %c0_108] : memref<1x16x16x128xf32, #tpu.memory_space<vmem>>, vector<1x16x16x128xf32>
    %85 = vector.shape_cast %84 : vector<1x16x16x128xf32> to vector<16x16x128xf32>
    %86 = vector.shape_cast %83 : vector<16x16x128xf32> to vector<1x16x16x128xf32>
    tpu.vector_store %arg8[%c0_105, %c0_106, %c0_107, %c0_108], %86 {strides = array<i32>} : memref<1x16x16x128xf32, #tpu.memory_space<vmem>>, vector<1x16x16x128xf32>,
    return
  }
  func.func @transform_0(%arg0: i32) -> (i32, i32, i32, i32) {
    %c0_i32 = arith.constant 0 : i32
    %c0_i32_0 = arith.constant 0 : i32
    %c0_i32_1 = arith.constant 0 : i32
    %c0_i32_2 = arith.constant 0 : i32
    return %arg0, %c0_i32, %c0_i32_0, %c0_i32_1 : i32, i32, i32, i32
  }
  func.func @transform_1(%arg0: i32) -> (i32, i32, i32) {
    %c0_i32 = arith.constant 0 : i32
    %c0_i32_0 = arith.constant 0 : i32
    %c0_i32_1 = arith.constant 0 : i32
    %c0_i32_2 = arith.constant 0 : i32
    return %c0_i32, %c0_i32_0, %c0_i32_1 : i32, i32, i32
  }
  func.func @transform_2(%arg0: i32) -> (i32, i32, i32) {
    %c0_i32 = arith.constant 0 : i32
    %c0_i32_0 = arith.constant 0 : i32
    %c0_i32_1 = arith.constant 0 : i32
    %c0_i32_2 = arith.constant 0 : i32
    return %c0_i32, %c0_i32_0, %c0_i32_1 : i32, i32, i32
  }
  func.func @transform_3(%arg0: i32) -> (i32, i32) {
    %c0_i32 = arith.constant 0 : i32
    %c0_i32_0 = arith.constant 0 : i32
    %c0_i32_1 = arith.constant 0 : i32
    return %c0_i32, %c0_i32_0 : i32, i32
  }
  func.func @transform_4(%arg0: i32) -> (i32, i32) {
    %c0_i32 = arith.constant 0 : i32
    %c0_i32_0 = arith.constant 0 : i32
    %c0_i32_1 = arith.constant 0 : i32
    return %c0_i32, %c0_i32_0 : i32, i32
  }
  func.func @transform_5(%arg0: i32) -> (i32, i32) {
    %c0_i32 = arith.constant 0 : i32
    %c0_i32_0 = arith.constant 0 : i32
    %c0_i32_1 = arith.constant 0 : i32
    return %c0_i32, %c0_i32_0 : i32, i32
  }
  func.func @transform_6(%arg0: i32) -> (i32, i32) {
    %c0_i32 = arith.constant 0 : i32
    %c0_i32_0 = arith.constant 0 : i32
    %c0_i32_1 = arith.constant 0 : i32
    return %c0_i32, %c0_i32_0 : i32, i32
  }
  func.func @transform_7(%arg0: i32) -> (i32, i32, i32, i32) {
    %c0_i32 = arith.constant 0 : i32
    %c0_i32_0 = arith.constant 0 : i32
    %c0_i32_1 = arith.constant 0 : i32
    %c0_i32_2 = arith.constant 0 : i32
    return %arg0, %c0_i32, %c0_i32_0, %c0_i32_1 : i32, i32, i32, i32
  }
}

</mosaic_0001>

<bundles_post_ra>
// kernel: tpu_custom_call.1
= control target key start
LH: loop header
LB: loop body
LE: loop exit
PB: predicated region body
PF: predicated region fallthrough
CT: control target
= control target key end

     0   :  { %12 = vsyncpa [#allocation4], 0  ;;  %s8317_s0 = inlined_call_operand.hbm [shape: f32[2,16,16,128], index: 0, kind: input, shape index: {}]   ;;  %s8318_s1 = inlined_call_operand.hbm [shape: f32[9,128,128], index: 1, kind: input, shape index: {}]   ;;  %s8319_s2 = inlined_call_operand.hbm [shape: f32[9,128,128], index: 2, kind: input, shape index: {}]   ;;  %s8320_s3 = inlined_call_operand.vmem [shape: f32[1,128], index: 3, kind: input, shape index: {}]   ;;  %s8321_s4 = inlined_call_operand.vmem [shape: f32[1,128], index: 4, kind: input, shape index: {}]   ;;  %s8322_s5 = inlined_call_operand.vmem [shape: f32[1,128], index: 5, kind: input, shape index: {}]   ;;  %s8323_s6 = inlined_call_operand.vmem [shape: f32[1,128], index: 6, kind: input, shape index: {}]   ;;  %s8324_s7 = inlined_call_operand.hbm [shape: f32[2,16,16,128], index: 7, kind: output, shape index: {}]  }
   0x1   :  { %14 = vsyncpa [#allocation4 + $0x1], 0 }
   0x2   :  { %15 = vsyncpa [#allocation7], 0 }
   0x3   :  { %16 = vsyncpa [#allocation5], 0 }
   0x4   :  { %18 = vsyncpa [#allocation5 + $0x1], 0  ;;  %s6075_s24 = smov 0   ;;  %s6077_s25 = smov 0  }
   0x5   :  { %s6079_s26 = smov 0   ;;  %s6081_s27 = smov 0  }
   0x6 LB: > { %s6096_s28 = sadd.s32 4294967295, %s6023_s27   ;;  %s4519_s29 = sadd.s32 4294967294, %s6023_s27   ;;  %s6023_s27 = sphi %s6081_s27, %s8414_s27   ;;  %s6019_s26 = sphi %s6079_s26, %s8413_s26   ;;  %s6015_s25 = sphi %s6077_s25, %s8412_s25   ;;  %s6011_s24 = sphi %s6075_s24, %s8411_s24  }
   0x7   : > { %p44_p0 = scmp.ne.s32.totalorder %s6015_s25, %s6011_s24  ;;  %p8325_p1 = scmp.eq.s32.totalorder %s6096_s28, 0 }
   0x8   : > { %p200_p3 = scmp.eq.s32.totalorder %s4519_s29, 1  ;;  %p4520_p5 = scmp.ge.s32.totalorder %s6023_s27, 1 }
   0x9   : > { %p6105_p4 = por %p8325_p1, %p44_p0  ;;  %p207_p7 = scmp.lt.s32.totalorder %s6023_s27, 3 }
   0xa   : > { %p6110_p6 = por %p200_p3, %p44_p0  ;;  %s6025_s10 = smov [#allocation6]  }
   0xb   : > { %s8359_s30 = scalar_select %p6105_p4, 1, 0 }
   0xc   : > { %s8360_s8 = scalar_select %p6110_p6, 1, 0 }
   0xd   : > { %p6115_p8 = pnand %p4520_p5, %p207_p7  ;;  %s219_s11 = sshll.u32 %s6025_s10, 4  ;;  %s6119_s11 = int_to_ptr.vmem [resolvable:$true] %s219_s11 }
   0xe   : > { %s6026_s13 = smov [#allocation8]   ;;  %s5867_s17 = scalar_lea.hbm %s8318_s1, 18432 }
   0xf   : > { %p5803_p9 = pneg %p6115_p8  ;;  %s232_s14 = sshll.u32 %s6026_s13, 4  ;;  %s6130_s14 = int_to_ptr.vmem [resolvable:$true] %s232_s14 }
  0x10   : > { %p5868_p12 = scmp.ne.s32.totalorder %s8318_s1, %s5867_s17  ;;  %p5874_p5 = scmp.lt.u32.totalorder %s5867_s17, %s8318_s1 }
  0x11   : > { %p6126_p11 = pnand %p5803_p9, %p8325_p1 }
  0x13   : > { %p5869_p13 = pneg %p6126_p11 }
  0x15   : > { %p5870_p0 = pnand %p5869_p13, %p5868_p12 }
  0x17   : > { %p5871_p3 = pneg %p5870_p0 }
  0x19   : > { %p5876_p7 = pnand %p5874_p5, %p5871_p3 }
  0x1b   : > { %5879 = shalt.err (!%p5876_p7)
}
  0x1c   : > { %s5880_s22 = scalar_lea.vmem %s6119_s11, 18432  ;;  %p5888_p2 = scmp.lt.s32.totalorder %s6119_s11, %s6119_s11 }
  0x1d   : > { %p5881_p9 = scmp.ne.s32.totalorder %s6119_s11, %s5880_s22  ;;  %p5889_p12 = scmp.lt.s32.totalorder %s5880_s22, %s5880_s22 }
  0x1f   : > { %p5883_p10 = pnand %p5881_p9, %p5869_p13  ;;  %p5890_p0 = por %p5889_p12, %p5888_p2 }
  0x21   : > { %p5884_p1 = pneg %p5883_p10 }
  0x23   : > { %p5891_p6 = pnand %p5890_p0, %p5884_p1 }
  0x25   : > { %5894 = shalt.err (!%p5891_p6)
}
  0x26   : > { %s8326_s23 = smov 128   ;;  %s6028_s29 = smov 8  }
  0x27   : > { %5806 = dma.hbm_to_vmem [thread:$0]  (!%p6126_p11), %s8318_s1, 18432, %s6119_s11, [#allocation7], %s8326_s23, %s8326_s23, %s6028_s29  }
  0x28   : > { %s5895_s17 = scalar_lea.hbm %s8319_s2, 18432 }
  0x29   : > { %p5896_p1 = scmp.ne.s32.totalorder %s8319_s2, %s5895_s17  ;;  %p5902_p10 = scmp.lt.u32.totalorder %s5895_s17, %s8319_s2 }
  0x2b   : > { %p5898_p2 = pnand %p5896_p1, %p5869_p13 }
  0x2d   : > { %p5899_p6 = pneg %p5898_p2 }
  0x2f   : > { %p5904_p3 = pnand %p5902_p10, %p5899_p6 }
  0x31   : > { %5907 = shalt.err (!%p5904_p3)
}
  0x32   : > { %s5908_s11 = scalar_lea.vmem %s6130_s14, 18432  ;;  %p5916_p12 = scmp.lt.s32.totalorder %s6130_s14, %s6130_s14 }
  0x33   : > { %p5909_p5 = scmp.ne.s32.totalorder %s6130_s14, %s5908_s11  ;;  %p5917_p0 = scmp.lt.s32.totalorder %s5908_s11, %s5908_s11 }
  0x35   : > { %p5911_p7 = pnand %p5909_p5, %p5869_p13  ;;  %p5918_p1 = por %p5917_p0, %p5916_p12 }
  0x37   : > { %p5912_p9 = pneg %p5911_p7 }
  0x39   : > { %p5919_p2 = pnand %p5918_p1, %p5912_p9 }
  0x3b   : > { %5922 = shalt.err (!%p5919_p2)
}
  0x3c   : > { %5809 = dma.hbm_to_vmem [thread:$0]  (!%p6126_p11), %s8319_s2, 18432, %s6130_s14, [#allocation7], %s8326_s23, %s8326_s23, %s6028_s29  }
  0x3d   : > { %s6191_s12 = sadd.s32 1, %s6023_s27   ;;  %s31_s13 = sadd.s32 1, %s6019_s26 }
  0x3e   : > { %s28_s15 = ssub.s32 %s6023_s27, %s6191_s12  ;;  %p38_p13 = scmp.ne.s32.totalorder %s6019_s26, %s6015_s25 }
  0x3f   : > { %p29_p6 = scmp.eq.s32.totalorder %s28_s15, 0  ;;  %p39_p10 = scmp.eq.s32.totalorder %s6023_s27, 0 }
  0x40   : > { %p8363_p3 = scmp.eq.s32.totalorder %s6096_s28, 1  ;;  %p5820_p7 = scmp.lt.s32.totalorder %s6023_s27, 2 }
  0x41   : > { %s6207_s17 = scalar_select %p29_p6, %s6019_s26, %s31_s13  }
  0x42   : > { %p6201_p5 = por %p8363_p3, %p38_p13  ;;  %p40_p9 = por %p39_p10, %p38_p13 }
  0x43   : > { %s258_s18 = sand.u32 1, %s6019_s26   ;;  %s4541_s14 = sshll.u32 %s6023_s27, 12 }
  0x44   : > { %s8364_s16 = scalar_select %p6201_p5, 1, 0 }
  0x45   : > { %s4524_s19 = sshll.u32 %s258_s18, 8  ;;  %s6214_s11 = scalar_lea.hbm %s8317_s0, %s4541_s14 }
  0x46   : > { %s262_s22 = scalar_lea.vmem [#allocation3], %s4524_s19  ;;  %p6218_p11 = pnand %p5820_p7, %p40_p9 }
  0x47   : > { %s269_s10 = sshll.u32 %s262_s22, 4  ;;  %s6222_s15 = scalar_lea.sflag [#allocation4], %s258_s18  ;;  %s6216_s10 = int_to_ptr.vmem [resolvable:$true] %s269_s10 }
  0x48   : > { %s5923_s23 = scalar_lea.hbm %s6214_s11, 4096  ;;  %p5925_p0 = pneg %p6218_p11 }
  0x49   : > { %p5924_p12 = scmp.ne.s32.totalorder %s6214_s11, %s5923_s23  ;;  %s5928_s20 = scalar_lea.hbm %s8317_s0, 8192 }
  0x4a   : > { %p5929_p13 = scmp.lt.u32.totalorder %s6214_s11, %s8317_s0  ;;  %p5930_p6 = scmp.lt.u32.totalorder %s5928_s20, %s5923_s23 }
  0x4b   : > { %p5926_p1 = pnand %p5925_p0, %p5924_p12  ;;  %p5932_p3 = scmp.lt.u32.totalorder %s5923_s23, %s6214_s11 }
  0x4c   : > { %p5931_p10 = por %p5930_p6, %p5929_p13 }
  0x4d   : > { %p5927_p2 = pneg %p5926_p1 }
  0x4e   : > { %p5933_p7 = por %p5932_p3, %p5931_p10 }
  0x50   : > { %p5934_p9 = pnand %p5933_p7, %p5927_p2 }
  0x52   : > { %5937 = shalt.err (!%p5934_p9)
}
  0x53   : > { %s5938_s18 = scalar_lea.vmem %s6216_s10, 4096  ;;  %s6029_s19 = smov [#allocation3]  }
  0x54   : > { %p5939_p12 = scmp.ne.s32.totalorder %s6216_s10, %s5938_s18  ;;  %s5943_s14 = sshll.u32 %s6029_s19, 4  ;;  %s5944_s14 = int_to_ptr.vmem [resolvable:$false] %s5943_s14 }
  0x55   : > { %s5945_s21 = scalar_lea.vmem %s5944_s14, 8192  ;;  %p5946_p4 = scmp.lt.s32.totalorder %s6216_s10, %s5944_s14 }
  0x56   : > { %p5941_p1 = pnand %p5939_p12, %p5925_p0  ;;  %p5947_p13 = scmp.lt.s32.totalorder %s5945_s21, %s5938_s18 }
  0x58   : > { %p5942_p5 = pneg %p5941_p1  ;;  %p5948_p6 = por %p5947_p13, %p5946_p4 }
  0x5a   : > { %p5949_p10 = pnand %p5948_p6, %p5942_p5 }
  0x5c   : > { %5952 = shalt.err (!%p5949_p10)
}
  0x5d   : > { %s8366_s23 = smov 128   ;;  %281 = sbr.rel (%p6115_p8) target bundleno = 1152 (0x480), region = 48 }
  0x5e   : > { %5813 = dma.hbm_to_vmem [thread:$0]  (!%p6218_p11), %s6214_s11, 4096, %s6216_s10, %s6222_s15, %s8366_s23, %s8366_s23, %s6028_s29  }
  0x64   : > { %s6256_s20 = sand.u32 1, %s6015_s25   ;;  %p8367_p4 = scmp.ne.s32.totalorder %s8359_s30, 0 }
  0x65   : > { %s4528_s22 = sshll.u32 %s6256_s20, 8  ;;  %s284_s18 = scalar_lea.sflag [#allocation4], %s6256_s20 }
  0x66   : > { %s6262_s13 = scalar_lea.vmem [#allocation3], %s4528_s22 }
  0x67   : > { %5998 = dma.done.wait (%p8367_p4), %s284_s18, 4096  }
  0x68   : > { %6000 = vsyncadd (%p8367_p4), %s284_s18, 4294963200  ;;  %p8368_p5 = scmp.eq.s32.totalorder %s6096_s28, 0 }
  0x6a   : > { %6002 = dma.done.wait (%p8368_p5), [#allocation7], 36864   ;;  %p8369_p8 = pmov %p8368_p5 }
  0x6b   : > { %v8340_v0 = vmov 0.0|0.0   ;;  %v6031_v1 = vmov 0.0   ;;  %v673_v2 = vld [vmem:[#allocation6 + $0x180] sm:$0xff]  ;;  %v674_v3 = vld [vmem:[#allocation6 + $0x188] sm:$0xff]  ;;  %v675_v7 = vld [vmem:[#allocation6 + $0x190] sm:$0xff]  ;;  %s8107_s21 = scalar_lea.vmem [#allocation9], %s4528_s22 }
  0x6c   : > { %6004 = vsyncadd (%p8369_p8), [#allocation7], 4294930432  ;;  %5311 = vmatprep.subr.bf16.mxu0 %v8340_v0  ;;  %352 = vst [vmem:[#allocation2 + $0x38] sm:$0x3] %v6031_v1  ;;  %v705_v4 = vld [vmem:[#allocation6 + $0x280] sm:$0xff]  ;;  %v5312_v5 = vpack.c.bf16 %v674_v3, %v673_v2  ;;  %v706_v6 = vld [vmem:[#allocation6 + $0x288] sm:$0xff] }
  0x6d   : > { %326 = vst [vmem:[#allocation2] sm:$0xff] %v6031_v1  ;;  %327 = vst [vmem:[#allocation2 + $0x8] sm:$0xff] %v6031_v1  ;;  %v676_v8 = vld [vmem:[#allocation6 + $0x198] sm:$0xff]  ;;  %v5359_v9 = vpack.c.bf16 %v706_v6, %v705_v4  ;;  %v707_v10 = vld [vmem:[#allocation6 + $0x290] sm:$0xff]  ;;  %s4542_s23 = sshll.u32 %s6096_s28, 12  ;;  %s4427_s22 = sshll.u32 %s8107_s21, 4  ;;  %s8272_s22 = int_to_ptr.vmem [resolvable:$true] %s4427_s22 }
  0x6e   : > { %328 = vst [vmem:[#allocation2 + $0x10] sm:$0xff] %v6031_v1  ;;  %329 = vst [vmem:[#allocation2 + $0x18] sm:$0xff] %v6031_v1  ;;  %v708_v11 = vld [vmem:[#allocation6 + $0x298] sm:$0xff]  ;;  %5313 = vmatpush1.bf16.msra.mxu0 %v5312_v5  ;;  %v5315_v12 = vpack.c.bf16 %v676_v8, %v675_v7  ;;  %v709_v14 = vld [vmem:[#allocation6 + $0x2a0] sm:$0xff]  ;;  %s8270_s9 = scalar_lea.hbm %s8324_s7, %s4542_s23  ;;  %s5953_s29 = scalar_lea.vmem %s8272_s22, 4096 }
  0x6f   : > { %331 = vst [vmem:[#allocation2 + $0x220] sm:$0xff] %v6031_v1  ;;  %332 = vst [vmem:[#allocation2 + $0x228] sm:$0xff] %v6031_v1  ;;  %v5363_v13 = vpack.c.bf16 %v708_v11, %v707_v10  ;;  %v710_v15 = vld [vmem:[#allocation6 + $0x2a8] sm:$0xff]  ;;  %5360 = vmatprep.subr.bf16.mxu1 %v5359_v9  ;;  %5314 = vmatprep.subr.bf16.mxu0 %v8340_v0  ;;  %v677_v16 = vld [vmem:[#allocation6 + $0x1a0] sm:$0xff]  ;;  %p5954_p11 = scmp.ne.s32.totalorder %s8272_s22, %s5953_s29  ;;  %p8408_p0 = scmp.ne.s32.totalorder %s8364_s16, 0 }
  0x70   : > { %333 = vst [vmem:[#allocation2 + $0x230] sm:$0xff] %v6031_v1  ;;  %334 = vst [vmem:[#allocation2 + $0x238] sm:$0xff] %v6031_v1  ;;  %v678_v17 = vld [vmem:[#allocation6 + $0x1a8] sm:$0xff]  ;;  %5362 = vmatpush3.bf16.msra.mxu1 %v5359_v9  ;;  %v5367_v18 = vpack.c.bf16 %v710_v15, %v709_v14  ;;  %v711_v20 = vld [vmem:[#allocation6 + $0x2b0] sm:$0xff]  ;;  %s6032_s28 = smov [#allocation9]  }
  0x71   : > { %336 = vst [vmem:[#allocation2 + $0x26] sm:$0x3] %v6031_v1  ;;  %337 = vst [vmem:[#allocation2 + $0x46] sm:$0x3] %v6031_v1  ;;  %5364 = vmatprep.subr.bf16.mxu1 %v5363_v13  ;;  %v5318_v19 = vpack.c.bf16 %v678_v17, %v677_v16  ;;  %v712_v21 = vld [vmem:[#allocation6 + $0x2b8] sm:$0xff]  ;;  %v679_v22 = vld [vmem:[#allocation6 + $0x1b0] sm:$0xff]  ;;  %p5955_p2 = pnand %p5954_p11, %p8408_p0 }
  0x72   : > { %338 = vst [vmem:[#allocation2 + $0x66] sm:$0x3] %v6031_v1  ;;  %339 = vst [vmem:[#allocation2 + $0x86] sm:$0x3] %v6031_v1  ;;  %5316 = vmatpush1.bf16.msra.mxu0 %v5315_v12  ;;  %v680_v23 = vld [vmem:[#allocation6 + $0x1b8] sm:$0xff]  ;;  %v5371_v24 = vpack.c.bf16 %v712_v21, %v711_v20  ;;  %v6316_v25 = vld [vmem:[%s6262_s13] sm:$0xff] }
  0x73   : > { %340 = vst [vmem:[#allocation2 + $0xa6] sm:$0x3] %v6031_v1  ;;  %341 = vst [vmem:[#allocation2 + $0xc6] sm:$0x3] %v6031_v1  ;;  %5317 = vmatprep.subr.bf16.mxu0 %v8340_v0  ;;  %v5321_v26 = vpack.c.bf16 %v680_v23, %v679_v22  ;;  %v713_v27 = vld [vmem:[#allocation6 + $0x2c0] sm:$0xff]  ;;  %v714_v28 = vld [vmem:[#allocation6 + $0x2c8] sm:$0xff]  ;;  %785 = vmatprep.mubr.f32.mxu0 %v6316_v25  ;;  %p5956_p3 = pneg %p5955_p2 }
  0x74   : > { %342 = vst [vmem:[#allocation2 + $0xe6] sm:$0x3] %v6031_v1  ;;  %343 = vst [vmem:[#allocation2 + $0x106] sm:$0x3] %v6031_v1  ;;  %5366 = vmatpush3.bf16.msra.mxu1 %v5363_v13  ;;  %v6319_v29 = vld [vmem:[%s6262_s13 + $0x8] sm:$0xff]  ;;  %v681_v30 = vld [vmem:[#allocation6 + $0x1c0] sm:$0xff]  ;;  %v5375_v34 = vpack.c.bf16 %v714_v28, %v713_v27 }
  0x75   : > { %344 = vst [vmem:[#allocation2 + $0x126] sm:$0x3] %v6031_v1  ;;  %345 = vst [vmem:[#allocation2 + $0x146] sm:$0x3] %v6031_v1  ;;  %5368 = vmatprep.subr.bf16.mxu1 %v5367_v18  ;;  %v682_v31 = vld [vmem:[#allocation6 + $0x1c8] sm:$0xff]  ;;  %v6326_v32 = vld [vmem:[%s6262_s13 + $0x10] sm:$0xff] }
  0x76   : > { %346 = vst [vmem:[#allocation2 + $0x166] sm:$0x3] %v6031_v1  ;;  %347 = vst [vmem:[#allocation2 + $0x186] sm:$0x3] %v6031_v1  ;;  %5319 = vmatpush1.bf16.msra.mxu0 %v5318_v19  ;;  %v6329_v33 = vld [vmem:[%s6262_s13 + $0x18] sm:$0xff]  ;;  %v6334_v35 = vld [vmem:[%s6262_s13 + $0x20] sm:$0xff]  ;;  %v5324_v36 = vpack.c.bf16 %v682_v31, %v681_v30 }
  0x77   : > { %348 = vst [vmem:[#allocation2 + $0x1a6] sm:$0x3] %v6031_v1  ;;  %349 = vst [vmem:[#allocation2 + $0x1c6] sm:$0x3] %v6031_v1  ;;  %5320 = vmatprep.subr.bf16.mxu0 %v8340_v0  ;;  %v715_v37 = vld [vmem:[#allocation6 + $0x2d0] sm:$0xff]  ;;  %v716_v38 = vld [vmem:[#allocation6 + $0x2d8] sm:$0xff] }
  0x78   : > { %350 = vst [vmem:[#allocation2 + $0x1e6] sm:$0x3] %v6031_v1  ;;  %351 = vst [vmem:[#allocation2 + $0x206] sm:$0x3] %v6031_v1  ;;  %5370 = vmatpush3.bf16.msra.mxu1 %v5367_v18  ;;  %v6337_v39 = vld [vmem:[%s6262_s13 + $0x28] sm:$0xff]  ;;  %v683_v40 = vld [vmem:[#allocation6 + $0x1d0] sm:$0xff]  ;;  %v5379_v44 = vpack.c.bf16 %v716_v38, %v715_v37 }
  0x79   : > { %353 = vst [vmem:[#allocation2 + $0x58] sm:$0x3] %v6031_v1  ;;  %354 = vst [vmem:[#allocation2 + $0x78] sm:$0x3] %v6031_v1  ;;  %5372 = vmatprep.subr.bf16.mxu1 %v5371_v24  ;;  %v684_v41 = vld [vmem:[#allocation6 + $0x1d8] sm:$0xff]  ;;  %v6343_v42 = vld [vmem:[%s6262_s13 + $0x30] sm:$0xff] }
  0x7a   : > { %355 = vst [vmem:[#allocation2 + $0x98] sm:$0x3] %v6031_v1  ;;  %356 = vst [vmem:[#allocation2 + $0xb8] sm:$0x3] %v6031_v1  ;;  %5322 = vmatpush1.bf16.msra.mxu0 %v5321_v26  ;;  %v6346_v43 = vld [vmem:[%s6262_s13 + $0x38] sm:$0xff]  ;;  %v717_v45 = vld [vmem:[#allocation6 + $0x2e0] sm:$0xff]  ;;  %v5327_v47 = vpack.c.bf16 %v684_v41, %v683_v40 }
  0x7b   : > { %357 = vst [vmem:[#allocation2 + $0xd8] sm:$0x3] %v6031_v1  ;;  %358 = vst [vmem:[#allocation2 + $0xf8] sm:$0x3] %v6031_v1  ;;  %5323 = vmatprep.subr.bf16.mxu0 %v8340_v0  ;;  %v6351_v46 = vld [vmem:[%s6262_s13 + $0x40] sm:$0xff]  ;;  %v718_v48 = vld [vmem:[#allocation6 + $0x2e8] sm:$0xff] }
  0x7c   : > { %359 = vst [vmem:[#allocation2 + $0x118] sm:$0x3] %v6031_v1  ;;  %360 = vst [vmem:[#allocation2 + $0x138] sm:$0x3] %v6031_v1  ;;  %5374 = vmatpush3.bf16.msra.mxu1 %v5371_v24  ;;  %v6354_v50 = vld [vmem:[%s6262_s13 + $0x48] sm:$0xff]  ;;  %v685_v51 = vld [vmem:[#allocation6 + $0x1e0] sm:$0xff]  ;;  %v5383_v53 = vpack.c.bf16 %v718_v48, %v717_v45 }
  0x7d   : > { %361 = vst [vmem:[#allocation2 + $0x158] sm:$0x3] %v6031_v1  ;;  %362 = vst [vmem:[#allocation2 + $0x178] sm:$0x3] %v6031_v1  ;;  %5376 = vmatprep.subr.bf16.mxu1 %v5375_v34  ;;  %v686_v52 = vld [vmem:[#allocation6 + $0x1e8] sm:$0xff]  ;;  %v6360_v54 = vld [vmem:[%s6262_s13 + $0x50] sm:$0xff] }
  0x7e   : > { %363 = vst [vmem:[#allocation2 + $0x198] sm:$0x3] %v6031_v1  ;;  %364 = vst [vmem:[#allocation2 + $0x1b8] sm:$0x3] %v6031_v1  ;;  %5325 = vmatpush1.bf16.msra.mxu0 %v5324_v36  ;;  %v6363_v55 = vld [vmem:[%s6262_s13 + $0x58] sm:$0xff]  ;;  %v5330_v56 = vpack.c.bf16 %v686_v52, %v685_v51  ;;  %v719_v57 = vld [vmem:[#allocation6 + $0x2f0] sm:$0xff] }
  0x7f   : > { %365 = vst [vmem:[#allocation2 + $0x1d8] sm:$0x3] %v6031_v1  ;;  %366 = vst [vmem:[#allocation2 + $0x1f8] sm:$0x3] %v6031_v1  ;;  %5326 = vmatprep.subr.bf16.mxu0 %v8340_v0  ;;  %v720_v58 = vld [vmem:[#allocation6 + $0x2f8] sm:$0xff]  ;;  %v687_v59 = vld [vmem:[#allocation6 + $0x1f0] sm:$0xff] }
  0x80   : > { %367 = vst [vmem:[#allocation2 + $0x218] sm:$0x3] %v6031_v1  ;;  %400 = vst [vmem:[#allocation2 + $0x28] sm:$0xff] %v6316_v25  ;;  %5378 = vmatpush3.bf16.msra.mxu1 %v5375_v34  ;;  %v688_v60 = vld [vmem:[#allocation6 + $0x1f8] sm:$0xff]  ;;  %v6369_v61 = vld [vmem:[%s6262_s13 + $0x60] sm:$0xff]  ;;  %v5387_v63 = vpack.c.bf16 %v720_v58, %v719_v57  ;;  %s5957_s11 = sshll.u32 %s6032_s28, 4  ;;  %s5958_s11 = int_to_ptr.vmem [resolvable:$false] %s5957_s11 }
  0x81   : > { %401 = vst [vmem:[#allocation2 + $0x30] sm:$0xff] %v6319_v29  ;;  %402 = vst [vmem:[#allocation2 + $0x48] sm:$0xff] %v6326_v32  ;;  %5380 = vmatprep.subr.bf16.mxu1 %v5379_v44  ;;  %v6372_v62 = vld [vmem:[%s6262_s13 + $0x68] sm:$0xff]  ;;  %v5333_v2 = vpack.c.bf16 %v688_v60, %v687_v59  ;;  %v689_v3 = vld [vmem:[#allocation6 + $0x200] sm:$0xff]  ;;  %s5959_s10 = scalar_lea.vmem %s5958_s11, 8192  ;;  %p5960_p7 = scmp.lt.s32.totalorder %s8272_s22, %s5958_s11 }
  0x82   : > { %403 = vst [vmem:[#allocation2 + $0x50] sm:$0xff] %v6329_v33  ;;  %404 = vst [vmem:[#allocation2 + $0x68] sm:$0xff] %v6334_v35  ;;  %5328 = vmatpush1.bf16.msra.mxu0 %v5327_v47  ;;  %v690_v4 = vld [vmem:[#allocation6 + $0x208] sm:$0xff]  ;;  %v6378_v5 = vld [vmem:[%s6262_s13 + $0x70] sm:$0xff]  ;;  %p5961_p9 = scmp.lt.s32.totalorder %s5959_s10, %s5953_s29 }
  0x83   : > { %405 = vst [vmem:[#allocation2 + $0x70] sm:$0xff] %v6337_v39  ;;  %406 = vst [vmem:[#allocation2 + $0x88] sm:$0xff] %v6343_v42  ;;  %5329 = vmatprep.subr.bf16.mxu0 %v8340_v0  ;;  %v6381_v6 = vld [vmem:[%s6262_s13 + $0x78] sm:$0xff]  ;;  %v528_v7 = vld [vmem:[#allocation6] sm:$0xff]  ;;  %v5336_v9 = vpack.c.bf16 %v690_v4, %v689_v3 }
  0x84   : > { %407 = vst [vmem:[#allocation2 + $0x90] sm:$0xff] %v6346_v43  ;;  %408 = vst [vmem:[#allocation2 + $0xa8] sm:$0xff] %v6351_v46  ;;  %5382 = vmatpush3.bf16.msra.mxu1 %v5379_v44  ;;  %v529_v8 = vld [vmem:[#allocation6 + $0x8] sm:$0xff]  ;;  %v6386_v10 = vld [vmem:[%s6262_s13 + $0x80] sm:$0xff]  ;;  %p5962_p12 = por %p5961_p9, %p5960_p7 }
  0x85   : > { %409 = vst [vmem:[#allocation2 + $0xb0] sm:$0xff] %v6354_v50  ;;  %410 = vst [vmem:[#allocation2 + $0xc8] sm:$0xff] %v6360_v54  ;;  %5384 = vmatprep.subr.bf16.mxu1 %v5383_v53  ;;  %v6389_v11 = vld [vmem:[%s6262_s13 + $0x88] sm:$0xff]  ;;  %v691_v12 = vld [vmem:[#allocation6 + $0x210] sm:$0xff]  ;;  %v5392_v15 = vpack.c.bf16 %v529_v8, %v528_v7 }
  0x86   : > { %411 = vst [vmem:[#allocation2 + $0xd0] sm:$0xff] %v6363_v55  ;;  %412 = vst [vmem:[#allocation2 + $0xe8] sm:$0xff] %v6369_v61  ;;  %5331 = vmatpush1.bf16.msra.mxu0 %v5330_v56  ;;  %v692_v13 = vld [vmem:[#allocation6 + $0x218] sm:$0xff]  ;;  %v530_v16 = vld [vmem:[#allocation6 + $0x10] sm:$0xff]  ;;  %p5963_p1 = pnand %p5962_p12, %p5956_p3 }
  0x87   : > { %413 = vst [vmem:[#allocation2 + $0xf0] sm:$0xff] %v6372_v62  ;;  %5332 = vmatprep.subr.bf16.mxu0 %v8340_v0  ;;  %414 = vst [vmem:[#allocation2 + $0x108] sm:$0xff] %v6378_v5  ;;  %v531_v17 = vld [vmem:[#allocation6 + $0x18] sm:$0xff]  ;;  %v6396_v19 = vld [vmem:[%s6262_s13 + $0x90] sm:$0xff]  ;;  %v5339_v21 = vpack.c.bf16 %v692_v13, %v691_v12 }
  0x88   : > { %v640_v49 = vld [vmem:[#allocation2 + $0x29] sm:$0xff]  ;;  %5386 = vmatpush3.bf16.msra.mxu1 %v5383_v53  ;;  %415 = vst [vmem:[#allocation2 + $0x110] sm:$0xff] %v6381_v6  ;;  %416 = vst [vmem:[#allocation2 + $0x128] sm:$0xff] %v6386_v10  ;;  %v641_v14 = vld [vmem:[#allocation2 + $0x31] sm:$0xff]  ;;  %v5395_v28 = vpack.c.bf16 %v531_v17, %v530_v16 }
  0x89   : > { %4863 = vmatprep.mubr.f32.mxu1 %v640_v49  ;;  %5388 = vmatprep.subr.bf16.mxu1 %v5387_v63  ;;  %417 = vst [vmem:[#allocation2 + $0x130] sm:$0xff] %v6389_v11  ;;  %v642_v18 = vld [vmem:[#allocation2 + $0x49] sm:$0xff]  ;;  %v6399_v20 = vld [vmem:[%s6262_s13 + $0x98] sm:$0xff]  ;;  %418 = vst [vmem:[#allocation2 + $0x148] sm:$0xff] %v6396_v19 }
  0x8a   : > { %5334 = vmatpush1.bf16.msra.mxu0 %v5333_v2  ;;  %419 = vst [vmem:[#allocation2 + $0x150] sm:$0xff] %v6399_v20  ;;  %v6404_v22 = vld [vmem:[%s6262_s13 + $0xa0] sm:$0xff]  ;;  %v694_v24 = vld [vmem:[#allocation6 + $0x228] sm:$0xff]  ;;  %v643_v27 = vld [vmem:[#allocation2 + $0x51] sm:$0xff] }
  0x8b   : > { %5335 = vmatprep.subr.bf16.mxu0 %v8340_v0  ;;  %v693_v23 = vld [vmem:[#allocation6 + $0x220] sm:$0xff]  ;;  %v6408_v26 = vld [vmem:[%s6262_s13 + $0xa8] sm:$0xff]  ;;  %420 = vst [vmem:[#allocation2 + $0x168] sm:$0xff] %v6404_v22  ;;  %v6414_v36 = vld [vmem:[%s6262_s13 + $0xb0] sm:$0xff] }
  0x8c   : > { %5390 = vmatpush3.bf16.msra.mxu1 %v5387_v63  ;;  %v532_v30 = vld [vmem:[#allocation6 + $0x20] sm:$0xff]  ;;  %v533_v31 = vld [vmem:[#allocation6 + $0x28] sm:$0xff]  ;;  %421 = vst [vmem:[#allocation2 + $0x170] sm:$0xff] %v6408_v26  ;;  %v6417_v37 = vld [vmem:[%s6262_s13 + $0xb8] sm:$0xff]  ;;  %v5342_v38 = vpack.c.bf16 %v694_v24, %v693_v23 }
  0x8d   : > { %5391 = vmatprep.subr.bf16.mxu1 %v8340_v0  ;;  %v644_v34 = vld [vmem:[#allocation2 + $0x69] sm:$0xff]  ;;  %422 = vst [vmem:[#allocation2 + $0x188] sm:$0xff] %v6414_v36  ;;  %423 = vst [vmem:[#allocation2 + $0x190] sm:$0xff] %v6417_v37  ;;  %v696_v41 = vld [vmem:[#allocation6 + $0x238] sm:$0xff]  ;;  %v5398_v48 = vpack.c.bf16 %v533_v31, %v532_v30 }
  0x8e   : > { %5337 = vmatpush1.bf16.msra.mxu0 %v5336_v9  ;;  %v695_v40 = vld [vmem:[#allocation6 + $0x230] sm:$0xff]  ;;  %v6423_v44 = vld [vmem:[%s6262_s13 + $0xc0] sm:$0xff]  ;;  %v6426_v45 = vld [vmem:[%s6262_s13 + $0xc8] sm:$0xff] }
  0x8f   : > { %4864 = vmatmul.mubr.f32.vlgmr.msra.gmra.mrb[0].mxu1 %v641_v14  ;;  %5338 = vmatprep.subr.bf16.mxu0 %v8340_v0  ;;  %v645_v47 = vld [vmem:[#allocation2 + $0x71] sm:$0xff]  ;;  %424 = vst [vmem:[#allocation2 + $0x1a8] sm:$0xff] %v6423_v44  ;;  %425 = vst [vmem:[#allocation2 + $0x1b0] sm:$0xff] %v6426_v45  ;;  %v646_v49 = vld [vmem:[#allocation2 + $0x89] sm:$0xff]  ;;  %v5345_v53 = vpack.c.bf16 %v696_v41, %v695_v40 }
  0x90   : > { %5393 = vmatpush1.bf16.msra.mxu1 %v5392_v15  ;;  %4866 = vmatprep.mubr.f32.mxu1 %v642_v18  ;;  %v534_v51 = vld [vmem:[#allocation6 + $0x30] sm:$0xff]  ;;  %v535_v52 = vld [vmem:[#allocation6 + $0x38] sm:$0xff]  ;;  %v697_v58 = vld [vmem:[#allocation6 + $0x240] sm:$0xff] }
  0x91   : > { %5394 = vmatprep.subr.bf16.mxu1 %v8340_v0  ;;  %v6432_v56 = vld [vmem:[%s6262_s13 + $0xd0] sm:$0xff]  ;;  %v6435_v57 = vld [vmem:[%s6262_s13 + $0xd8] sm:$0xff]  ;;  %v698_v59 = vld [vmem:[#allocation6 + $0x248] sm:$0xff]  ;;  %v5401_v63 = vpack.c.bf16 %v535_v52, %v534_v51 }
  0x92   : > { %5340 = vmatpush1.bf16.msra.mxu0 %v5339_v21  ;;  %426 = vst [vmem:[#allocation2 + $0x1c8] sm:$0xff] %v6432_v56  ;;  %427 = vst [vmem:[#allocation2 + $0x1d0] sm:$0xff] %v6435_v57  ;;  %v647_v60 = vld [vmem:[#allocation2 + $0x91] sm:$0xff]  ;;  %v536_v2 = vld [vmem:[#allocation6 + $0x40] sm:$0xff]  ;;  %v5348_v9 = vpack.c.bf16 %v698_v59, %v697_v58 }
  0x93   : > { %4867 = vmatmul.mubr.f32.gmra.mrb[2].mxu1 %v643_v27  ;;  %5341 = vmatprep.subr.bf16.mxu0 %v8340_v0  ;;  %v6441_v3 = vld [vmem:[%s6262_s13 + $0xe0] sm:$0xff]  ;;  %v648_v4 = vld [vmem:[#allocation2 + $0xa9] sm:$0xff]  ;;  %v700_v13 = vld [vmem:[#allocation6 + $0x258] sm:$0xff] }
  0x94   : > { %5396 = vmatpush1.bf16.msra.mxu1 %v5395_v28  ;;  %4869 = vmatprep.mubr.f32.mxu1 %v644_v34  ;;  %v537_v7 = vld [vmem:[#allocation6 + $0x48] sm:$0xff]  ;;  %428 = vst [vmem:[#allocation2 + $0x1e8] sm:$0xff] %v6441_v3  ;;  %v699_v12 = vld [vmem:[#allocation6 + $0x250] sm:$0xff]  ;;  %v6454_v17 = vld [vmem:[%s6262_s13 + $0xf8] sm:$0xff] }
  0x95   : > { %5397 = vmatprep.subr.bf16.mxu1 %v8340_v0  ;;  %v6445_v8 = vld [vmem:[%s6262_s13 + $0xe8] sm:$0xff]  ;;  %v6451_v14 = vld [vmem:[%s6262_s13 + $0xf0] sm:$0xff]  ;;  %v5404_v16 = vpack.c.bf16 %v537_v7, %v536_v2  ;;  %v539_v23 = vld [vmem:[#allocation6 + $0x58] sm:$0xff]  ;;  %431 = vst [vmem:[#allocation2 + $0x210] sm:$0xff] %v6454_v17  ;;  %v5351_v24 = vpack.c.bf16 %v700_v13, %v699_v12 }
  0x96   : > { %5343 = vmatpush1.bf16.msra.mxu0 %v5342_v38  ;;  %429 = vst [vmem:[#allocation2 + $0x1f0] sm:$0xff] %v6445_v8  ;;  %v649_v15 = vld [vmem:[#allocation2 + $0xb1] sm:$0xff]  ;;  %430 = vst [vmem:[#allocation2 + $0x208] sm:$0xff] %v6451_v14  ;;  %v650_v18 = vld [vmem:[#allocation2 + $0xc9] sm:$0xff] }
  0x97   : > { %4870 = vmatmul.mubr.f32.gmra.mrb[4].mxu1 %v645_v47  ;;  %5344 = vmatprep.subr.bf16.mxu0 %v8340_v0  ;;  %v538_v21 = vld [vmem:[#allocation6 + $0x50] sm:$0xff]  ;;  %v701_v27 = vld [vmem:[#allocation6 + $0x260] sm:$0xff]  ;;  %v702_v28 = vld [vmem:[#allocation6 + $0x268] sm:$0xff] }
  0x98   : > { %5399 = vmatpush1.bf16.msra.mxu1 %v5398_v48  ;;  %4872 = vmatprep.mubr.f32.mxu1 %v646_v49  ;;  %v651_v30 = vld [vmem:[#allocation2 + $0xd1] sm:$0xff]  ;;  %v5407_v31 = vpack.c.bf16 %v539_v23, %v538_v21  ;;  %v652_v34 = vld [vmem:[#allocation2 + $0xe9] sm:$0xff]  ;;  %v540_v38 = vld [vmem:[#allocation6 + $0x60] sm:$0xff]  ;;  %v5354_v41 = vpack.c.bf16 %v702_v28, %v701_v27 }
  0x99   : > { %5400 = vmatprep.subr.bf16.mxu1 %v8340_v0  ;;  %v541_v40 = vld [vmem:[#allocation6 + $0x68] sm:$0xff]  ;;  %v703_v47 = vld [vmem:[#allocation6 + $0x270] sm:$0xff]  ;;  %v704_v48 = vld [vmem:[#allocation6 + $0x278] sm:$0xff] }
  0x9a   : > { %5346 = vmatpush1.bf16.msra.mxu0 %v5345_v53  ;;  %v653_v49 = vld [vmem:[#allocation2 + $0xf1] sm:$0xff]  ;;  %v5410_v51 = vpack.c.bf16 %v541_v40, %v540_v38  ;;  %v560_v52 = vld [vmem:[#allocation6 + $0x100] sm:$0xff]  ;;  %v561_v53 = vld [vmem:[#allocation6 + $0x108] sm:$0xff] }
  0x9b   : > { %4873 = vmatmul.mubr.f32.gmra.mrb[6].mxu1 %v647_v60  ;;  %5347 = vmatprep.subr.bf16.mxu0 %v8340_v0  ;;  %v654_v58 = vld [vmem:[#allocation2 + $0x109] sm:$0xff]  ;;  %v543_v60 = vld [vmem:[#allocation6 + $0x78] sm:$0xff]  ;;  %v5439_v2 = vpack.c.bf16 %v561_v53, %v560_v52  ;;  %v564_v27 = vld [vmem:[#allocation6 + $0x120] sm:$0xff] }
  0x9c   : > { %5402 = vmatpush1.bf16.msra.mxu1 %v5401_v63  ;;  %4875 = vmatprep.mubr.f32.mxu1 %v648_v4  ;;  %v542_v59 = vld [vmem:[#allocation6 + $0x70] sm:$0xff]  ;;  %v5357_v63 = vpack.c.bf16 %v704_v48, %v703_v47  ;;  %v563_v12 = vld [vmem:[#allocation6 + $0x118] sm:$0xff]  ;;  %v565_v28 = vld [vmem:[#allocation6 + $0x128] sm:$0xff] }
  0x9d   : > { %5403 = vmatprep.subr.bf16.mxu1 %v8340_v0  ;;  %v655_v4 = vld [vmem:[#allocation2 + $0x111] sm:$0xff]  ;;  %v5413_v7 = vpack.c.bf16 %v543_v60, %v542_v59  ;;  %v656_v13 = vld [vmem:[#allocation2 + $0x129] sm:$0xff]  ;;  %v5447_v40 = vpack.c.bf16 %v565_v28, %v564_v27  ;;  %v548_v52 = vld [vmem:[#allocation6 + $0xa0] sm:$0xff] }
  0x9e   : > { %5349 = vmatpush1.bf16.msra.mxu0 %v5348_v9  ;;  %v562_v9 = vld [vmem:[#allocation6 + $0x110] sm:$0xff]  ;;  %v549_v53 = vld [vmem:[#allocation6 + $0xa8] sm:$0xff]  ;;  %v552_v28 = vld [vmem:[#allocation6 + $0xc0] sm:$0xff] }
  0x9f   : > { %4876 = vmatmul.mubr.f32.gmra.mrb[8].mxu1 %v649_v15  ;;  %5350 = vmatprep.subr.bf16.mxu0 %v8340_v0  ;;  %v544_v15 = vld [vmem:[#allocation6 + $0x80] sm:$0xff]  ;;  %v5443_v21 = vpack.c.bf16 %v563_v12, %v562_v9  ;;  %v657_v23 = vld [vmem:[#allocation2 + $0x131] sm:$0xff]  ;;  %v6489_v27 = vld [vmem:[#allocation2 + $0x1a9] sm:$0xff] }
  0xa0   : > { %5405 = vmatpush1.bf16.msra.mxu1 %v5404_v16  ;;  %4878 = vmatprep.mubr.f32.mxu1 %v650_v18  ;;  %v545_v16 = vld [vmem:[#allocation6 + $0x88] sm:$0xff]  ;;  %v566_v48 = vld [vmem:[#allocation6 + $0x130] sm:$0xff]  ;;  %v551_v12 = vld [vmem:[#allocation6 + $0xb8] sm:$0xff] }
  0xa1   : > { %5406 = vmatprep.subr.bf16.mxu1 %v8340_v0  ;;  %v6465_v18 = vld [vmem:[#allocation2 + $0x27] sm:$0xff]  ;;  %v6470_v38 = vld [vmem:[#allocation2 + $0x2f] sm:$0xff] }
  0xa2   : > { %5352 = vmatpush1.bf16.msra.mxu0 %v5351_v24  ;;  %v5416_v24 = vpack.c.bf16 %v545_v16, %v544_v15  ;;  %v661_v60 = vld [vmem:[#allocation2 + $0x171] sm:$0xff] }
  0xa3   : > { %4879 = vmatmul.mubr.f32.gmra.mrb[10].mxu1 %v651_v30  ;;  %5353 = vmatprep.subr.bf16.mxu0 %v8340_v0  ;;  %v658_v30 = vld [vmem:[#allocation2 + $0x149] sm:$0xff]  ;;  %v6485_v16 = vld [vmem:[#allocation2 + $0x191] sm:$0xff] }
  0xa4   : > { %5408 = vmatpush1.bf16.msra.mxu1 %v5407_v31  ;;  %4881 = vmatprep.mubr.f32.mxu1 %v652_v34  ;;  %v546_v31 = vld [vmem:[#allocation6 + $0x90] sm:$0xff]  ;;  %v547_v34 = vld [vmem:[#allocation6 + $0x98] sm:$0xff] }
  0xa5   : > { %5409 = vmatprep.subr.bf16.mxu1 %v8340_v0  ;;  %v5419_v47 = vpack.c.bf16 %v547_v34, %v546_v31  ;;  %v550_v9 = vld [vmem:[#allocation6 + $0xb0] sm:$0xff]  ;;  %v6492_v31 = vld [vmem:[#allocation2 + $0x67] sm:$0xff] }
  0xa6   : > { %5355 = vmatpush1.bf16.msra.mxu0 %v5354_v41  ;;  %v659_v41 = vld [vmem:[#allocation2 + $0x151] sm:$0xff] }
  0xa7   : > { %4882 = vmatmul.mubr.f32.gmra.mrb[12].mxu1 %v653_v49  ;;  %5356 = vmatprep.subr.bf16.mxu0 %v8340_v0  ;;  %v567_v49 = vld [vmem:[#allocation6 + $0x138] sm:$0xff] }
  0xa8   : > { %5411 = vmatpush1.bf16.msra.mxu1 %v5410_v51  ;;  %4884 = vmatprep.mubr.f32.mxu1 %v654_v58  ;;  %v660_v51 = vld [vmem:[#allocation2 + $0x169] sm:$0xff]  ;;  %v5451_v59 = vpack.c.bf16 %v567_v49, %v566_v48 }
  0xa9   : > { %5412 = vmatprep.subr.bf16.mxu1 %v8340_v0  ;;  %v6475_v58 = vld [vmem:[#allocation2 + $0x47] sm:$0xff] }
  0xaa   : > { %5358 = vmatpush1.bf16.msra.mxu0 %v5357_v63  ;;  %v5422_v63 = vpack.c.bf16 %v549_v53, %v548_v52  ;;  %v573_v48 = vld [vmem:[#allocation6 + $0x168] sm:$0xff]  ;;  %v555_v52 = vld [vmem:[#allocation6 + $0xd8] sm:$0xff] }
  0xab   : > { %4885 = vmatmul.mubr.f32.gmra.mrb[14].mxu1 %v655_v4  ;;  %5440 = vmatprep.subr.bf16.mxu0 %v5439_v2  ;;  %v569_v4 = vld [vmem:[#allocation6 + $0x148] sm:$0xff] }
  0xac   : > { %5414 = vmatpush1.bf16.msra.mxu1 %v5413_v7  ;;  %4887 = vmatprep.mubr.f32.mxu1 %v656_v13  ;;  %v6479_v7 = vld [vmem:[#allocation2 + $0x189] sm:$0xff] }
  0xad   : > { %786 = vmatmul.mubr.f32.vlgmr.msra.gmra.mrb[0].mxu0 %v6465_v18  ;;  %5415 = vmatprep.subr.bf16.mxu1 %v8340_v0  ;;  %v6482_v13 = vld [vmem:[#allocation2 + $0x4f] sm:$0xff] }
  0xae   : > { %5442 = vmatpush3.bf16.msra.mxu0 %v5439_v2  ;;  %790 = vmatprep.mubr.f32.mxu0 %v6319_v29  ;;  %v568_v2 = vld [vmem:[#allocation6 + $0x140] sm:$0xff]  ;;  %v6500_v49 = vld [vmem:[#allocation2 + $0x1c9] sm:$0xff] }
  0xaf   : > { %4888 = vmatmul.mubr.f32.gmra.mrb[16].mxu1 %v657_v23  ;;  %5444 = vmatprep.subr.bf16.mxu0 %v5443_v21  ;;  %v5455_v15 = vpack.c.bf16 %v569_v4, %v568_v2  ;;  %v570_v23 = vld [vmem:[#allocation6 + $0x150] sm:$0xff]  ;;  %v575_v4 = vld [vmem:[#allocation6 + $0x178] sm:$0xff] }
  0xb0   : > { %5417 = vmatpush1.bf16.msra.mxu1 %v5416_v24  ;;  %4890 = vmatprep.mubr.f32.mxu1 %v658_v30  ;;  %v571_v24 = vld [vmem:[#allocation6 + $0x158] sm:$0xff]  ;;  %v553_v30 = vld [vmem:[#allocation6 + $0xc8] sm:$0xff]  ;;  %v574_v2 = vld [vmem:[#allocation6 + $0x170] sm:$0xff] }
  0xb1   : > { %791 = vmatmul.mubr.f32.gmra.mrb[2].mxu0 %v6470_v38  ;;  %5418 = vmatprep.subr.bf16.mxu1 %v8340_v0  ;;  %v5459_v34 = vpack.c.bf16 %v571_v24, %v570_v23  ;;  %v6503_v53 = vld [vmem:[#allocation2 + $0x6f] sm:$0xff]  ;;  %v5467_v23 = vpack.c.bf16 %v575_v4, %v574_v2  ;;  %v1719_v4 = vld [vmem:[#allocation6 + $0x300] sm:$0xff] }
  0xb2   : > { %795 = vmatprep.mubr.f32.mxu0 %v6326_v32  ;;  %5446 = vmatpush3.bf16.msra.mxu0 %v5443_v21  ;;  %v5425_v21 = vpack.c.bf16 %v551_v12, %v550_v9  ;;  %v6511_v9 = vld [vmem:[#allocation2 + $0x1e9] sm:$0xff]  ;;  %v556_v12 = vld [vmem:[#allocation6 + $0xe0] sm:$0xff]  ;;  %v6518_v24 = vld [vmem:[#allocation2 + $0x1f1] sm:$0xff] }
  0xb3   : > { %4891 = vmatmul.mubr.f32.gmra.mrb[18].mxu1 %v659_v41  ;;  %5448 = vmatprep.subr.bf16.mxu0 %v5447_v40  ;;  %v5428_v41 = vpack.c.bf16 %v553_v30, %v552_v28  ;;  %v1751_v30 = vld [vmem:[#allocation6 + $0x400] sm:$0xff] }
  0xb4   : > { %5420 = vmatpush1.bf16.msra.mxu1 %v5419_v47  ;;  %4893 = vmatprep.mubr.f32.mxu1 %v660_v51  ;;  %v572_v47 = vld [vmem:[#allocation6 + $0x160] sm:$0xff]  ;;  %v554_v51 = vld [vmem:[#allocation6 + $0xd0] sm:$0xff] }
  0xb5   : > { %796 = vmatmul.mubr.f32.gmra.mrb[4].mxu0 %v6475_v58  ;;  %5421 = vmatprep.subr.bf16.mxu1 %v8340_v0 }
  0xb6   : > { %800 = vmatprep.mubr.f32.mxu0 %v6329_v33  ;;  %5450 = vmatpush3.bf16.msra.mxu0 %v5447_v40  ;;  %v6496_v40 = vld [vmem:[#allocation2 + $0x1b1] sm:$0xff] }
  0xb7   : > { %4894 = vmatmul.mubr.f32.gmra.mrb[20].mxu1 %v661_v60  ;;  %5452 = vmatprep.subr.bf16.mxu0 %v5451_v59  ;;  %v6507_v60 = vld [vmem:[#allocation2 + $0x1d1] sm:$0xff] }
  0xb8   : > { %5423 = vmatpush1.bf16.msra.mxu1 %v5422_v63  ;;  %4896 = vmatprep.mubr.f32.mxu1 %v6479_v7  ;;  %v5431_v63 = vpack.c.bf16 %v555_v52, %v554_v51  ;;  %v559_v51 = vld [vmem:[#allocation6 + $0xf8] sm:$0xff] }
  0xb9   : > { %801 = vmatmul.mubr.f32.gmra.mrb[6].mxu0 %v6482_v13  ;;  %5424 = vmatprep.subr.bf16.mxu1 %v8340_v0 }
  0xba   : > { %805 = vmatprep.mubr.f32.mxu0 %v6334_v35  ;;  %5454 = vmatpush3.bf16.msra.mxu0 %v5451_v59  ;;  %v5463_v59 = vpack.c.bf16 %v573_v48, %v572_v47  ;;  %v670_v47 = vld [vmem:[#allocation2 + $0x209] sm:$0xff] }
  0xbb   : > { %4897 = vmatmul.mubr.f32.gmra.mrb[22].mxu1 %v6485_v16  ;;  %5456 = vmatprep.subr.bf16.mxu0 %v5455_v15  ;;  %v558_v48 = vld [vmem:[#allocation6 + $0xf0] sm:$0xff] }
  0xbc   : > { %5426 = vmatpush1.bf16.msra.mxu1 %v5425_v21  ;;  %4899 = vmatprep.mubr.f32.mxu1 %v6489_v27  ;;  %v6514_v21 = vld [vmem:[#allocation2 + $0x87] sm:$0xff]  ;;  %v5437_v2 = vpack.c.bf16 %v559_v51, %v558_v48 }
  0xbd   : > { %806 = vmatmul.mubr.f32.gmra.mrb[8].mxu0 %v6492_v31  ;;  %5427 = vmatprep.subr.bf16.mxu1 %v8340_v0  ;;  %v1723_v51 = vld [vmem:[#allocation6 + $0x320] sm:$0xff] }
  0xbe   : > { %810 = vmatprep.mubr.f32.mxu0 %v6337_v39  ;;  %5458 = vmatpush3.bf16.msra.mxu0 %v5455_v15  ;;  %v557_v15 = vld [vmem:[#allocation6 + $0xe8] sm:$0xff] }
  0xbf   : > { %4900 = vmatmul.mubr.f32.gmra.mrb[24].mxu1 %v6496_v40  ;;  %5460 = vmatprep.subr.bf16.mxu0 %v5459_v34  ;;  %v5434_v28 = vpack.c.bf16 %v557_v15, %v556_v12  ;;  %v1720_v12 = vld [vmem:[#allocation6 + $0x308] sm:$0xff] }
  0xc0   : > { %5429 = vmatpush1.bf16.msra.mxu1 %v5428_v41  ;;  %4902 = vmatprep.mubr.f32.mxu1 %v6500_v49  ;;  %v1752_v41 = vld [vmem:[#allocation6 + $0x408] sm:$0xff] }
  0xc1   : > { %811 = vmatmul.mubr.f32.gmra.mrb[10].mxu0 %v6503_v53  ;;  %5430 = vmatprep.subr.bf16.mxu1 %v8340_v0  ;;  %v6526_v52 = vpack.c.bf16 %v1752_v41, %v1751_v30  ;;  %v6531_v15 = vld [vmem:[#allocation2 + $0xa7] sm:$0xff]  ;;  %v1721_v30 = vld [vmem:[#allocation6 + $0x310] sm:$0xff]  ;;  %v1722_v41 = vld [vmem:[#allocation6 + $0x318] sm:$0xff] }
  0xc2   : > { %815 = vmatprep.mubr.f32.mxu0 %v6343_v42  ;;  %5462 = vmatpush3.bf16.msra.mxu0 %v5459_v34  ;;  %v6523_v34 = vld [vmem:[#allocation2 + $0x8f] sm:$0xff]  ;;  %v5475_v48 = vpack.c.bf16 %v1722_v41, %v1721_v30  ;;  %v6557_v41 = vld [vmem:[#allocation2 + $0xe7] sm:$0xff] }
  0xc3   : > { %4903 = vmatmul.mubr.f32.gmra.mrb[26].mxu1 %v6507_v60  ;;  %5464 = vmatprep.subr.bf16.mxu0 %v5463_v59  ;;  %v1728_v30 = vld [vmem:[#allocation6 + $0x348] sm:$0xff] }
  0xc4   : > { %5432 = vmatpush1.bf16.msra.mxu1 %v5431_v63  ;;  %4905 = vmatprep.mubr.f32.mxu1 %v6511_v9  ;;  %v671_v63 = vld [vmem:[#allocation2 + $0x211] sm:$0xff] }
  0xc5   : > { %816 = vmatmul.mubr.f32.gmra.mrb[12].mxu0 %v6514_v21  ;;  %5433 = vmatprep.subr.bf16.mxu1 %v8340_v0 }
  0xc6   : > { %820 = vmatprep.mubr.f32.mxu0 %v6346_v43  ;;  %5466 = vmatpush3.bf16.msra.mxu0 %v5463_v59  ;;  %v432_v59 = vld [vmem:[#allocation2 + $0x7] sm:$0xff] }
  0xc7   : > { %4906 = vmatmul.mubr.f32.gmra.mrb[28].mxu1 %v6518_v24  ;;  %5468 = vmatprep.subr.bf16.mxu0 %v5467_v23 }
  0xc8   : > { %5435 = vmatpush1.bf16.msra.mxu1 %v5434_v28  ;;  %4908 = vmatprep.mubr.f32.mxu1 %v670_v47  ;;  %v5472_v28 = vpack.c.bf16 %v1720_v12, %v1719_v4  ;;  %v6538_v47 = vld [vmem:[#allocation2 + $0xaf] sm:$0xff]  ;;  %v1726_v12 = vld [vmem:[#allocation6 + $0x338] sm:$0xff] }
  0xc9   : > { %821 = vmatmul.mubr.f32.gmra.mrb[14].mxu0 %v6523_v34  ;;  %5436 = vmatprep.subr.bf16.mxu1 %v8340_v0 }
  0xca   : > { %825 = vmatprep.mubr.f32.mxu0 %v6351_v46  ;;  %5470 = vmatpush3.bf16.msra.mxu0 %v5467_v23  ;;  %v433_v23 = vld [vmem:[#allocation2 + $0xf] sm:$0xff] }
  0xcb   : > { %4909 = vmatmul.mubr.f32.gmra.mrb[30].mxu1 %v671_v63  ;;  %5520 = vmatprep.subr.bf16.mxu0 %v6526_v52  ;;  %v1724_v63 = vld [vmem:[#allocation6 + $0x328] sm:$0xff] }
  0xcc   : > { %5438 = vmatpush1.bf16.msra.mxu1 %v5437_v2  ;;  %1235 = vmatprep.mubr.f32.mxu1 %v6031_v1  ;;  %v6544_v2 = vld [vmem:[#allocation2 + $0xc7] sm:$0xff]  ;;  %v5478_v4 = vpack.c.bf16 %v1724_v63, %v1723_v51 }
  0xcd   : > { %826 = vmatmul.mubr.f32.gmra.mrb[16].mxu0 %v6531_v15  ;;  %5471 = vmatprep.subr.bf16.mxu1 %v8340_v0  ;;  %v1732_v51 = vld [vmem:[#allocation6 + $0x368] sm:$0xff] }
  0xce   : > { %830 = vmatprep.mubr.f32.mxu0 %v6354_v50  ;;  %v6571_v63 = vld [vmem:[#allocation2 + $0x107] sm:$0xff] }
  0xcf   : > { %1236 = vmatmul.mubr.f32.vlgmr.msra.gmra.mrb[32].mxu1 %v432_v59  ;;  %v6550_v59 = vld [vmem:[#allocation2 + $0xcf] sm:$0xff] }
  0xd0   : > { %1240 = vmatprep.mubr.f32.mxu1 %v6031_v1  ;;  %5473 = vmatpush1.bf16.msra.mxu1 %v5472_v28  ;;  %v1725_v1 = vld [vmem:[#allocation6 + $0x330] sm:$0xff] }
  0xd1   : > { %831 = vmatmul.mubr.f32.gmra.mrb[18].mxu0 %v6538_v47  ;;  %5474 = vmatprep.subr.bf16.mxu1 %v8340_v0  ;;  %v5481_v28 = vpack.c.bf16 %v1726_v12, %v1725_v1  ;;  %v1734_v1 = vld [vmem:[#allocation6 + $0x378] sm:$0xff]  ;;  %v6578_v12 = vld [vmem:[#allocation2 + $0x10f] sm:$0xff] }
  0xd2   : > { %835 = vmatprep.mubr.f32.mxu0 %v6360_v54 }
  0xd3   : > { %1241 = vmatmul.mubr.f32.gmra.mrb[34].mxu1 %v433_v23  ;;  %v1730_v23 = vld [vmem:[#allocation6 + $0x358] sm:$0xff] }
  0xd4   : > { %1245 = vmatprep.mubr.f32.mxu1 %v6316_v25  ;;  %5476 = vmatpush1.bf16.msra.mxu1 %v5475_v48  ;;  %v1727_v25 = vld [vmem:[#allocation6 + $0x340] sm:$0xff]  ;;  %v6564_v48 = vld [vmem:[#allocation2 + $0xef] sm:$0xff] }
  0xd5   : > { %836 = vmatmul.mubr.f32.gmra.mrb[20].mxu0 %v6544_v2  ;;  %5477 = vmatprep.subr.bf16.mxu1 %v8340_v0 }
  0xd6   : > { %840 = vmatprep.mubr.f32.mxu0 %v6363_v55 }
  0xd7   : > { %1246 = vmatmul.mubr.f32.gmra.mrb[36].mxu1 %v6465_v18  ;;  %v5484_v18 = vpack.c.bf16 %v1728_v30, %v1727_v25  ;;  %v1736_v25 = vld [vmem:[#allocation6 + $0x388] sm:$0xff] }
  0xd8   : > { %1250 = vmatprep.mubr.f32.mxu1 %v6319_v29  ;;  %5479 = vmatpush1.bf16.msra.mxu1 %v5478_v4  ;;  %v1729_v29 = vld [vmem:[#allocation6 + $0x350] sm:$0xff]  ;;  %v6585_v30 = vld [vmem:[#allocation2 + $0x127] sm:$0xff] }
  0xd9   : > { %841 = vmatmul.mubr.f32.gmra.mrb[22].mxu0 %v6550_v59  ;;  %5480 = vmatprep.subr.bf16.mxu1 %v8340_v0 }
  0xda   : > { %845 = vmatprep.mubr.f32.mxu0 %v6369_v61 }
  0xdb   : > { %1251 = vmatmul.mubr.f32.gmra.mrb[38].mxu1 %v6470_v38  ;;  %v5487_v38 = vpack.c.bf16 %v1730_v23, %v1729_v29  ;;  %v1738_v29 = vld [vmem:[#allocation6 + $0x398] sm:$0xff]  ;;  %v6592_v23 = vld [vmem:[#allocation2 + $0x12f] sm:$0xff] }
  0xdc   : > { %1255 = vmatprep.mubr.f32.mxu1 %v6326_v32  ;;  %5482 = vmatpush1.bf16.msra.mxu1 %v5481_v28  ;;  %v1731_v32 = vld [vmem:[#allocation6 + $0x360] sm:$0xff] }
  0xdd   : > { %846 = vmatmul.mubr.f32.gmra.mrb[24].mxu0 %v6557_v41  ;;  %5483 = vmatprep.subr.bf16.mxu1 %v8340_v0  ;;  %v5490_v4 = vpack.c.bf16 %v1732_v51, %v1731_v32  ;;  %v1740_v32 = vld [vmem:[#allocation6 + $0x3a8] sm:$0xff] }
  0xde   : > { %850 = vmatprep.mubr.f32.mxu0 %v6372_v62  ;;  %v6599_v51 = vld [vmem:[#allocation2 + $0x147] sm:$0xff] }
  0xdf   : > { %1256 = vmatmul.mubr.f32.gmra.mrb[40].mxu1 %v6475_v58 }
  0xe0   : > { %1260 = vmatprep.mubr.f32.mxu1 %v6329_v33  ;;  %5485 = vmatpush1.bf16.msra.mxu1 %v5484_v18  ;;  %v1733_v33 = vld [vmem:[#allocation6 + $0x370] sm:$0xff] }
  0xe1   : > { %851 = vmatmul.mubr.f32.gmra.mrb[26].mxu0 %v6564_v48  ;;  %5486 = vmatprep.subr.bf16.mxu1 %v8340_v0  ;;  %v5493_v28 = vpack.c.bf16 %v1734_v1, %v1733_v33  ;;  %v1742_v33 = vld [vmem:[#allocation6 + $0x3b8] sm:$0xff]  ;;  %v6606_v1 = vld [vmem:[#allocation2 + $0x14f] sm:$0xff] }
  0xe2   : > { %855 = vmatprep.mubr.f32.mxu0 %v6378_v5 }
  0xe3   : > { %1261 = vmatmul.mubr.f32.gmra.mrb[42].mxu1 %v6482_v13 }
  0xe4   : > { %1265 = vmatprep.mubr.f32.mxu1 %v6334_v35  ;;  %5488 = vmatpush1.bf16.msra.mxu1 %v5487_v38  ;;  %v1735_v35 = vld [vmem:[#allocation6 + $0x380] sm:$0xff] }
  0xe5   : > { %856 = vmatmul.mubr.f32.gmra.mrb[28].mxu0 %v6571_v63  ;;  %5489 = vmatprep.subr.bf16.mxu1 %v8340_v0  ;;  %v5496_v18 = vpack.c.bf16 %v1736_v25, %v1735_v35  ;;  %v1744_v35 = vld [vmem:[#allocation6 + $0x3c8] sm:$0xff] }
  0xe6   : > { %860 = vmatprep.mubr.f32.mxu0 %v6381_v6  ;;  %v6613_v25 = vld [vmem:[#allocation2 + $0x167] sm:$0xff] }
  0xe7   : > { %1266 = vmatmul.mubr.f32.gmra.mrb[44].mxu1 %v6492_v31 }
  0xe8   : > { %1270 = vmatprep.mubr.f32.mxu1 %v6337_v39  ;;  %5491 = vmatpush1.bf16.msra.mxu1 %v5490_v4  ;;  %v1737_v39 = vld [vmem:[#allocation6 + $0x390] sm:$0xff] }
  0xe9   : > { %861 = vmatmul.mubr.f32.gmra.mrb[30].mxu0 %v6578_v12  ;;  %5492 = vmatprep.subr.bf16.mxu1 %v8340_v0  ;;  %v5499_v38 = vpack.c.bf16 %v1738_v29, %v1737_v39  ;;  %v1746_v39 = vld [vmem:[#allocation6 + $0x3d8] sm:$0xff]  ;;  %v6620_v29 = vld [vmem:[#allocation2 + $0x16f] sm:$0xff] }
  0xea   : > { %865 = vmatprep.mubr.f32.mxu0 %v6386_v10 }
  0xeb   : > { %1271 = vmatmul.mubr.f32.gmra.mrb[46].mxu1 %v6503_v53 }
  0xec   : > { %1275 = vmatprep.mubr.f32.mxu1 %v6343_v42  ;;  %5494 = vmatpush1.bf16.msra.mxu1 %v5493_v28  ;;  %v1739_v42 = vld [vmem:[#allocation6 + $0x3a0] sm:$0xff] }
  0xed   : > { %866 = vmatmul.mubr.f32.gmra.mrb[32].mxu0 %v6585_v30  ;;  %5495 = vmatprep.subr.bf16.mxu1 %v8340_v0  ;;  %v5502_v4 = vpack.c.bf16 %v1740_v32, %v1739_v42  ;;  %v1748_v42 = vld [vmem:[#allocation6 + $0x3e8] sm:$0xff] }
  0xee   : > { %870 = vmatprep.mubr.f32.mxu0 %v6389_v11  ;;  %v6627_v32 = vld [vmem:[#allocation2 + $0x187] sm:$0xff] }
  0xef   : > { %1276 = vmatmul.mubr.f32.gmra.mrb[48].mxu1 %v6514_v21 }
  0xf0   : > { %1280 = vmatprep.mubr.f32.mxu1 %v6346_v43  ;;  %5497 = vmatpush1.bf16.msra.mxu1 %v5496_v18  ;;  %v1741_v43 = vld [vmem:[#allocation6 + $0x3b0] sm:$0xff] }
  0xf1   : > { %871 = vmatmul.mubr.f32.gmra.mrb[34].mxu0 %v6592_v23  ;;  %5498 = vmatprep.subr.bf16.mxu1 %v8340_v0  ;;  %v5505_v28 = vpack.c.bf16 %v1742_v33, %v1741_v43  ;;  %v1750_v43 = vld [vmem:[#allocation6 + $0x3f8] sm:$0xff]  ;;  %v6634_v33 = vld [vmem:[#allocation2 + $0x18f] sm:$0xff] }
  0xf2   : > { %875 = vmatprep.mubr.f32.mxu0 %v6396_v19 }
  0xf3   : > { %1281 = vmatmul.mubr.f32.gmra.mrb[50].mxu1 %v6523_v34 }
  0xf4   : > { %1285 = vmatprep.mubr.f32.mxu1 %v6351_v46  ;;  %5500 = vmatpush1.bf16.msra.mxu1 %v5499_v38  ;;  %v1743_v46 = vld [vmem:[#allocation6 + $0x3c0] sm:$0xff] }
  0xf5   : > { %876 = vmatmul.mubr.f32.gmra.mrb[36].mxu0 %v6599_v51  ;;  %5501 = vmatprep.subr.bf16.mxu1 %v8340_v0  ;;  %v5508_v18 = vpack.c.bf16 %v1744_v35, %v1743_v46  ;;  %v6653_v46 = vld [vmem:[#allocation2 + $0x1c7] sm:$0xff] }
  0xf6   : > { %880 = vmatprep.mubr.f32.mxu0 %v6399_v20  ;;  %v496_v35 = vld [vmem:[#allocation2 + $0x9] sm:$0xff] }
  0xf7   : > { %1286 = vmatmul.mubr.f32.gmra.mrb[52].mxu1 %v6531_v15 }
  0xf8   : > { %1290 = vmatprep.mubr.f32.mxu1 %v6354_v50  ;;  %5503 = vmatpush1.bf16.msra.mxu1 %v5502_v4  ;;  %v1745_v50 = vld [vmem:[#allocation6 + $0x3d0] sm:$0xff] }
  0xf9   : > { %881 = vmatmul.mubr.f32.gmra.mrb[38].mxu0 %v6606_v1  ;;  %5504 = vmatprep.subr.bf16.mxu1 %v8340_v0  ;;  %v5511_v38 = vpack.c.bf16 %v1746_v39, %v1745_v50  ;;  %v1756_v39 = vld [vmem:[#allocation6 + $0x428] sm:$0xff] }
  0xfa   : > { %885 = vmatprep.mubr.f32.mxu0 %v6404_v22 }
  0xfb   : > { %1291 = vmatmul.mubr.f32.gmra.mrb[54].mxu1 %v6538_v47 }
  0xfc   : > { %1295 = vmatprep.mubr.f32.mxu1 %v6360_v54  ;;  %5506 = vmatpush1.bf16.msra.mxu1 %v5505_v28  ;;  %v1747_v54 = vld [vmem:[#allocation6 + $0x3e0] sm:$0xff] }
  0xfd   : > { %886 = vmatmul.mubr.f32.gmra.mrb[40].mxu0 %v6613_v25  ;;  %5507 = vmatprep.subr.bf16.mxu1 %v8340_v0  ;;  %v5514_v4 = vpack.c.bf16 %v1748_v42, %v1747_v54  ;;  %v1757_v42 = vld [vmem:[#allocation6 + $0x430] sm:$0xff] }
  0xfe   : > { %890 = vmatprep.mubr.f32.mxu0 %v6408_v26 }
  0xff   : > { %1296 = vmatmul.mubr.f32.gmra.mrb[56].mxu1 %v6544_v2 }
 0x100   : > { %1300 = vmatprep.mubr.f32.mxu1 %v6363_v55  ;;  %5509 = vmatpush1.bf16.msra.mxu1 %v5508_v18  ;;  %v1749_v55 = vld [vmem:[#allocation6 + $0x3f0] sm:$0xff]  ;;  %v1754_v18 = vld [vmem:[#allocation6 + $0x418] sm:$0xff] }
 0x101   : > { %891 = vmatmul.mubr.f32.gmra.mrb[42].mxu0 %v6620_v29  ;;  %5510 = vmatprep.subr.bf16.mxu1 %v8340_v0  ;;  %v5517_v28 = vpack.c.bf16 %v1750_v43, %v1749_v55  ;;  %v1759_v43 = vld [vmem:[#allocation6 + $0x440] sm:$0xff] }
 0x102   : > { %895 = vmatprep.mubr.f32.mxu0 %v6414_v36 }
 0x103   : > { %1301 = vmatmul.mubr.f32.gmra.mrb[58].mxu1 %v6550_v59 }
 0x104   : > { %1305 = vmatprep.mubr.f32.mxu1 %v6369_v61  ;;  %5512 = vmatpush1.bf16.msra.mxu1 %v5511_v38  ;;  %v6641_v61 = vld [vmem:[#allocation2 + $0x1a7] sm:$0xff]  ;;  %v499_v38 = vld [vmem:[#allocation2 + $0x31] sm:$0xff] }
 0x105   : > { %896 = vmatmul.mubr.f32.gmra.mrb[44].mxu0 %v6627_v32  ;;  %5513 = vmatprep.subr.bf16.mxu1 %v8340_v0 }
 0x106   : > { %900 = vmatprep.mubr.f32.mxu0 %v6417_v37 }
 0x107   : > { %1306 = vmatmul.mubr.f32.gmra.mrb[60].mxu1 %v6557_v41 }
 0x108   : > { %1310 = vmatprep.mubr.f32.mxu1 %v6372_v62  ;;  %5515 = vmatpush1.bf16.msra.mxu1 %v5514_v4  ;;  %v6647_v62 = vld [vmem:[#allocation2 + $0x1af] sm:$0xff]  ;;  %v1758_v4 = vld [vmem:[#allocation6 + $0x438] sm:$0xff] }
 0x109   : > { %901 = vmatmul.mubr.f32.gmra.mrb[46].mxu0 %v6634_v33  ;;  %5516 = vmatprep.subr.bf16.mxu1 %v8340_v0  ;;  %v5531_v55 = vpack.c.bf16 %v1758_v4, %v1757_v42  ;;  %v1765_v42 = vld [vmem:[#allocation6 + $0x470] sm:$0xff]  ;;  %v1766_v4 = vld [vmem:[#allocation6 + $0x478] sm:$0xff] }
 0x10a   : > { %905 = vmatprep.mubr.f32.mxu0 %v6423_v44 }
 0x10b   : > { %1311 = vmatmul.mubr.f32.gmra.mrb[62].mxu1 %v6564_v48 }
 0x10c   : > { %1315 = vmatprep.mubr.f32.mxu1 %v6378_v5  ;;  %5518 = vmatpush1.bf16.msra.mxu1 %v5517_v28  ;;  %v6659_v5 = vld [vmem:[#allocation2 + $0x1cf] sm:$0xff] }
 0x10d   : > { %906 = vmatmul.mubr.f32.gmra.mrb[48].mxu0 %v6641_v61  ;;  %v1760_v28 = vld [vmem:[#allocation6 + $0x448] sm:$0xff] }
 0x10e   : > { %910 = vmatprep.mubr.f32.mxu0 %v6426_v45 }
 0x10f   : > { %1316 = vmatmul.mubr.f32.gmra.mrb[64].mxu1 %v6571_v63 }
 0x110   : > { %1320 = vmatprep.mubr.f32.mxu1 %v6381_v6  ;;  %v6665_v6 = vld [vmem:[#allocation2 + $0x1e7] sm:$0xff] }
 0x111   : > { %911 = vmatmul.mubr.f32.gmra.mrb[50].mxu0 %v6647_v62 }
 0x112   : > { %915 = vmatprep.mubr.f32.mxu0 %v6432_v56 }
 0x113   : > { %1321 = vmatmul.mubr.f32.gmra.mrb[66].mxu1 %v6578_v12 }
 0x114   : > { %1325 = vmatprep.mubr.f32.mxu1 %v6386_v10  ;;  %v6671_v10 = vld [vmem:[#allocation2 + $0x1ef] sm:$0xff] }
 0x115   : > { %916 = vmatmul.mubr.f32.gmra.mrb[52].mxu0 %v6653_v46 }
 0x116   : > { %920 = vmatprep.mubr.f32.mxu0 %v6435_v57 }
 0x117   : > { %1326 = vmatmul.mubr.f32.gmra.mrb[68].mxu1 %v6585_v30 }
 0x118   : > { %1330 = vmatprep.mubr.f32.mxu1 %v6389_v11  ;;  %v6677_v11 = vld [vmem:[#allocation2 + $0x207] sm:$0xff] }
 0x119   : > { %921 = vmatmul.mubr.f32.gmra.mrb[54].mxu0 %v6659_v5 }
 0x11a   : > { %925 = vmatprep.mubr.f32.mxu0 %v6441_v3 }
 0x11b   : > { %1331 = vmatmul.mubr.f32.gmra.mrb[70].mxu1 %v6592_v23 }
 0x11c   : > { %1335 = vmatprep.mubr.f32.mxu1 %v6396_v19  ;;  %v6683_v19 = vld [vmem:[#allocation2 + $0x20f] sm:$0xff] }
 0x11d   : > { %926 = vmatmul.mubr.f32.gmra.mrb[56].mxu0 %v6665_v6 }
 0x11e   : > { %930 = vmatprep.mubr.f32.mxu0 %v6445_v8 }
 0x11f   : > { %1336 = vmatmul.mubr.f32.gmra.mrb[72].mxu1 %v6599_v51 }
 0x120   : > { %1340 = vmatprep.mubr.f32.mxu1 %v6399_v20  ;;  %v1753_v20 = vld [vmem:[#allocation6 + $0x410] sm:$0xff] }
 0x121   : > { %931 = vmatmul.mubr.f32.gmra.mrb[58].mxu0 %v6671_v10  ;;  %v5523_v50 = vpack.c.bf16 %v1754_v18, %v1753_v20  ;;  %v5535_v20 = vpack.c.bf16 %v1760_v28, %v1759_v43  ;;  %v1761_v18 = vld [vmem:[#allocation6 + $0x450] sm:$0xff]  ;;  %v5547_v43 = vpack.c.bf16 %v1766_v4, %v1765_v42  ;;  %v1658_v4 = vld [vmem:[#allocation2 + $0x88] sm:$0xff] }
 0x122   : > { %935 = vmatprep.mubr.f32.mxu0 %v6451_v14  ;;  %v497_v14 = vld [vmem:[#allocation2 + $0x11] sm:$0xff]  ;;  %v6739_v28 = vld [vmem:[#allocation2 + $0x109] sm:$0xff] }
 0x123   : > { %1341 = vmatmul.mubr.f32.gmra.mrb[74].mxu1 %v6606_v1  ;;  %v1657_v42 = vld [vmem:[#allocation2 + $0x70] sm:$0xff] }
 0x124   : > { %1345 = vmatprep.mubr.f32.mxu1 %v6404_v22  ;;  %v498_v22 = vld [vmem:[#allocation2 + $0x29] sm:$0xff] }
 0x125   : > { %936 = vmatmul.mubr.f32.gmra.mrb[60].mxu0 %v6677_v11 }
 0x126   : > { %940 = vmatprep.mubr.f32.mxu0 %v6454_v17  ;;  %v1755_v17 = vld [vmem:[#allocation6 + $0x420] sm:$0xff] }
 0x127   : > { %1346 = vmatmul.mubr.f32.gmra.mrb[76].mxu1 %v6613_v25  ;;  %v5527_v54 = vpack.c.bf16 %v1756_v39, %v1755_v17  ;;  %v1763_v17 = vld [vmem:[#allocation6 + $0x460] sm:$0xff]  ;;  %v1764_v39 = vld [vmem:[#allocation6 + $0x468] sm:$0xff] }
 0x128   : > { %1350 = vmatprep.mubr.f32.mxu1 %v6408_v26  ;;  %v6692_v26 = vld [vmem:[#allocation2 + $0x49] sm:$0xff] }
 0x129   : > { %941 = vmatmul.mubr.f32.gmra.mrb[62].mxu0 %v6683_v19 }
 0x12a   : > { %4943 = vmatprep.mubr.f32.mxu0 %v496_v35  ;;  %v6707_v35 = vld [vmem:[#allocation2 + $0x89] sm:$0xff] }
 0x12b   : > { %1351 = vmatmul.mubr.f32.gmra.mrb[78].mxu1 %v6620_v29 }
 0x12c   : > { %1355 = vmatprep.mubr.f32.mxu1 %v6414_v36  ;;  %v6696_v36 = vld [vmem:[#allocation2 + $0x51] sm:$0xff] }
 0x12d   : > { %4944 = vmatmul.mubr.f32.vlgmr.msra.gmra.mrb[64].mxu0 %v497_v14  ;;  %v1762_v14 = vld [vmem:[#allocation6 + $0x458] sm:$0xff] }
 0x12e   : > { %5522 = vmatpush3.bf16.msra.mxu0 %v6526_v52  ;;  %4946 = vmatprep.mubr.f32.mxu0 %v498_v22  ;;  %v6699_v52 = vld [vmem:[#allocation2 + $0x69] sm:$0xff] }
 0x12f   : > { %1356 = vmatmul.mubr.f32.gmra.mrb[80].mxu1 %v6627_v32  ;;  %5524 = vmatprep.subr.bf16.mxu0 %v5523_v50  ;;  %v6715_v22 = vld [vmem:[#allocation2 + $0xa9] sm:$0xff] }
 0x130   : > { %1360 = vmatprep.mubr.f32.mxu1 %v6417_v37  ;;  %v6704_v37 = vld [vmem:[#allocation2 + $0x71] sm:$0xff] }
 0x131   : > { %4947 = vmatmul.mubr.f32.gmra.mrb[66].mxu0 %v499_v38  ;;  %v6723_v38 = vld [vmem:[#allocation2 + $0xc9] sm:$0xff] }
 0x132   : > { %4949 = vmatprep.mubr.f32.mxu0 %v6692_v26  ;;  %5526 = vmatpush3.bf16.msra.mxu0 %v5523_v50  ;;  %v5539_v50 = vpack.c.bf16 %v1762_v14, %v1761_v18  ;;  %v6747_v18 = vld [vmem:[#allocation2 + $0x129] sm:$0xff] }
 0x133   : > { %1361 = vmatmul.mubr.f32.gmra.mrb[82].mxu1 %v6634_v33  ;;  %5528 = vmatprep.subr.bf16.mxu0 %v5527_v54  ;;  %v1655_v14 = vld [vmem:[#allocation2 + $0x50] sm:$0xff] }
 0x134   : > { %1365 = vmatprep.mubr.f32.mxu1 %v6423_v44  ;;  %v6712_v44 = vld [vmem:[#allocation2 + $0x91] sm:$0xff] }
 0x135   : > { %4950 = vmatmul.mubr.f32.gmra.mrb[68].mxu0 %v6696_v36 }
 0x136   : > { %4952 = vmatprep.mubr.f32.mxu0 %v6699_v52  ;;  %5530 = vmatpush3.bf16.msra.mxu0 %v5527_v54  ;;  %v5543_v54 = vpack.c.bf16 %v1764_v39, %v1763_v17  ;;  %v1656_v17 = vld [vmem:[#allocation2 + $0x68] sm:$0xff]  ;;  %v6759_v39 = vld [vmem:[#allocation2 + $0x151] sm:$0xff] }
 0x137   : > { %1366 = vmatmul.mubr.f32.gmra.mrb[84].mxu1 %v6641_v61  ;;  %5532 = vmatprep.subr.bf16.mxu0 %v5531_v55 }
 0x138   : > { %1370 = vmatprep.mubr.f32.mxu1 %v6426_v45  ;;  %v6720_v45 = vld [vmem:[#allocation2 + $0xb1] sm:$0xff] }
 0x139   : > { %4953 = vmatmul.mubr.f32.gmra.mrb[70].mxu0 %v6704_v37 }
 0x13a   : > { %4955 = vmatprep.mubr.f32.mxu0 %v6707_v35  ;;  %5534 = vmatpush3.bf16.msra.mxu0 %v5531_v55  ;;  %v6731_v55 = vld [vmem:[#allocation2 + $0xe9] sm:$0xff] }
 0x13b   : > { %1371 = vmatmul.mubr.f32.gmra.mrb[86].mxu1 %v6647_v62  ;;  %5536 = vmatprep.subr.bf16.mxu0 %v5535_v20 }
 0x13c   : > { %1375 = vmatprep.mubr.f32.mxu1 %v6432_v56  ;;  %v6728_v56 = vld [vmem:[#allocation2 + $0xd1] sm:$0xff] }
 0x13d   : > { %4956 = vmatmul.mubr.f32.gmra.mrb[72].mxu0 %v6712_v44 }
 0x13e   : > { %4958 = vmatprep.mubr.f32.mxu0 %v6715_v22  ;;  %5538 = vmatpush3.bf16.msra.mxu0 %v5535_v20  ;;  %v1654_v20 = vld [vmem:[#allocation2 + $0x48] sm:$0xff] }
 0x13f   : > { %1376 = vmatmul.mubr.f32.gmra.mrb[88].mxu1 %v6653_v46  ;;  %5540 = vmatprep.subr.bf16.mxu0 %v5539_v50 }
 0x140   : > { %1380 = vmatprep.mubr.f32.mxu1 %v6435_v57  ;;  %v6736_v57 = vld [vmem:[#allocation2 + $0xf1] sm:$0xff] }
 0x141   : > { %4959 = vmatmul.mubr.f32.gmra.mrb[74].mxu0 %v6720_v45 }
 0x142   : > { %4961 = vmatprep.mubr.f32.mxu0 %v6723_v38  ;;  %5542 = vmatpush3.bf16.msra.mxu0 %v5539_v50  ;;  %v6755_v50 = vld [vmem:[#allocation2 + $0x149] sm:$0xff] }
 0x143   : > { %1381 = vmatmul.mubr.f32.gmra.mrb[90].mxu1 %v6659_v5  ;;  %5544 = vmatprep.subr.bf16.mxu0 %v5543_v54 }
 0x144   : > { %1385 = vmatprep.mubr.f32.mxu1 %v6441_v3  ;;  %v6744_v3 = vld [vmem:[#allocation2 + $0x111] sm:$0xff] }
 0x145   : > { %4962 = vmatmul.mubr.f32.gmra.mrb[76].mxu0 %v6728_v56 }
 0x146   : > { %4964 = vmatprep.mubr.f32.mxu0 %v6731_v55  ;;  %5546 = vmatpush3.bf16.msra.mxu0 %v5543_v54  ;;  %v6762_v54 = vld [vmem:[#allocation2 + $0x169] sm:$0xff] }
 0x147   : > { %1386 = vmatmul.mubr.f32.gmra.mrb[92].mxu1 %v6665_v6  ;;  %5548 = vmatprep.subr.bf16.mxu0 %v5547_v43 }
 0x148   : > { %1390 = vmatprep.mubr.f32.mxu1 %v6445_v8  ;;  %v6752_v8 = vld [vmem:[#allocation2 + $0x131] sm:$0xff] }
 0x149   : > { %4965 = vmatmul.mubr.f32.gmra.mrb[78].mxu0 %v6736_v57 }
 0x14a   : > { %4967 = vmatprep.mubr.f32.mxu0 %v6739_v28  ;;  %5550 = vmatpush3.bf16.msra.mxu0 %v5547_v43 }
 0x14b   : > { %1391 = vmatmul.mubr.f32.gmra.mrb[94].mxu1 %v6671_v10  ;;  %5551 = vmatprep.subr.bf16.mxu0 %v8340_v0 }
 0x14c   : > { %1831 = vmatprep.mubr.f32.mxu1 %v1654_v20 }
 0x14d   : > { %4968 = vmatmul.mubr.f32.gmra.mrb[80].mxu0 %v6744_v3 }
 0x14e   : > { %4970 = vmatprep.mubr.f32.mxu0 %v6747_v18 }
 0x14f   : > { %1832 = vmatmul.mubr.f32.vlgmr.msra.gmra.mrb[96].mxu1 %v6475_v58  ;;  %v6766_v58 = vld [vmem:[#allocation2 + $0x171] sm:$0xff] }
 0x150   : > { %1836 = vmatprep.mubr.f32.mxu1 %v1655_v14  ;;  %v1669_v14 = vld [vmem:[#allocation2 + $0x130] sm:$0xff] }
 0x151   : > { %4971 = vmatmul.mubr.f32.gmra.mrb[82].mxu0 %v6752_v8 }
 0x152   : > { %4973 = vmatprep.mubr.f32.mxu0 %v6755_v50 }
 0x153   : > { %1837 = vmatmul.mubr.f32.gmra.mrb[98].mxu1 %v6482_v13  ;;  %v1659_v13 = vld [vmem:[#allocation2 + $0x90] sm:$0xff] }
 0x154   : > { %1841 = vmatprep.mubr.f32.mxu1 %v1656_v17 }
 0x155   : > { %4974 = vmatmul.mubr.f32.gmra.mrb[84].mxu0 %v6759_v39 }
 0x156   : > { %4976 = vmatprep.mubr.f32.mxu0 %v6762_v54 }
 0x157   : > { %1842 = vmatmul.mubr.f32.gmra.mrb[100].mxu1 %v6492_v31  ;;  %v1660_v31 = vld [vmem:[#allocation2 + $0xa8] sm:$0xff] }
 0x158   : > { %1846 = vmatprep.mubr.f32.mxu1 %v1657_v42 }
 0x159   : > { %4977 = vmatmul.mubr.f32.gmra.mrb[86].mxu0 %v6766_v58 }
 0x15a   : > { %4979 = vmatprep.mubr.f32.mxu0 %v6479_v7 }
 0x15b   : > { %1847 = vmatmul.mubr.f32.gmra.mrb[102].mxu1 %v6503_v53 }
 0x15c   : > { %1851 = vmatprep.mubr.f32.mxu1 %v1658_v4  ;;  %v1670_v4 = vld [vmem:[#allocation2 + $0x148] sm:$0xff] }
 0x15d   : > { %4980 = vmatmul.mubr.f32.gmra.mrb[88].mxu0 %v6485_v16  ;;  %v1661_v16 = vld [vmem:[#allocation2 + $0xb0] sm:$0xff] }
 0x15e   : > { %4982 = vmatprep.mubr.f32.mxu0 %v6489_v27 }
 0x15f   : > { %1852 = vmatmul.mubr.f32.gmra.mrb[104].mxu1 %v6514_v21 }
 0x160   : > { %1856 = vmatprep.mubr.f32.mxu1 %v1659_v13 }
 0x161   : > { %4983 = vmatmul.mubr.f32.gmra.mrb[90].mxu0 %v6496_v40  ;;  %v1662_v40 = vld [vmem:[#allocation2 + $0xc8] sm:$0xff] }
 0x162   : > { %4985 = vmatprep.mubr.f32.mxu0 %v6500_v49  ;;  %v6777_v43 = vpop.f32.mrb[0].mxu1 }
 0x163   : > { %1857 = vmatmul.mubr.f32.gmra.mrb[106].mxu1 %v6523_v34  ;;  %v1012_v7 = vpop.f32.mrb[1].mxu1  ;;  %v1664_v34 = vld [vmem:[#allocation2 + $0xe8] sm:$0xff] }
 0x164   : > { %1861 = vmatprep.mubr.f32.mxu1 %v1660_v31 }
 0x165   : > { %4986 = vmatmul.mubr.f32.gmra.mrb[92].mxu0 %v6507_v60 }
 0x166   : > { %4988 = vmatprep.mubr.f32.mxu0 %v6511_v9  ;;  %v6782_v27 = vpop.f32.mrb[2].mxu1  ;;  %v1663_v9 = vld [vmem:[#allocation2 + $0xd0] sm:$0xff] }
 0x167   : > { %1862 = vmatmul.mubr.f32.gmra.mrb[108].mxu1 %v6531_v15  ;;  %v6785_v53 = vpop.f32.mrb[3].mxu1 }
 0x168   : > { %1866 = vmatprep.mubr.f32.mxu1 %v1661_v16 }
 0x169   : > { %4989 = vmatmul.mubr.f32.gmra.mrb[94].mxu0 %v6518_v24 }
 0x16a   : > { %5023 = vmatprep.mubr.f32.mxu0 %v6692_v26  ;;  %v6789_v49 = vpop.f32.mrb[4].mxu1  ;;  %v1665_v26 = vld [vmem:[#allocation2 + $0xf0] sm:$0xff] }
 0x16b   : > { %1867 = vmatmul.mubr.f32.gmra.mrb[110].mxu1 %v6538_v47  ;;  %v6792_v60 = vpop.f32.mrb[5].mxu1 }
 0x16c   : > { %1871 = vmatprep.mubr.f32.mxu1 %v1662_v40  ;;  %v1672_v40 = vld [vmem:[#allocation2 + $0x168] sm:$0xff] }
 0x16d   : > { %5024 = vmatmul.mubr.f32.vlgmr.msra.gmra.mrb[96].mxu0 %v6696_v36 }
 0x16e   : > { %5026 = vmatprep.mubr.f32.mxu0 %v6699_v52  ;;  %v6796_v21 = vpop.f32.mrb[6].mxu1  ;;  %v1666_v52 = vld [vmem:[#allocation2 + $0x108] sm:$0xff] }
 0x16f   : > { %1872 = vmatmul.mubr.f32.gmra.mrb[112].mxu1 %v6544_v2  ;;  %v6799_v24 = vpop.f32.mrb[7].mxu1 }
 0x170   : > { %1876 = vmatprep.mubr.f32.mxu1 %v1663_v9 }
 0x171   : > { %5027 = vmatmul.mubr.f32.gmra.mrb[98].mxu0 %v6704_v37 }
 0x172   : > { %5029 = vmatprep.mubr.f32.mxu0 %v6707_v35  ;;  %v6803_v15 = vpop.f32.mrb[8].mxu1  ;;  %v1667_v35 = vld [vmem:[#allocation2 + $0x110] sm:$0xff] }
 0x173   : > { %1877 = vmatmul.mubr.f32.gmra.mrb[114].mxu1 %v6550_v59  ;;  %v6806_v47 = vpop.f32.mrb[9].mxu1 }
 0x174   : > { %1881 = vmatprep.mubr.f32.mxu1 %v1664_v34  ;;  %v2632_v34 = vld [vmem:[#allocation8 + $0x180] sm:$0xff] }
 0x175   : > { %5030 = vmatmul.mubr.f32.gmra.mrb[100].mxu0 %v6712_v44 }
 0x176   : > { %5032 = vmatprep.mubr.f32.mxu0 %v6715_v22  ;;  %v6810_v2 = vpop.f32.mrb[10].mxu1 }
 0x177   : > { %1882 = vmatmul.mubr.f32.gmra.mrb[116].mxu1 %v6557_v41  ;;  %v6813_v36 = vpop.f32.mrb[11].mxu1 }
 0x178   : > { %1886 = vmatprep.mubr.f32.mxu1 %v1665_v26  ;;  %v2633_v26 = vld [vmem:[#allocation8 + $0x188] sm:$0xff] }
 0x179   : > { %5033 = vmatmul.mubr.f32.gmra.mrb[102].mxu0 %v6720_v45 }
 0x17a   : > { %5035 = vmatprep.mubr.f32.mxu0 %v6723_v38  ;;  %v6817_v59 = vpop.f32.mrb[12].mxu1 }
 0x17b   : > { %1887 = vmatmul.mubr.f32.gmra.mrb[118].mxu1 %v6564_v48  ;;  %v6820_v37 = vpop.f32.mrb[13].mxu1  ;;  %v1668_v48 = vld [vmem:[#allocation2 + $0x128] sm:$0xff] }
 0x17c   : > { %1891 = vmatprep.mubr.f32.mxu1 %v1666_v52 }
 0x17d   : > { %5036 = vmatmul.mubr.f32.gmra.mrb[104].mxu0 %v6728_v56 }
 0x17e   : > { %5038 = vmatprep.mubr.f32.mxu0 %v6731_v55  ;;  %v6824_v41 = vpop.f32.mrb[14].mxu1 }
 0x17f   : > { %1892 = vmatmul.mubr.f32.gmra.mrb[120].mxu1 %v6571_v63  ;;  %v6827_v44 = vpop.f32.mrb[15].mxu1 }
 0x180   : > { %v787_v22 = vpop.f32.mrb[0].mxu0  ;;  %1896 = vmatprep.mubr.f32.mxu1 %v1667_v35  ;;  %v5552_v35 = vpack.c.bf16 %v2633_v26, %v2632_v34 }
 0x181   : > { %v789_v45 = vpop.f32.mrb[1].mxu0  ;;  %5039 = vmatmul.mubr.f32.gmra.mrb[106].mxu0 %v6736_v57  ;;  %v6830_v38 = vadd.f32 %v1012_v7, %v787_v22 }
 0x182   : > { %5041 = vmatprep.mubr.f32.mxu0 %v6739_v28  ;;  %v6833_v56 = vpop.f32.mrb[16].mxu1  ;;  %v1673_v45 = vld [vmem:[#allocation2 + $0x170] sm:$0xff]  ;;  %5553 = vmatpush1.bf16.msra.mxu0 %v5552_v35 }
 0x183   : > { %1897 = vmatmul.mubr.f32.gmra.mrb[122].mxu1 %v6578_v12  ;;  %v6836_v55 = vpop.f32.mrb[17].mxu1  ;;  %5554 = vmatprep.subr.bf16.mxu0 %v8340_v0 }
 0x184   : > { %v792_v20 = vpop.f32.mrb[2].mxu0  ;;  %1901 = vmatprep.mubr.f32.mxu1 %v1668_v48  ;;  %v2665_v48 = vld [vmem:[#allocation8 + $0x288] sm:$0xff] }
 0x185   : > { %v794_v63 = vpop.f32.mrb[3].mxu0  ;;  %5042 = vmatmul.mubr.f32.gmra.mrb[108].mxu0 %v6744_v3  ;;  %v6840_v17 = vadd.f32 %v6777_v43, %v792_v20  ;;  %v1671_v43 = vld [vmem:[#allocation2 + $0x150] sm:$0xff] }
 0x186   : > { %5044 = vmatprep.mubr.f32.mxu0 %v6747_v18  ;;  %v6843_v57 = vpop.f32.mrb[18].mxu1 }
 0x187   : > { %1902 = vmatmul.mubr.f32.gmra.mrb[124].mxu1 %v6585_v30  ;;  %v6846_v28 = vpop.f32.mrb[19].mxu1 }
 0x188   : > { %v797_v12 = vpop.f32.mrb[4].mxu0  ;;  %1906 = vmatprep.mubr.f32.mxu1 %v1669_v14 }
 0x189   : > { %v799_v42 = vpop.f32.mrb[5].mxu0  ;;  %5045 = vmatmul.mubr.f32.gmra.mrb[110].mxu0 %v6752_v8  ;;  %v6850_v3 = vadd.f32 %v6785_v53, %v797_v12  ;;  %v1710_v12 = vld [vmem:[#allocation2 + $0x1c9] sm:$0xff] }
 0x18a   : > { %5047 = vmatprep.mubr.f32.mxu0 %v6755_v50  ;;  %v6853_v13 = vpop.f32.mrb[20].mxu1  ;;  %v2634_v42 = vld [vmem:[#allocation8 + $0x190] sm:$0xff] }
 0x18b   : > { %1907 = vmatmul.mubr.f32.gmra.mrb[126].mxu1 %v6592_v23  ;;  %v6856_v18 = vpop.f32.mrb[21].mxu1  ;;  %v1706_v23 = vld [vmem:[#allocation2 + $0x189] sm:$0xff] }
 0x18c   : > { %v802_v30 = vpop.f32.mrb[6].mxu0  ;;  %1911 = vmatprep.mubr.f32.mxu1 %v1670_v4  ;;  %v2635_v4 = vld [vmem:[#allocation8 + $0x198] sm:$0xff] }
 0x18d   : > { %v804_v31 = vpop.f32.mrb[7].mxu0  ;;  %5048 = vmatmul.mubr.f32.gmra.mrb[112].mxu0 %v6759_v39  ;;  %v6860_v8 = vadd.f32 %v6782_v27, %v802_v30 }
 0x18e   : > { %5050 = vmatprep.mubr.f32.mxu0 %v6762_v54  ;;  %v6863_v7 = vpop.f32.mrb[22].mxu1  ;;  %v1707_v54 = vld [vmem:[#allocation2 + $0x191] sm:$0xff] }
 0x18f   : > { %1912 = vmatmul.mubr.f32.gmra.mrb[128].mxu1 %v6599_v51  ;;  %v6866_v50 = vpop.f32.mrb[23].mxu1  ;;  %v1708_v51 = vld [vmem:[#allocation2 + $0x1a9] sm:$0xff] }
 0x190   : > { %v807_v16 = vpop.f32.mrb[8].mxu0  ;;  %1916 = vmatprep.mubr.f32.mxu1 %v1671_v43  ;;  %v1674_v43 = vld [vmem:[#allocation2 + $0x188] sm:$0xff] }
 0x191   : > { %v809_v53 = vpop.f32.mrb[9].mxu0  ;;  %5051 = vmatmul.mubr.f32.gmra.mrb[114].mxu0 %v6766_v58  ;;  %v6870_v39 = vadd.f32 %v6792_v60, %v807_v16  ;;  %v2664_v60 = vld [vmem:[#allocation8 + $0x280] sm:$0xff] }
 0x192   : > { %v6872_v27 = vpop.f32.mrb[24].mxu1  ;;  %5053 = vmatprep.mubr.f32.mxu0 %v1706_v23  ;;  %v5599_v63 = vpack.c.bf16 %v2665_v48, %v2664_v60  ;;  %v1714_v60 = vld [vmem:[#allocation2 + $0x209] sm:$0xff] }
 0x193   : > { %1917 = vmatmul.mubr.f32.gmra.mrb[130].mxu1 %v6606_v1  ;;  %v6875_v9 = vpop.f32.mrb[25].mxu1  ;;  %v1709_v1 = vld [vmem:[#allocation2 + $0x1b1] sm:$0xff] }
 0x194   : > { %v812_v52 = vpop.f32.mrb[10].mxu0  ;;  %1921 = vmatprep.mubr.f32.mxu1 %v1672_v40  ;;  %5600 = vmatprep.subr.bf16.mxu1 %v5599_v63  ;;  %v1712_v40 = vld [vmem:[#allocation2 + $0x1e9] sm:$0xff] }
 0x195   : > { %v814_v22 = vpop.f32.mrb[11].mxu0  ;;  %5054 = vmatmul.mubr.f32.gmra.mrb[116].mxu0 %v1707_v54  ;;  %v6878_v58 = vadd.f32 %v6789_v49, %v812_v52  ;;  %v5555_v49 = vpack.c.bf16 %v2635_v4, %v2634_v42  ;;  %5602 = vmatpush3.bf16.msra.mxu1 %v5599_v63  ;;  %v2636_v54 = vld [vmem:[#allocation8 + $0x1a0] sm:$0xff]  ;;  %v1675_v52 = vld [vmem:[#allocation2 + $0x190] sm:$0xff] }
 0x196   : > { %v6880_v20 = vpop.f32.mrb[26].mxu1  ;;  %5056 = vmatprep.mubr.f32.mxu0 %v1708_v51  ;;  %v2637_v51 = vld [vmem:[#allocation8 + $0x1a8] sm:$0xff]  ;;  %v2638_v48 = vld [vmem:[#allocation8 + $0x1b0] sm:$0xff] }
 0x197   : > { %1922 = vmatmul.mubr.f32.gmra.mrb[132].mxu1 %v6613_v25  ;;  %v6883_v14 = vpop.f32.mrb[27].mxu1  ;;  %v1711_v25 = vld [vmem:[#allocation2 + $0x1d1] sm:$0xff]  ;;  %5556 = vmatpush1.bf16.msra.mxu0 %v5555_v49  ;;  %v5558_v26 = vpack.c.bf16 %v2637_v51, %v2636_v54 }
 0x198   : > { %v817_v30 = vpop.f32.mrb[12].mxu0  ;;  %1926 = vmatprep.mubr.f32.mxu1 %v1673_v45  ;;  %5557 = vmatprep.subr.bf16.mxu0 %v8340_v0  ;;  %v1715_v49 = vld [vmem:[#allocation2 + $0x211] sm:$0xff] }
 0x199   : > { %v819_v31 = vpop.f32.mrb[13].mxu0  ;;  %5057 = vmatmul.mubr.f32.gmra.mrb[118].mxu0 %v1709_v1  ;;  %v6887_v23 = vadd.f32 %v6799_v24, %v817_v30  ;;  %v2639_v1 = vld [vmem:[#allocation8 + $0x1b8] sm:$0xff] }
 0x19a   : > { %v6889_v16 = vpop.f32.mrb[28].mxu1  ;;  %5059 = vmatprep.mubr.f32.mxu0 %v1710_v12  ;;  %v5561_v12 = vpack.c.bf16 %v2639_v1, %v2638_v48  ;;  %v2642_v1 = vld [vmem:[#allocation8 + $0x1d0] sm:$0xff] }
 0x19b   : > { %1927 = vmatmul.mubr.f32.gmra.mrb[134].mxu1 %v6620_v29  ;;  %v6892_v53 = vpop.f32.mrb[29].mxu1  ;;  %v1713_v29 = vld [vmem:[#allocation2 + $0x1f1] sm:$0xff]  ;;  %5559 = vmatpush1.bf16.msra.mxu0 %v5558_v26 }
 0x19c   : > { %v822_v34 = vpop.f32.mrb[14].mxu0  ;;  %1931 = vmatprep.mubr.f32.mxu1 %v1674_v43  ;;  %5560 = vmatprep.subr.bf16.mxu0 %v8340_v0  ;;  %v1716_v43 = vld [vmem:[#allocation2 + $0x229] sm:$0xff] }
 0x19d   : > { %v824_v24 = vpop.f32.mrb[15].mxu0  ;;  %5060 = vmatmul.mubr.f32.gmra.mrb[120].mxu0 %v1711_v25  ;;  %v6896_v35 = vadd.f32 %v6796_v21, %v822_v34  ;;  %v1676_v21 = vld [vmem:[#allocation2 + $0x1a8] sm:$0xff]  ;;  %v2640_v25 = vld [vmem:[#allocation8 + $0x1c0] sm:$0xff]  ;;  %v1677_v34 = vld [vmem:[#allocation2 + $0x1b0] sm:$0xff] }
 0x19e   : > { %v6898_v22 = vpop.f32.mrb[30].mxu1  ;;  %5062 = vmatprep.mubr.f32.mxu0 %v1712_v40  ;;  %v2641_v40 = vld [vmem:[#allocation8 + $0x1c8] sm:$0xff]  ;;  %v2666_v24 = vld [vmem:[#allocation8 + $0x290] sm:$0xff] }
 0x19f   : > { %1932 = vmatmul.mubr.f32.gmra.mrb[136].mxu1 %v6627_v32  ;;  %v6901_v45 = vpop.f32.mrb[31].mxu1  ;;  %5562 = vmatpush1.bf16.msra.mxu0 %v5561_v12  ;;  %v5564_v51 = vpack.c.bf16 %v2641_v40, %v2640_v25 }
 0x1a0   : > { %v827_v63 = vpop.f32.mrb[16].mxu0  ;;  %1936 = vmatprep.mubr.f32.mxu1 %v1675_v52  ;;  %5563 = vmatprep.subr.bf16.mxu0 %v8340_v0 }
 0x1a1   : > { %v829_v42 = vpop.f32.mrb[17].mxu0  ;;  %5063 = vmatmul.mubr.f32.gmra.mrb[122].mxu0 %v1713_v29  ;;  %v6905_v4 = vadd.f32 %v6806_v47, %v827_v63  ;;  %v2643_v63 = vld [vmem:[#allocation8 + $0x1d8] sm:$0xff] }
 0x1a2   : > { %v1237_v30 = vpop.f32.mrb[32].mxu1  ;;  %5065 = vmatprep.mubr.f32.mxu0 %v1714_v60 }
 0x1a3   : > { %v6908_v32 = vadd.f32 %v1237_v30, %v6830_v38  ;;  %1937 = vmatmul.mubr.f32.gmra.mrb[138].mxu1 %v6634_v33  ;;  %v1239_v31 = vpop.f32.mrb[33].mxu1  ;;  %v2667_v38 = vld [vmem:[#allocation8 + $0x298] sm:$0xff]  ;;  %5565 = vmatpush1.bf16.msra.mxu0 %v5564_v51  ;;  %v1679_v51 = vld [vmem:[#allocation2 + $0x1d0] sm:$0xff] }
 0x1a4   : > { %v832_v54 = vpop.f32.mrb[18].mxu0  ;;  %1941 = vmatprep.mubr.f32.mxu1 %v1676_v21  ;;  %v1717_v33 = vld [vmem:[#allocation2 + $0x231] sm:$0xff]  ;;  %v5603_v29 = vpack.c.bf16 %v2667_v38, %v2666_v24  ;;  %5566 = vmatprep.subr.bf16.mxu0 %v8340_v0  ;;  %v1678_v21 = vld [vmem:[#allocation2 + $0x1c8] sm:$0xff]  ;;  %v2644_v31 = vld [vmem:[#allocation8 + $0x1e0] sm:$0xff] }
 0x1a5   : > { %v834_v47 = vpop.f32.mrb[19].mxu0  ;;  %5066 = vmatmul.mubr.f32.gmra.mrb[124].mxu0 %v1715_v49  ;;  %v6913_v26 = vadd.f32 %v6803_v15, %v832_v54  ;;  %v5567_v15 = vpack.c.bf16 %v2643_v63, %v2642_v1  ;;  %v2647_v24 = vld [vmem:[#allocation8 + $0x1f8] sm:$0xff]  ;;  %v2648_v1 = vld [vmem:[#allocation8 + $0x200] sm:$0xff]  ;;  %v2649_v63 = vld [vmem:[#allocation8 + $0x208] sm:$0xff] }
 0x1a6   : > { %v1242_v52 = vpop.f32.mrb[34].mxu1  ;;  %5068 = vmatprep.mubr.f32.mxu0 %v1716_v43  ;;  %5604 = vmatprep.subr.bf16.mxu1 %v5603_v29  ;;  %v2645_v43 = vld [vmem:[#allocation8 + $0x1e8] sm:$0xff] }
 0x1a7   : > { %v6916_v60 = vadd.f32 %v1242_v52, %v6840_v17  ;;  %1942 = vmatmul.mubr.f32.gmra.mrb[140].mxu1 %v6641_v61  ;;  %v1244_v48 = vpop.f32.mrb[35].mxu1  ;;  %5568 = vmatpush1.bf16.msra.mxu0 %v5567_v15  ;;  %v5570_v40 = vpack.c.bf16 %v2645_v43, %v2644_v31  ;;  %v5576_v15 = vpack.c.bf16 %v2649_v63, %v2648_v1  ;;  %v2670_v1 = vld [vmem:[#allocation8 + $0x2b0] sm:$0xff]  ;;  %v2671_v63 = vld [vmem:[#allocation8 + $0x2b8] sm:$0xff] }
 0x1a8   : > { %v837_v12 = vpop.f32.mrb[20].mxu0  ;;  %1946 = vmatprep.mubr.f32.mxu1 %v1677_v34  ;;  %5606 = vmatpush3.bf16.msra.mxu1 %v5603_v29  ;;  %v2646_v34 = vld [vmem:[#allocation8 + $0x1f0] sm:$0xff]  ;;  %v1680_v29 = vld [vmem:[#allocation2 + $0x1e8] sm:$0xff] }
 0x1a9   : > { %v839_v42 = vpop.f32.mrb[21].mxu0  ;;  %5069 = vmatmul.mubr.f32.gmra.mrb[126].mxu0 %v1717_v33  ;;  %v6921_v30 = vadd.f32 %v6813_v36, %v837_v12  ;;  %5569 = vmatprep.subr.bf16.mxu0 %v8340_v0  ;;  %v5573_v52 = vpack.c.bf16 %v2647_v24, %v2646_v34  ;;  %v2652_v24 = vld [vmem:[#allocation8 + $0x220] sm:$0xff] }
 0x1aa   : > { %v1247_v17 = vpop.f32.mrb[36].mxu1 }
 0x1ab   : > { %v6924_v61 = vadd.f32 %v1247_v17, %v6850_v3  ;;  %1947 = vmatmul.mubr.f32.gmra.mrb[142].mxu1 %v6647_v62  ;;  %v1249_v49 = vpop.f32.mrb[37].mxu1  ;;  %5571 = vmatpush1.bf16.msra.mxu0 %v5570_v40  ;;  %v2668_v17 = vld [vmem:[#allocation8 + $0x2a0] sm:$0xff]  ;;  %v2651_v40 = vld [vmem:[#allocation8 + $0x218] sm:$0xff] }
 0x1ac   : > { %v842_v25 = vpop.f32.mrb[22].mxu0  ;;  %1951 = vmatprep.mubr.f32.mxu1 %v1678_v21  ;;  %5572 = vmatprep.subr.bf16.mxu0 %v8340_v0  ;;  %v1681_v21 = vld [vmem:[#allocation2 + $0x1f0] sm:$0xff]  ;;  %v2669_v49 = vld [vmem:[#allocation8 + $0x2a8] sm:$0xff] }
 0x1ad   : > { %v844_v54 = vpop.f32.mrb[23].mxu0  ;;  %v6929_v36 = vadd.f32 %v6810_v2, %v842_v25  ;;  %v2650_v25 = vld [vmem:[#allocation8 + $0x210] sm:$0xff] }
 0x1ae   : > { %v1252_v47 = vpop.f32.mrb[38].mxu1 }
 0x1af   : > { %v6932_v3 = vadd.f32 %v1252_v47, %v6860_v8  ;;  %1952 = vmatmul.mubr.f32.gmra.mrb[144].mxu1 %v6653_v46  ;;  %v1254_v62 = vpop.f32.mrb[39].mxu1  ;;  %5574 = vmatpush1.bf16.msra.mxu0 %v5573_v52  ;;  %v1682_v47 = vld [vmem:[#allocation2 + $0x208] sm:$0xff] }
 0x1b0   : > { %v847_v38 = vpop.f32.mrb[24].mxu0  ;;  %1956 = vmatprep.mubr.f32.mxu1 %v1679_v51  ;;  %5575 = vmatprep.subr.bf16.mxu0 %v8340_v0 }
 0x1b1   : > { %v849_v33 = vpop.f32.mrb[25].mxu0  ;;  %v6937_v2 = vadd.f32 %v6820_v37, %v847_v38  ;;  %v2653_v38 = vld [vmem:[#allocation8 + $0x228] sm:$0xff] }
 0x1b2   : > { %v1257_v48 = vpop.f32.mrb[40].mxu1  ;;  %v5582_v33 = vpack.c.bf16 %v2653_v38, %v2652_v24  ;;  %v2674_v38 = vld [vmem:[#allocation8 + $0x2d0] sm:$0xff] }
 0x1b3   : > { %v6940_v8 = vadd.f32 %v1257_v48, %v6870_v39  ;;  %1957 = vmatmul.mubr.f32.gmra.mrb[146].mxu1 %v6659_v5  ;;  %v1259_v46 = vpop.f32.mrb[41].mxu1  ;;  %v5607_v39 = vpack.c.bf16 %v2669_v49, %v2668_v17  ;;  %5577 = vmatpush1.bf16.msra.mxu0 %v5576_v15  ;;  %v1683_v48 = vld [vmem:[#allocation2 + $0x210] sm:$0xff] }
 0x1b4   : > { %v852_v12 = vpop.f32.mrb[26].mxu0  ;;  %1961 = vmatprep.mubr.f32.mxu1 %v1680_v29  ;;  %5578 = vmatprep.subr.bf16.mxu0 %v8340_v0 }
 0x1b5   : > { %v854_v42 = vpop.f32.mrb[27].mxu0  ;;  %v6945_v37 = vadd.f32 %v6817_v59, %v852_v12  ;;  %5608 = vmatprep.subr.bf16.mxu1 %v5607_v39  ;;  %v5579_v59 = vpack.c.bf16 %v2651_v40, %v2650_v25  ;;  %v2654_v12 = vld [vmem:[#allocation8 + $0x230] sm:$0xff]  ;;  %v5864_v40 = vld [vmem:[#allocation2] sm:$0xff] }
 0x1b6   : > { %v1262_v31 = vpop.f32.mrb[42].mxu1  ;;  %5610 = vmatpush3.bf16.msra.mxu1 %v5607_v39  ;;  %v5611_v42 = vpack.c.bf16 %v2671_v63, %v2670_v1  ;;  %v2672_v39 = vld [vmem:[#allocation8 + $0x2c0] sm:$0xff] }
 0x1b7   : > { %v6948_v5 = vadd.f32 %v1262_v31, %v6878_v58  ;;  %1962 = vmatmul.mubr.f32.gmra.mrb[148].mxu1 %v6665_v6  ;;  %v1264_v43 = vpop.f32.mrb[43].mxu1  ;;  %5580 = vmatpush1.bf16.msra.mxu0 %v5579_v59  ;;  %v2656_v59 = vld [vmem:[#allocation8 + $0x240] sm:$0xff] }
 0x1b8   : > { %v857_v54 = vpop.f32.mrb[28].mxu0  ;;  %1966 = vmatprep.mubr.f32.mxu1 %v1681_v21  ;;  %5581 = vmatprep.subr.bf16.mxu0 %v8340_v0  ;;  %v2655_v21 = vld [vmem:[#allocation8 + $0x238] sm:$0xff]  ;;  %v2673_v43 = vld [vmem:[#allocation8 + $0x2c8] sm:$0xff] }
 0x1b9   : > { %v859_v51 = vpop.f32.mrb[29].mxu0  ;;  %v6953_v62 = vadd.f32 %v6827_v44, %v857_v54  ;;  %v5585_v49 = vpack.c.bf16 %v2655_v21, %v2654_v12  ;;  %5612 = vmatprep.subr.bf16.mxu1 %v5611_v42  ;;  %v1652_v54 = vld [vmem:[#allocation2 + $0x227] sm:$0xff] }
 0x1ba   : > { %v1267_v34 = vpop.f32.mrb[44].mxu1  ;;  %5614 = vmatpush3.bf16.msra.mxu1 %v5611_v42  ;;  %v2657_v51 = vld [vmem:[#allocation8 + $0x248] sm:$0xff]  ;;  %v2676_v42 = vld [vmem:[#allocation8 + $0x2e0] sm:$0xff] }
 0x1bb   : > { %v6956_v58 = vadd.f32 %v1267_v34, %v6887_v23  ;;  %1967 = vmatmul.mubr.f32.gmra.mrb[150].mxu1 %v6671_v10  ;;  %v1269_v6 = vpop.f32.mrb[45].mxu1  ;;  %5583 = vmatpush1.bf16.msra.mxu0 %v5582_v33  ;;  %v2658_v33 = vld [vmem:[#allocation8 + $0x250] sm:$0xff]  ;;  %v2677_v21 = vld [vmem:[#allocation8 + $0x2e8] sm:$0xff] }
 0x1bc   : > { %v862_v52 = vpop.f32.mrb[30].mxu0  ;;  %1971 = vmatprep.mubr.f32.mxu1 %v1682_v47  ;;  %5584 = vmatprep.subr.bf16.mxu0 %v8340_v0 }
 0x1bd   : > { %v864_v29 = vpop.f32.mrb[31].mxu0  ;;  %v6961_v44 = vadd.f32 %v6824_v41, %v862_v52  ;;  %v2675_v52 = vld [vmem:[#allocation8 + $0x2d8] sm:$0xff] }
 0x1be   : > { %v1272_v46 = vpop.f32.mrb[46].mxu1 }
 0x1bf   : > { %v6964_v23 = vadd.f32 %v1272_v46, %v6896_v35  ;;  %1972 = vmatmul.mubr.f32.gmra.mrb[152].mxu1 %v6677_v11  ;;  %v1274_v10 = vpop.f32.mrb[47].mxu1  ;;  %5586 = vmatpush1.bf16.msra.mxu0 %v5585_v49  ;;  %v2659_v46 = vld [vmem:[#allocation8 + $0x258] sm:$0xff] }
 0x1c0   : > { %v867_v15 = vpop.f32.mrb[32].mxu0  ;;  %1976 = vmatprep.mubr.f32.mxu1 %v1683_v48  ;;  %5587 = vmatprep.subr.bf16.mxu0 %v8340_v0  ;;  %v1653_v48 = vld [vmem:[#allocation2 + $0x22f] sm:$0xff] }
 0x1c1   : > { %v6969_v41 = vadd.f32 %v6836_v55, %v867_v15  ;;  %v869_v17 = vpop.f32.mrb[33].mxu0  ;;  %v5615_v55 = vpack.c.bf16 %v2673_v43, %v2672_v39 }
 0x1c2   : > { %v1277_v31 = vpop.f32.mrb[48].mxu1  ;;  %v2660_v17 = vld [vmem:[#allocation8 + $0x260] sm:$0xff] }
 0x1c3   : > { %v6972_v35 = vadd.f32 %v1277_v31, %v6905_v4  ;;  %1977 = vmatmul.mubr.f32.gmra.mrb[154].mxu1 %v6683_v19  ;;  %v1279_v11 = vpop.f32.mrb[49].mxu1  ;;  %v5588_v4 = vpack.c.bf16 %v2657_v51, %v2656_v59  ;;  %5616 = vmatprep.subr.bf16.mxu1 %v5615_v55  ;;  %v2661_v31 = vld [vmem:[#allocation8 + $0x268] sm:$0xff]  ;;  %v2662_v59 = vld [vmem:[#allocation8 + $0x270] sm:$0xff] }
 0x1c4   : > { %v872_v25 = vpop.f32.mrb[34].mxu0  ;;  %1981 = vmatprep.mubr.f32.mxu1 %v5864_v40  ;;  %5618 = vmatpush3.bf16.msra.mxu1 %v5615_v55  ;;  %v5594_v43 = vpack.c.bf16 %v2661_v31, %v2660_v17  ;;  %v2679_v55 = vld [vmem:[#allocation8 + $0x2f8] sm:$0xff] }
 0x1c5   : > { %v6976_v47 = vadd.f32 %v6833_v56, %v872_v25  ;;  %v874_v34 = vpop.f32.mrb[35].mxu0  ;;  %5589 = vmatpush1.bf16.msra.mxu0 %v5588_v4  ;;  %v5619_v56 = vpack.c.bf16 %v2675_v52, %v2674_v38  ;;  %v2663_v4 = vld [vmem:[#allocation8 + $0x278] sm:$0xff] }
 0x1c6   : > { %v1282_v19 = vpop.f32.mrb[50].mxu1  ;;  %5590 = vmatprep.subr.bf16.mxu0 %v8340_v0 }
 0x1c7   : > { %v6980_v6 = vadd.f32 %v1282_v19, %v6913_v26  ;;  %1982 = vmatmul.mubr.f32.gmra.mrb[156].mxu1 %v1652_v54  ;;  %v1284_v24 = vpop.f32.mrb[51].mxu1  ;;  %v5591_v26 = vpack.c.bf16 %v2659_v46, %v2658_v33  ;;  %5620 = vmatprep.subr.bf16.mxu1 %v5619_v56  ;;  %v2678_v54 = vld [vmem:[#allocation8 + $0x2f0] sm:$0xff] }
 0x1c8   : > { %v877_v29 = vpop.f32.mrb[36].mxu0  ;;  %1986 = vmatprep.mubr.f32.mxu1 %v5864_v40  ;;  %5622 = vmatpush3.bf16.msra.mxu1 %v5619_v56  ;;  %v5627_v34 = vpack.c.bf16 %v2679_v55, %v2678_v54  ;;  %v5597_v24 = vpack.c.bf16 %v2663_v4, %v2662_v59 }
 0x1c9   : > { %v6983_v10 = vadd.f32 %v6846_v28, %v877_v29  ;;  %v879_v1 = vpop.f32.mrb[37].mxu0  ;;  %5592 = vmatpush1.bf16.msra.mxu0 %v5591_v26  ;;  %v5623_v28 = vpack.c.bf16 %v2677_v21, %v2676_v42 }
 0x1ca   : > { %v1287_v63 = vpop.f32.mrb[52].mxu1  ;;  %5593 = vmatprep.subr.bf16.mxu0 %v8340_v0 }
 0x1cb   : > { %v6987_v12 = vadd.f32 %v1287_v63, %v6921_v30  ;;  %1987 = vmatmul.mubr.f32.gmra.mrb[158].mxu1 %v1653_v48  ;;  %v1289_v15 = vpop.f32.mrb[53].mxu1  ;;  %5624 = vmatprep.subr.bf16.mxu1 %v5623_v28 }
 0x1cc   : > { %v882_v49 = vpop.f32.mrb[38].mxu0  ;;  %5626 = vmatpush3.bf16.msra.mxu1 %v5623_v28 }
 0x1cd   : > { %v6991_v11 = vadd.f32 %v6843_v57, %v882_v49  ;;  %v884_v39 = vpop.f32.mrb[39].mxu0  ;;  %5595 = vmatpush1.bf16.msra.mxu0 %v5594_v43  ;;  %5628 = vmatprep.subr.bf16.mxu1 %v5627_v34  ;;  %v2520_v43 = vld [vmem:[#allocation8 + $0x108] sm:$0xff] }
 0x1ce   : > { %v1292_v25 = vpop.f32.mrb[54].mxu1  ;;  %5596 = vmatprep.subr.bf16.mxu0 %v8340_v0  ;;  %v2519_v39 = vld [vmem:[#allocation8 + $0x100] sm:$0xff] }
 0x1cf   : > { %v6994_v30 = vadd.f32 %v1292_v25, %v6929_v36  ;;  %v1294_v40 = vpop.f32.mrb[55].mxu1 }
 0x1d0   : > { %v887_v51 = vpop.f32.mrb[40].mxu0  ;;  %5630 = vmatpush3.bf16.msra.mxu1 %v5627_v34  ;;  %v7015_v40 = vpack.c.bf16 %v2520_v43, %v2519_v39 }
 0x1d1   : > { %v1113_v57 = vadd.f32 %v6856_v18, %v887_v51  ;;  %v889_v19 = vpop.f32.mrb[41].mxu0  ;;  %5598 = vmatpush1.bf16.msra.mxu0 %v5597_v24  ;;  %5631 = vmatprep.subr.bf16.mxu1 %v8340_v0 }
 0x1d2   : > { %v1297_v38 = vpop.f32.mrb[56].mxu1  ;;  %5680 = vmatprep.subr.bf16.mxu0 %v7015_v40 }
 0x1d3   : > { %v6999_v36 = vadd.f32 %v1297_v38, %v6937_v2  ;;  %v1299_v52 = vpop.f32.mrb[57].mxu1 }
 0x1d4   : > { %v892_v33 = vpop.f32.mrb[42].mxu0 }
 0x1d5   : > { %v1118_v29 = vadd.f32 %v6853_v13, %v892_v33  ;;  %v894_v48 = vpop.f32.mrb[43].mxu0 }
 0x1d6   : > { %v1302_v56 = vpop.f32.mrb[58].mxu1 }
 0x1d7   : > { %v7004_v46 = vadd.f32 %v1302_v56, %v6945_v37  ;;  %v1304_v18 = vpop.f32.mrb[59].mxu1 }
 0x1d8   : > { %v897_v1 = vpop.f32.mrb[44].mxu0 }
 0x1d9   : > { %v1123_v26 = vadd.f32 %v6866_v50, %v897_v1  ;;  %v899_v63 = vpop.f32.mrb[45].mxu0 }
 0x1da   : > { %v1307_v2 = vpop.f32.mrb[60].mxu1 }
 0x1db   : > { %v7008_v15 = vadd.f32 %v1307_v2, %v6953_v62  ;;  %v1309_v42 = vpop.f32.mrb[61].mxu1 }
 0x1dc   : > { %v902_v21 = vpop.f32.mrb[46].mxu0 }
 0x1dd   : > { %v1128_v13 = vadd.f32 %v6863_v7, %v902_v21  ;;  %v904_v17 = vpop.f32.mrb[47].mxu0 }
 0x1de   : > { %v1312_v49 = vpop.f32.mrb[62].mxu1 }
 0x1df   : > { %v7012_v28 = vadd.f32 %v1312_v49, %v6961_v44  ;;  %v1314_v37 = vpop.f32.mrb[63].mxu1 }
 0x1e0   : > { %v907_v31 = vpop.f32.mrb[48].mxu0 }
 0x1e1   : > { %v1133_v50 = vadd.f32 %v6875_v9, %v907_v31  ;;  %v909_v25 = vpop.f32.mrb[49].mxu0 }
 0x1e2   : > { %v1317_v62 = vpop.f32.mrb[64].mxu1 }
 0x1e3   : > { %v7018_v54 = vadd.f32 %v1317_v62, %v6969_v41  ;;  %v1319_v55 = vpop.f32.mrb[65].mxu1 }
 0x1e4   : > { %v912_v7 = vpop.f32.mrb[50].mxu0 }
 0x1e5   : > { %v1138_v44 = vadd.f32 %v6872_v27, %v912_v7  ;;  %v914_v59 = vpop.f32.mrb[51].mxu0 }
 0x1e6   : > { %v1322_v51 = vpop.f32.mrb[66].mxu1 }
 0x1e7   : > { %v7023_v34 = vadd.f32 %v1322_v51, %v6976_v47  ;;  %v1324_v4 = vpop.f32.mrb[67].mxu1 }
 0x1e8   : > { %v917_v9 = vpop.f32.mrb[52].mxu0 }
 0x1e9   : > { %v1143_v19 = vadd.f32 %v6883_v14, %v917_v9  ;;  %v919_v24 = vpop.f32.mrb[53].mxu0 }
 0x1ea   : > { %v1327_v38 = vpop.f32.mrb[68].mxu1 }
 0x1eb   : > { %v7027_v41 = vadd.f32 %v1327_v38, %v6983_v10  ;;  %v1329_v52 = vpop.f32.mrb[69].mxu1 }
 0x1ec   : > { %v922_v33 = vpop.f32.mrb[54].mxu0 }
 0x1ed   : > { %v1148_v48 = vadd.f32 %v6880_v20, %v922_v33  ;;  %v924_v56 = vpop.f32.mrb[55].mxu0 }
 0x1ee   : > { %v1332_v27 = vpop.f32.mrb[70].mxu1 }
 0x1ef   : > { %v7031_v18 = vadd.f32 %v1332_v27, %v6991_v11  ;;  %v1334_v47 = vpop.f32.mrb[71].mxu1 }
 0x1f0   : > { %v927_v1 = vpop.f32.mrb[56].mxu0 }
 0x1f1   : > { %v1153_v63 = vadd.f32 %v6892_v53, %v927_v1  ;;  %v929_v2 = vpop.f32.mrb[57].mxu0 }
 0x1f2   : > { %v1337_v14 = vpop.f32.mrb[72].mxu1 }
 0x1f3   : > { %v7034_v42 = vadd.f32 %v1337_v14, %v1113_v57  ;;  %v1339_v21 = vpop.f32.mrb[73].mxu1 }
 0x1f4   : > { %v932_v10 = vpop.f32.mrb[58].mxu0 }
 0x1f5   : > { %v1158_v17 = vadd.f32 %v6889_v16, %v932_v10  ;;  %v934_v49 = vpop.f32.mrb[59].mxu0 }
 0x1f6   : > { %v1342_v37 = vpop.f32.mrb[74].mxu1 }
 0x1f7   : > { %v7037_v20 = vadd.f32 %v1342_v37, %v1118_v29  ;;  %v1344_v31 = vpop.f32.mrb[75].mxu1 }
 0x1f8   : > { %v937_v39 = vpop.f32.mrb[60].mxu0 }
 0x1f9   : > { %v1163_v11 = vadd.f32 %v6901_v45, %v937_v39  ;;  %v939_v43 = vpop.f32.mrb[61].mxu0 }
 0x1fa   : > { %v1347_v25 = vpop.f32.mrb[76].mxu1 }
 0x1fb   : > { %v7040_v62 = vadd.f32 %v1347_v25, %v1123_v26  ;;  %v1349_v53 = vpop.f32.mrb[77].mxu1 }
 0x1fc   : > { %v942_v55 = vpop.f32.mrb[62].mxu0 }
 0x1fd   : > { %v1168_v57 = vadd.f32 %v6898_v22, %v942_v55  ;;  %v944_v7 = vpop.f32.mrb[63].mxu0 }
 0x1fe   : > { %v1352_v59 = vpop.f32.mrb[78].mxu1 }
 0x1ff   : > { %v7043_v51 = vadd.f32 %v1352_v59, %v1128_v13  ;;  %v1354_v16 = vpop.f32.mrb[79].mxu1 }
 0x200   : > { %v4945_v4 = vpop.f32.mrb[64].mxu0 }
 0x201   : > { %v7046_v29 = vadd.f32 %v4945_v4, %v6916_v60  ;;  %v1462_v9 = vpop.f32.mrb[65].mxu0 }
 0x202   : > { %v1357_v24 = vpop.f32.mrb[80].mxu1  ;;  %v7049_v45 = vadd.f32 %v1462_v9, %v6908_v32 }
 0x203   : > { %v7051_v26 = vadd.f32 %v1357_v24, %v1133_v50  ;;  %v1359_v38 = vpop.f32.mrb[81].mxu1 }
 0x204   : > { %v4948_v52 = vpop.f32.mrb[66].mxu0 }
 0x205   : > { %v7054_v22 = vadd.f32 %v4948_v52, %v6932_v3  ;;  %v1472_v33 = vpop.f32.mrb[67].mxu0 }
 0x206   : > { %v1362_v13 = vpop.f32.mrb[82].mxu1  ;;  %v7057_v56 = vadd.f32 %v1472_v33, %v6924_v61 }
 0x207   : > { %v7059_v27 = vadd.f32 %v1362_v13, %v1138_v44  ;;  %v1364_v60 = vpop.f32.mrb[83].mxu1 }
 0x208   : > { %v4951_v47 = vpop.f32.mrb[68].mxu0 }
 0x209   : > { %v7062_v1 = vadd.f32 %v4951_v47, %v6948_v5  ;;  %v1482_v32 = vpop.f32.mrb[69].mxu0 }
 0x20a   : > { %v1367_v50 = vpop.f32.mrb[84].mxu1  ;;  %v7065_v2 = vadd.f32 %v1482_v32, %v6940_v8 }
 0x20b   : > { %v7067_v14 = vadd.f32 %v1367_v50, %v1143_v19  ;;  %v1369_v3 = vpop.f32.mrb[85].mxu1 }
 0x20c   : > { %v4954_v21 = vpop.f32.mrb[70].mxu0 }
 0x20d   : > { %v7070_v10 = vadd.f32 %v4954_v21, %v6964_v23  ;;  %v1492_v61 = vpop.f32.mrb[71].mxu0 }
 0x20e   : > { %v1372_v44 = vpop.f32.mrb[86].mxu1  ;;  %v7073_v49 = vadd.f32 %v1492_v61, %v6956_v58 }
 0x20f   : > { %v1373_v37 = vadd.f32 %v1372_v44, %v1148_v48  ;;  %v1374_v5 = vpop.f32.mrb[87].mxu1 }
 0x210   : > { %v4957_v31 = vpop.f32.mrb[72].mxu0 }
 0x211   : > { %v7076_v39 = vadd.f32 %v4957_v31, %v6980_v6  ;;  %v1502_v8 = vpop.f32.mrb[73].mxu0 }
 0x212   : > { %v1377_v43 = vpop.f32.mrb[88].mxu1  ;;  %v7079_v19 = vadd.f32 %v1502_v8, %v6972_v35 }
 0x213   : > { %v1378_v25 = vadd.f32 %v1377_v43, %v1153_v63  ;;  %v1379_v53 = vpop.f32.mrb[89].mxu1 }
 0x214   : > { %v4960_v23 = vpop.f32.mrb[74].mxu0 }
 0x215   : > { %v7082_v55 = vadd.f32 %v4960_v23, %v6994_v30  ;;  %v1512_v7 = vpop.f32.mrb[75].mxu0 }
 0x216   : > { %v1382_v58 = vpop.f32.mrb[90].mxu1  ;;  %v7085_v48 = vadd.f32 %v1512_v7, %v6987_v12 }
 0x217   : > { %v1383_v59 = vadd.f32 %v1382_v58, %v1158_v17  ;;  %v1384_v16 = vpop.f32.mrb[91].mxu1 }
 0x218   : > { %v4963_v6 = vpop.f32.mrb[76].mxu0 }
 0x219   : > { %v7088_v4 = vadd.f32 %v4963_v6, %v7004_v46  ;;  %v1522_v9 = vpop.f32.mrb[77].mxu0 }
 0x21a   : > { %v1387_v35 = vpop.f32.mrb[92].mxu1  ;;  %v7091_v63 = vadd.f32 %v1522_v9, %v6999_v36 }
 0x21b   : > { %v1388_v24 = vadd.f32 %v1387_v35, %v1163_v11  ;;  %v1389_v38 = vpop.f32.mrb[93].mxu1 }
 0x21c   : > { %v4966_v30 = vpop.f32.mrb[78].mxu0 }
 0x21d   : > { %v7094_v52 = vadd.f32 %v4966_v30, %v7012_v28  ;;  %v1532_v33 = vpop.f32.mrb[79].mxu0 }
 0x21e   : > { %v1392_v12 = vpop.f32.mrb[94].mxu1  ;;  %v7097_v17 = vadd.f32 %v1532_v33, %v7008_v15 }
 0x21f   : > { %v1393_v13 = vadd.f32 %v1392_v12, %v1168_v57  ;;  %v1394_v60 = vpop.f32.mrb[95].mxu1 }
 0x220   : > { %v4969_v46 = vpop.f32.mrb[80].mxu0 }
 0x221   : > { %v7100_v47 = vadd.f32 %v4969_v46, %v7023_v34  ;;  %v1542_v32 = vpop.f32.mrb[81].mxu0 }
 0x222   : > { %v7103_v36 = vadd.f32 %v1542_v32, %v7018_v54  ;;  %v1833_v11 = vpop.f32.mrb[96].mxu1 }
 0x223   : > { %v1835_v50 = vpop.f32.mrb[97].mxu1 }
 0x224   : > { %v4972_v3 = vpop.f32.mrb[82].mxu0 }
 0x225   : > { %v7106_v28 = vadd.f32 %v4972_v3, %v7031_v18  ;;  %v1552_v21 = vpop.f32.mrb[83].mxu0 }
 0x226   : > { %v7109_v15 = vadd.f32 %v1552_v21, %v7027_v41  ;;  %v1838_v57 = vpop.f32.mrb[98].mxu1 }
 0x227   : > { %v1840_v61 = vpop.f32.mrb[99].mxu1 }
 0x228   : > { %v4975_v44 = vpop.f32.mrb[84].mxu0 }
 0x229   : > { %v7112_v34 = vadd.f32 %v4975_v44, %v7037_v20  ;;  %v1562_v5 = vpop.f32.mrb[85].mxu0 }
 0x22a   : > { %v7115_v54 = vadd.f32 %v1562_v5, %v7034_v42  ;;  %v1843_v31 = vpop.f32.mrb[100].mxu1 }
 0x22b   : > { %v1845_v8 = vpop.f32.mrb[101].mxu1 }
 0x22c   : > { %v4978_v43 = vpop.f32.mrb[86].mxu0 }
 0x22d   : > { %v7118_v18 = vadd.f32 %v4978_v43, %v7043_v51  ;;  %v1572_v53 = vpop.f32.mrb[87].mxu0 }
 0x22e   : > { %v7121_v41 = vadd.f32 %v1572_v53, %v7040_v62  ;;  %v1848_v23 = vpop.f32.mrb[102].mxu1 }
 0x22f   : > { %v1850_v7 = vpop.f32.mrb[103].mxu1 }
 0x230   : > { %v4981_v58 = vpop.f32.mrb[88].mxu0 }
 0x231   : > { %v7124_v20 = vadd.f32 %v4981_v58, %v7059_v27  ;;  %v1582_v16 = vpop.f32.mrb[89].mxu0 }
 0x232   : > { %v7127_v42 = vadd.f32 %v1582_v16, %v7051_v26  ;;  %v1853_v6 = vpop.f32.mrb[104].mxu1 }
 0x233   : > { %v1855_v9 = vpop.f32.mrb[105].mxu1 }
 0x234   : > { %v4984_v35 = vpop.f32.mrb[90].mxu0 }
 0x235   : > { %v7129_v38 = vadd.f32 %v4984_v35, %v1373_v37  ;;  %v1592_v51 = vpop.f32.mrb[91].mxu0 }
 0x236   : > { %v7132_v30 = vadd.f32 %v1592_v51, %v7067_v14  ;;  %v1858_v62 = vpop.f32.mrb[106].mxu1 }
 0x237   : > { %v1860_v33 = vpop.f32.mrb[107].mxu1 }
 0x238   : > { %v4987_v12 = vpop.f32.mrb[92].mxu0 }
 0x239   : > { %v7134_v60 = vadd.f32 %v4987_v12, %v1383_v59  ;;  %v1602_v27 = vpop.f32.mrb[93].mxu0  ;;  %v7145_v59 = vld [vmem:[%s8320_s3] ss:$0 sm:$0xff] }
 0x23a   : > { %v7136_v46 = vadd.f32 %v1602_v27, %v1378_v25  ;;  %v1863_v32 = vpop.f32.mrb[108].mxu1 }
 0x23b   : > { %v1865_v26 = vpop.f32.mrb[109].mxu1 }
 0x23c   : > { %v4990_v50 = vpop.f32.mrb[94].mxu0 }
 0x23d   : > { %v7138_v3 = vadd.f32 %v4990_v50, %v1393_v13  ;;  %v1612_v21 = vpop.f32.mrb[95].mxu0 }
 0x23e   : > { %v7140_v37 = vadd.f32 %v1612_v21, %v1388_v24  ;;  %v1868_v61 = vpop.f32.mrb[110].mxu1  ;;  %v7151_v24 = vld [vmem:[%s8321_s4] ss:$0 sm:$0xff] }
 0x23f   : > { %v1870_v44 = vpop.f32.mrb[111].mxu1 }
 0x240   : > { %v5025_v14 = vpop.f32.mrb[96].mxu0 }
 0x241   : > { %v2064_v5 = vadd.f32 %v5025_v14, %v1838_v57  ;;  %v2058_v8 = vpop.f32.mrb[97].mxu0 }
 0x242   : > { %v2059_v25 = vadd.f32 %v2058_v8, %v1833_v11  ;;  %v1873_v43 = vpop.f32.mrb[112].mxu1 }
 0x243   : > { %v2218_v53 = vadd.f32 %v2064_v5, %v7046_v29  ;;  %v1875_v7 = vpop.f32.mrb[113].mxu1 }
 0x244   : > { %v2217_v13 = vadd.f32 %v2059_v25, %v7049_v45  ;;  %v5028_v58 = vpop.f32.mrb[98].mxu0 }
 0x245   : > { %v2257_v57 = vmul.f32 %v7145_v59, %v2218_v53  ;;  %v2074_v16 = vadd.f32 %v5028_v58, %v1848_v23  ;;  %v2068_v9 = vpop.f32.mrb[99].mxu0 }
 0x246   : > { %v2256_v35 = vmul.f32 %v7145_v59, %v2217_v13  ;;  %v2069_v51 = vadd.f32 %v2068_v9, %v1843_v31  ;;  %v1878_v11 = vpop.f32.mrb[114].mxu1 }
 0x247   : > { %v7157_v33 = vadd.f32 %v7151_v24, %v2257_v57  ;;  %v2220_v29 = vadd.f32 %v2074_v16, %v7054_v22  ;;  %v1880_v12 = vpop.f32.mrb[115].mxu1 }
 0x248   : > { %v2295_v27 = vadd.f32 %v7151_v24, %v2256_v35  ;;  %v2219_v26 = vadd.f32 %v2069_v51, %v7057_v56  ;;  %v5031_v45 = vpop.f32.mrb[100].mxu0  ;;  %v2487_v12 = vld [vmem:[#allocation8] sm:$0xff] }
 0x249   : > { %v2328_v50 = vmax.f32 %v7157_v33, 0.0  ;;  %v2259_v23 = vmul.f32 %v7145_v59, %v2220_v29  ;;  %v2084_v21 = vadd.f32 %v5031_v45, %v1858_v62  ;;  %v2078_v44 = vpop.f32.mrb[101].mxu0  ;;  %v2521_v45 = vld [vmem:[#allocation8 + $0x110] sm:$0xff] }
 0x24a   : > { %v2327_v14 = vmax.f32 %v2295_v27, 0.0  ;;  %v2258_v31 = vmul.f32 %v7145_v59, %v2219_v26  ;;  %v2079_v5 = vadd.f32 %v2078_v44, %v1853_v6  ;;  %v7165_v8 = vpop.f32.mrb[116].mxu1  ;;  %v2488_v27 = vld [vmem:[#allocation8 + $0x8] sm:$0xff] }
 0x24b   : > { %2360 = vst [vmem:[#allocation2 + $0x30] sm:$0xff] %v2328_v50  ;;  %v7170_v22 = vadd.f32 %v7151_v24, %v2259_v23  ;;  %v2222_v56 = vadd.f32 %v2084_v21, %v7062_v1  ;;  %v1885_v25 = vpop.f32.mrb[117].mxu1  ;;  %v2522_v23 = vld [vmem:[#allocation8 + $0x118] sm:$0xff] }
 0x24c   : > { %2359 = vst [vmem:[#allocation2 + $0x28] sm:$0xff] %v2327_v14  ;;  %v7174_v53 = vadd.f32 %v7151_v24, %v2258_v31  ;;  %v2221_v62 = vadd.f32 %v2079_v5, %v7065_v2  ;;  %v5034_v7 = vpop.f32.mrb[102].mxu0  ;;  %2744 = vmatprep.mubr.f32.mxu0 %v2327_v14 }
 0x24d   : > { %v2330_v6 = vmax.f32 %v7170_v22, 0.0  ;;  %v2261_v13 = vmul.f32 %v7145_v59, %v2222_v56  ;;  %v2094_v58 = vadd.f32 %v5034_v7, %v1868_v61  ;;  %v2088_v57 = vpop.f32.mrb[103].mxu0  ;;  %v2489_v7 = vld [vmem:[#allocation8 + $0x10] sm:$0xff] }
 0x24e   : > { %v2329_v16 = vmax.f32 %v7174_v53, 0.0  ;;  %v2260_v9 = vmul.f32 %v7145_v59, %v2221_v62  ;;  %v2089_v1 = vadd.f32 %v2088_v57, %v1863_v32  ;;  %v1888_v35 = vpop.f32.mrb[118].mxu1  ;;  %v5632_v62 = vpack.c.bf16 %v2488_v27, %v2487_v12  ;;  %v2524_v27 = vld [vmem:[#allocation8 + $0x128] sm:$0xff] }
 0x24f   : > { %2362 = vst [vmem:[#allocation2 + $0x50] sm:$0xff] %v2330_v6  ;;  %v7184_v51 = vadd.f32 %v7151_v24, %v2261_v13  ;;  %v2224_v2 = vadd.f32 %v2094_v58, %v7070_v10  ;;  %v1890_v29 = vpop.f32.mrb[119].mxu1 }
 0x250   : > { %2361 = vst [vmem:[#allocation2 + $0x48] sm:$0xff] %v2329_v16  ;;  %v7190_v61 = vadd.f32 %v7151_v24, %v2260_v9  ;;  %v2223_v32 = vadd.f32 %v2089_v1, %v7073_v49  ;;  %v5037_v26 = vpop.f32.mrb[104].mxu0  ;;  %v5683_v9 = vpack.c.bf16 %v2522_v23, %v2521_v45  ;;  %v2490_v1 = vld [vmem:[#allocation8 + $0x18] sm:$0xff] }
 0x251   : > { %v2332_v21 = vmax.f32 %v7184_v51, 0.0  ;;  %v2263_v44 = vmul.f32 %v7145_v59, %v2224_v2  ;;  %v2104_v14 = vadd.f32 %v5037_v26, %v1878_v11  ;;  %v2098_v10 = vpop.f32.mrb[105].mxu0  ;;  %v2500_v51 = vld [vmem:[#allocation8 + $0x68] sm:$0xff] }
 0x252   : > { %v2331_v31 = vmax.f32 %v7190_v61, 0.0  ;;  %v2262_v5 = vmul.f32 %v7145_v59, %v2223_v32  ;;  %v2099_v56 = vadd.f32 %v2098_v10, %v1873_v43  ;;  %v1893_v25 = vpop.f32.mrb[120].mxu1  ;;  %v2600_v12 = vld [vmem:[#allocation2 + $0x31] sm:$0xff] }
 0x253   : > { %2364 = vst [vmem:[#allocation2 + $0x70] sm:$0xff] %v2332_v21  ;;  %v7200_v49 = vadd.f32 %v7151_v24, %v2263_v44  ;;  %v2226_v13 = vadd.f32 %v2104_v14, %v7076_v39  ;;  %v2599_v58 = vld [vmem:[#allocation2 + $0x29] sm:$0xff]  ;;  %v1895_v11 = vpop.f32.mrb[121].mxu1  ;;  %v2523_v39 = vld [vmem:[#allocation8 + $0x120] sm:$0xff] }
 0x254   : > { %v7203_v57 = vld [vmem:[#allocation2 + $0x27] sm:$0xff]  ;;  %2363 = vst [vmem:[#allocation2 + $0x68] sm:$0xff] %v2331_v31  ;;  %v7208_v43 = vadd.f32 %v7151_v24, %v2262_v5  ;;  %v2225_v2 = vadd.f32 %v2099_v56, %v7079_v19  ;;  %v5040_v29 = vpop.f32.mrb[106].mxu0  ;;  %5103 = vmatprep.mubr.f32.mxu1 %v2599_v58  ;;  %v5635_v5 = vpack.c.bf16 %v2490_v1, %v2489_v7  ;;  %v2525_v1 = vld [vmem:[#allocation8 + $0x130] sm:$0xff] }
 0x255   : > { %2745 = vmatmul.mubr.f32.vlgmr.msra.gmra.mrb[128].mxu0 %v7203_v57  ;;  %v8337_v32 = vmax.f32 %v7200_v49, 0.0  ;;  %v2265_v26 = vmul.f32 %v7145_v59, %v2226_v13  ;;  %v2114_v45 = vadd.f32 %v5040_v29, %v1888_v35  ;;  %v2108_v23 = vpop.f32.mrb[107].mxu0  ;;  %5104 = vmatmul.mubr.f32.vlgmr.msra.gmra.mrb[160].mxu1 %v2600_v12  ;;  %v7220_v56 = vld [vmem:[#allocation8 + $0x20] sm:$0xff]  ;;  %v7228_v13 = vld [vmem:[#allocation2 + $0x2f] sm:$0xff] }
 0x256   : > { %2749 = vmatprep.mubr.f32.mxu0 %v2328_v50  ;;  %v2333_v44 = vmax.f32 %v7208_v43, 0.0  ;;  %v2264_v19 = vmul.f32 %v7145_v59, %v2225_v2  ;;  %v2109_v14 = vadd.f32 %v2108_v23, %v7165_v8  ;;  %5682 = vmatpush3.bf16.msra.mxu0 %v7015_v40  ;;  %v1898_v10 = vpop.f32.mrb[122].mxu1  ;;  %v5687_v8 = vpack.c.bf16 %v2524_v27, %v2523_v39  ;;  %v2492_v40 = vld [vmem:[#allocation8 + $0x28] sm:$0xff]  ;;  %v2526_v2 = vld [vmem:[#allocation8 + $0x138] sm:$0xff] }
 0x257   : > { %5633 = vmatpush1.bf16.msra.mxu1 %v5632_v62  ;;  %2366 = vst [vmem:[#allocation2 + $0x90] sm:$0xff] %v8337_v32  ;;  %v7225_v35 = vadd.f32 %v7151_v24, %v2265_v26  ;;  %v2228_v33 = vadd.f32 %v2114_v45, %v7082_v55  ;;  %v2601_v50 = vld [vmem:[#allocation2 + $0x49] sm:$0xff]  ;;  %v1900_v58 = vpop.f32.mrb[123].mxu1  ;;  %5684 = vmatprep.subr.bf16.mxu0 %v5683_v9  ;;  %v2602_v55 = vld [vmem:[#allocation2 + $0x51] sm:$0xff] }
 0x258   : > { %5634 = vmatprep.subr.bf16.mxu1 %v8340_v0  ;;  %2365 = vst [vmem:[#allocation2 + $0x88] sm:$0xff] %v2333_v44  ;;  %v7234_v62 = vadd.f32 %v7151_v24, %v2264_v19  ;;  %v2227_v7 = vadd.f32 %v2109_v14, %v7085_v48  ;;  %v5043_v11 = vpop.f32.mrb[108].mxu0  ;;  %5106 = vmatprep.mubr.f32.mxu1 %v2601_v50  ;;  %v2493_v14 = vld [vmem:[#allocation8 + $0x30] sm:$0xff]  ;;  %v7251_v50 = vld [vmem:[#allocation2 + $0x47] sm:$0xff] }
 0x259   : > { %2750 = vmatmul.mubr.f32.gmra.mrb[130].mxu0 %v7228_v13  ;;  %v8333_v29 = vmax.f32 %v7225_v35, 0.0  ;;  %v2267_v12 = vmul.f32 %v7145_v59, %v2228_v33  ;;  %v2124_v39 = vadd.f32 %v5043_v11, %v1898_v10  ;;  %v2118_v27 = vpop.f32.mrb[109].mxu0  ;;  %5107 = vmatmul.mubr.f32.gmra.mrb[162].mxu1 %v2602_v55  ;;  %v5638_v19 = vpack.c.bf16 %v2492_v40, %v7220_v56  ;;  %v2527_v40 = vld [vmem:[#allocation8 + $0x140] sm:$0xff] }
 0x25a   : > { %2754 = vmatprep.mubr.f32.mxu0 %v2329_v16  ;;  %v8336_v26 = vmax.f32 %v7234_v62, 0.0  ;;  %v2266_v48 = vmul.f32 %v7145_v59, %v2227_v7  ;;  %v2119_v45 = vadd.f32 %v2118_v27, %v1893_v25  ;;  %v1903_v23 = vpop.f32.mrb[124].mxu1  ;;  %5686 = vmatpush3.bf16.msra.mxu0 %v5683_v9  ;;  %v2494_v25 = vld [vmem:[#allocation8 + $0x38] sm:$0xff]  ;;  %v5691_v9 = vpack.c.bf16 %v2526_v2, %v2525_v1  ;;  %v2528_v7 = vld [vmem:[#allocation8 + $0x148] sm:$0xff] }
 0x25b   : > { %5636 = vmatpush1.bf16.msra.mxu1 %v5635_v5  ;;  %2368 = vst [vmem:[#allocation2 + $0xb0] sm:$0xff] %v8333_v29  ;;  %v7248_v10 = vadd.f32 %v7151_v24, %v2267_v12  ;;  %v2230_v53 = vadd.f32 %v2124_v39, %v7088_v4  ;;  %v1905_v16 = vpop.f32.mrb[125].mxu1  ;;  %v2603_v33 = vld [vmem:[#allocation2 + $0x69] sm:$0xff]  ;;  %5688 = vmatprep.subr.bf16.mxu0 %v5687_v8  ;;  %v7261_v4 = vld [vmem:[#allocation2 + $0x71] sm:$0xff] }
 0x25c   : > { %5637 = vmatprep.subr.bf16.mxu1 %v8340_v0  ;;  %2367 = vst [vmem:[#allocation2 + $0xa8] sm:$0xff] %v8336_v26  ;;  %v7257_v5 = vadd.f32 %v7151_v24, %v2266_v48  ;;  %v2229_v56 = vadd.f32 %v2119_v45, %v7091_v63  ;;  %v5046_v58 = vpop.f32.mrb[110].mxu0  ;;  %5109 = vmatprep.mubr.f32.mxu1 %v2603_v33  ;;  %v2495_v48 = vld [vmem:[#allocation8 + $0x40] sm:$0xff] }
 0x25d   : > { %2755 = vmatmul.mubr.f32.gmra.mrb[132].mxu0 %v7251_v50  ;;  %v8329_v11 = vmax.f32 %v7248_v10, 0.0  ;;  %v2269_v55 = vmul.f32 %v7145_v59, %v2230_v53  ;;  %v2128_v1 = vpop.f32.mrb[111].mxu0  ;;  %5110 = vmatmul.mubr.f32.gmra.mrb[164].mxu1 %v7261_v4  ;;  %v5641_v27 = vpack.c.bf16 %v2494_v25, %v2493_v14  ;;  %v7302_v61 = vld [vmem:[#allocation2 + $0x67] sm:$0xff] }
 0x25e   : > { %2759 = vmatprep.mubr.f32.mxu0 %v2330_v6  ;;  %v8332_v63 = vmax.f32 %v7257_v5, 0.0  ;;  %v2268_v2 = vmul.f32 %v7145_v59, %v2229_v56  ;;  %v1908_v12 = vpop.f32.mrb[126].mxu1  ;;  %v2129_v39 = vadd.f32 %v2128_v1, %v1903_v23  ;;  %5690 = vmatpush3.bf16.msra.mxu0 %v5687_v8  ;;  %v7277_v6 = vld [vmem:[#allocation2 + $0x4f] sm:$0xff]  ;;  %v5695_v8 = vpack.c.bf16 %v2528_v7, %v2527_v40 }
 0x25f   : > { %5639 = vmatpush1.bf16.msra.mxu1 %v5638_v19  ;;  %2370 = vst [vmem:[#allocation2 + $0xd0] sm:$0xff] %v8329_v11  ;;  %v7273_v45 = vadd.f32 %v7151_v24, %v2269_v55  ;;  %v2134_v53 = vadd.f32 %v5046_v58, %v1908_v12  ;;  %v1910_v16 = vpop.f32.mrb[127].mxu1  ;;  %v7275_v22 = vld [vmem:[#allocation2 + $0x89] sm:$0xff]  ;;  %5692 = vmatprep.subr.bf16.mxu0 %v5691_v9  ;;  %v7288_v25 = vld [vmem:[#allocation2 + $0x91] sm:$0xff] }
 0x260   : > { %5640 = vmatprep.subr.bf16.mxu1 %v8340_v0  ;;  %v2496_v23 = vld [vmem:[#allocation8 + $0x48] sm:$0xff]  ;;  %2369 = vst [vmem:[#allocation2 + $0xc8] sm:$0xff] %v8332_v63  ;;  %v7283_v19 = vadd.f32 %v7151_v24, %v2268_v2  ;;  %v2231_v14 = vadd.f32 %v2129_v39, %v7097_v17  ;;  %v5049_v33 = vpop.f32.mrb[112].mxu0  ;;  %5112 = vmatprep.mubr.f32.mxu1 %v7275_v22  ;;  %v2529_v56 = vld [vmem:[#allocation8 + $0x150] sm:$0xff]  ;;  %v2530_v58 = vld [vmem:[#allocation8 + $0x158] sm:$0xff] }
 0x261   : > { %2760 = vmatmul.mubr.f32.gmra.mrb[134].mxu0 %v7277_v6  ;;  %v8330_v55 = vmax.f32 %v7273_v45, 0.0  ;;  %v2232_v40 = vadd.f32 %v2134_v53, %v7094_v52  ;;  %v2138_v7 = vpop.f32.mrb[113].mxu0  ;;  %5113 = vmatmul.mubr.f32.gmra.mrb[166].mxu1 %v7288_v25  ;;  %v5644_v12 = vpack.c.bf16 %v2496_v23, %v2495_v48  ;;  %v2497_v39 = vld [vmem:[#allocation8 + $0x50] sm:$0xff]  ;;  %v2531_v23 = vld [vmem:[#allocation8 + $0x160] sm:$0xff] }
 0x262   : > { %2764 = vmatprep.mubr.f32.mxu0 %v2331_v31  ;;  %v8331_v17 = vmax.f32 %v7283_v19, 0.0  ;;  %v2270_v1 = vmul.f32 %v7145_v59, %v2231_v14  ;;  %v1913_v2 = vpop.f32.mrb[128].mxu1  ;;  %5694 = vmatpush3.bf16.msra.mxu0 %v5691_v9  ;;  %v2498_v31 = vld [vmem:[#allocation8 + $0x58] sm:$0xff]  ;;  %v5699_v14 = vpack.c.bf16 %v2530_v58, %v2529_v56  ;;  %v7352_v32 = vld [vmem:[#allocation2 + $0x87] sm:$0xff] }
 0x263   : > { %5642 = vmatpush1.bf16.msra.mxu1 %v5641_v27  ;;  %2372 = vst [vmem:[#allocation2 + $0xf0] sm:$0xff] %v8330_v55  ;;  %v2271_v52 = vmul.f32 %v7145_v59, %v2232_v40  ;;  %v2139_v53 = vadd.f32 %v2138_v7, %v1913_v2  ;;  %v1915_v16 = vpop.f32.mrb[129].mxu1  ;;  %v7300_v11 = vld [vmem:[#allocation2 + $0xa9] sm:$0xff]  ;;  %5696 = vmatprep.subr.bf16.mxu0 %v5695_v8  ;;  %v7312_v27 = vld [vmem:[#allocation2 + $0xb1] sm:$0xff]  ;;  %v2499_v55 = vld [vmem:[#allocation8 + $0x60] sm:$0xff] }
 0x264   : > { %5643 = vmatprep.subr.bf16.mxu1 %v8340_v0  ;;  %2371 = vst [vmem:[#allocation2 + $0xe8] sm:$0xff] %v8331_v17  ;;  %v7308_v9 = vadd.f32 %v7151_v24, %v2270_v1  ;;  %5115 = vmatprep.mubr.f32.mxu1 %v7300_v11  ;;  %v7314_v48 = vpop.f32.mrb[114].mxu0  ;;  %v2532_v40 = vld [vmem:[#allocation8 + $0x168] sm:$0xff]  ;;  %v5647_v16 = vpack.c.bf16 %v2498_v31, %v2497_v39 }
 0x265   : > { %2765 = vmatmul.mubr.f32.gmra.mrb[136].mxu0 %v7302_v61  ;;  %v7317_v7 = vadd.f32 %v7151_v24, %v2271_v52  ;;  %v2233_v56 = vadd.f32 %v2139_v53, %v7103_v36  ;;  %5116 = vmatmul.mubr.f32.gmra.mrb[168].mxu1 %v7312_v27  ;;  %v2148_v58 = vpop.f32.mrb[115].mxu0  ;;  %v7328_v53 = vld [vmem:[#allocation2 + $0x6f] sm:$0xff] }
 0x266   : > { %2769 = vmatprep.mubr.f32.mxu0 %v2332_v21  ;;  %v8334_v1 = vmax.f32 %v7308_v9, 0.0  ;;  %v1918_v2 = vpop.f32.mrb[130].mxu1  ;;  %5698 = vmatpush3.bf16.msra.mxu0 %v5695_v8  ;;  %v5703_v21 = vpack.c.bf16 %v2532_v40, %v2531_v23  ;;  %v7335_v8 = vld [vmem:[#allocation2 + $0xd1] sm:$0xff] }
 0x267   : > { %5645 = vmatpush1.bf16.msra.mxu1 %v5644_v12  ;;  %v8335_v17 = vmax.f32 %v7317_v7, 0.0  ;;  %v2272_v52 = vmul.f32 %v7145_v59, %v2233_v56  ;;  %v2144_v63 = vadd.f32 %v5049_v33, %v1918_v2  ;;  %v1920_v29 = vpop.f32.mrb[131].mxu1  ;;  %v7326_v36 = vld [vmem:[#allocation2 + $0xc9] sm:$0xff]  ;;  %5700 = vmatprep.subr.bf16.mxu0 %v5699_v14  ;;  %8371 = vst [vmem:[#allocation14_spill] sm:$0xff] %v7335_v8  ;;  %v2534_v12 = vld [vmem:[#allocation8 + $0x178] sm:$0xff] }
 0x268   : > { %8370 = vst [vmem:[#allocation13_spill] sm:$0xff] %v7326_v36  ;;  %5646 = vmatprep.subr.bf16.mxu1 %v8340_v0  ;;  %2373 = vst [vmem:[#allocation2 + $0x108] sm:$0xff] %v8334_v1  ;;  %5118 = vmatprep.mubr.f32.mxu1 %v7326_v36  ;;  %v7337_v33 = vpop.f32.mrb[116].mxu0  ;;  %v2533_v29 = vld [vmem:[#allocation8 + $0x170] sm:$0xff]  ;;  %v5650_v56 = vpack.c.bf16 %v2500_v51, %v2499_v55  ;;  %v2502_v55 = vld [vmem:[#allocation8 + $0x78] sm:$0xff] }
 0x269   : > { %2770 = vmatmul.mubr.f32.gmra.mrb[138].mxu0 %v7328_v53  ;;  %2374 = vst [vmem:[#allocation2 + $0x110] sm:$0xff] %v8335_v17  ;;  %v7342_v39 = vadd.f32 %v7151_v24, %v2272_v52  ;;  %v2234_v31 = vadd.f32 %v2144_v63, %v7100_v47  ;;  %5119 = vmatmul.mubr.f32.gmra.mrb[170].mxu1 %v7335_v8  ;;  %v2158_v23 = vpop.f32.mrb[117].mxu0  ;;  %v2501_v63 = vld [vmem:[#allocation8 + $0x70] sm:$0xff] }
 0x26a   : > { %2774 = vmatprep.mubr.f32.mxu0 %v2333_v44  ;;  %v1923_v40 = vpop.f32.mrb[132].mxu1  ;;  %5702 = vmatpush3.bf16.msra.mxu0 %v5699_v14  ;;  %v5707_v47 = vpack.c.bf16 %v2534_v12, %v2533_v29  ;;  %v7357_v43 = vld [vmem:[#allocation2 + $0xf1] sm:$0xff] }
 0x26b   : > { %5648 = vmatpush1.bf16.msra.mxu1 %v5647_v16  ;;  %v8339_v2 = vmax.f32 %v7342_v39, 0.0  ;;  %v2273_v1 = vmul.f32 %v7145_v59, %v2234_v31  ;;  %v2149_v17 = vadd.f32 %v2148_v58, %v1923_v40  ;;  %v1925_v26 = vpop.f32.mrb[133].mxu1  ;;  %v7350_v52 = vld [vmem:[#allocation2 + $0xe9] sm:$0xff]  ;;  %5704 = vmatprep.subr.bf16.mxu0 %v5703_v21  ;;  %8373 = vst [vmem:[#allocation16_spill] sm:$0xff] %v7357_v43  ;;  %v8374_v58 = vmax.f32 %v7200_v49, 0.0 }
 0x26c   : > { %8372 = vst [vmem:[#allocation15_spill] sm:$0xff] %v7350_v52  ;;  %5649 = vmatprep.subr.bf16.mxu1 %v8340_v0  ;;  %5121 = vmatprep.mubr.f32.mxu1 %v7350_v52  ;;  %v7359_v44 = vpop.f32.mrb[118].mxu0  ;;  %v7375_v40 = vld [vmem:[#allocation2 + $0x8f] sm:$0xff] }
 0x26d   : > { %2775 = vmatmul.mubr.f32.gmra.mrb[140].mxu0 %v7352_v32  ;;  %2375 = vst [vmem:[#allocation2 + $0x128] sm:$0xff] %v8339_v2  ;;  %v7364_v26 = vadd.f32 %v7151_v24, %v2273_v1  ;;  %v2235_v14 = vadd.f32 %v2149_v17, %v7109_v15  ;;  %5122 = vmatmul.mubr.f32.gmra.mrb[172].mxu1 %v7357_v43  ;;  %v7370_v16 = vpop.f32.mrb[119].mxu0  ;;  %v2503_v17 = vld [vmem:[#allocation8 + $0x80] sm:$0xff]  ;;  %v7419_v43 = vld [vmem:[#allocation2 + $0xaf] sm:$0xff] }
 0x26e   : > { %2779 = vmatprep.mubr.f32.mxu0 %v8374_v58  ;;  %v1928_v51 = vpop.f32.mrb[134].mxu1  ;;  %5706 = vmatpush3.bf16.msra.mxu0 %v5703_v21  ;;  %v5653_v15 = vpack.c.bf16 %v2502_v55, %v2501_v63  ;;  %v2504_v58 = vld [vmem:[#allocation8 + $0x88] sm:$0xff]  ;;  %v8377_v63 = vmax.f32 %v7234_v62, 0.0 }
 0x26f   : > { %5651 = vmatpush1.bf16.msra.mxu1 %v5650_v56  ;;  %v8338_v29 = vmax.f32 %v7364_v26, 0.0  ;;  %v2274_v12 = vmul.f32 %v7145_v59, %v2235_v14  ;;  %v2154_v31 = vadd.f32 %v7314_v48, %v1928_v51  ;;  %v1930_v1 = vpop.f32.mrb[135].mxu1  ;;  %5708 = vmatprep.subr.bf16.mxu0 %v5707_v47  ;;  %v7463_v8 = vld [vmem:[#allocation2 + $0xcf] sm:$0xff] }
 0x270   : > { %5652 = vmatprep.subr.bf16.mxu1 %v8340_v0  ;;  %v7378_v49 = vld [vmem:[#allocation2 + $0x109] sm:$0xff]  ;;  %v7381_v56 = vld [vmem:[#allocation2 + $0x111] sm:$0xff]  ;;  %v7383_v21 = vpop.f32.mrb[120].mxu0 }
 0x271   : > { %8375 = vst [vmem:[#allocation17_spill] sm:$0xff] %v7378_v49  ;;  %2780 = vmatmul.mubr.f32.gmra.mrb[142].mxu0 %v7375_v40  ;;  %8376 = vst [vmem:[#allocation18_spill] sm:$0xff] %v7381_v56  ;;  %v7388_v48 = vadd.f32 %v7151_v24, %v2274_v12  ;;  %v2236_v14 = vadd.f32 %v2154_v31, %v7106_v28  ;;  %5124 = vmatprep.mubr.f32.mxu1 %v7378_v49  ;;  %v7394_v55 = vpop.f32.mrb[121].mxu0  ;;  %v7399_v0 = vld [vmem:[#allocation2 + $0xa7] sm:$0xff]  ;;  %v8378_v31 = vmov 0.0|0.0  }
 0x272   : > { %2376 = vst [vmem:[#allocation2 + $0x130] sm:$0xff] %v8338_v29  ;;  %2784 = vmatprep.mubr.f32.mxu0 %v8377_v63  ;;  %v1933_v51 = vpop.f32.mrb[136].mxu1  ;;  %5125 = vmatmul.mubr.f32.gmra.mrb[174].mxu1 %v7381_v56  ;;  %v5656_v28 = vpack.c.bf16 %v2504_v58, %v2503_v17  ;;  %v2505_v63 = vld [vmem:[#allocation8 + $0x90] sm:$0xff] }
 0x273   : > { %5710 = vmatpush3.bf16.msra.mxu0 %v5707_v47  ;;  %v8345_v1 = vmax.f32 %v7388_v48, 0.0  ;;  %v2275_v29 = vmul.f32 %v7145_v59, %v2236_v14  ;;  %v2159_v2 = vadd.f32 %v2158_v23, %v1933_v51  ;;  %v1935_v12 = vpop.f32.mrb[137].mxu1  ;;  %5654 = vmatpush1.bf16.msra.mxu1 %v5653_v15  ;;  %v2506_v47 = vld [vmem:[#allocation8 + $0x98] sm:$0xff]  ;;  %v8379_v15 = vmax.f32 %v7225_v35, 0.0 }
 0x274   : > { %5711 = vmatprep.subr.bf16.mxu0 %v8378_v31  ;;  %v7403_v62 = vpop.f32.mrb[122].mxu0  ;;  %5655 = vmatprep.subr.bf16.mxu1 %v8378_v31 }
 0x275   : > { %2785 = vmatmul.mubr.f32.gmra.mrb[144].mxu0 %v7399_v0  ;;  %2377 = vst [vmem:[#allocation2 + $0x148] sm:$0xff] %v8345_v1  ;;  %v7409_v23 = vadd.f32 %v7151_v24, %v2275_v29  ;;  %v2237_v14 = vadd.f32 %v2159_v2, %v7115_v54  ;;  %v7414_v17 = vpop.f32.mrb[123].mxu0  ;;  %v5659_v29 = vpack.c.bf16 %v2506_v47, %v2505_v63  ;;  %v2507_v1 = vld [vmem:[#allocation8 + $0xa0] sm:$0xff]  ;;  %v2508_v2 = vld [vmem:[#allocation8 + $0xa8] sm:$0xff] }
 0x276   : > { %2789 = vmatprep.mubr.f32.mxu0 %v8379_v15  ;;  %v1938_v58 = vpop.f32.mrb[138].mxu1 }
 0x277   : > { %v8347_v51 = vmax.f32 %v7409_v23, 0.0  ;;  %v2276_v12 = vmul.f32 %v7145_v59, %v2237_v14  ;;  %v2164_v56 = vadd.f32 %v7337_v33, %v1938_v58  ;;  %v1940_v49 = vpop.f32.mrb[139].mxu1  ;;  %5657 = vmatpush1.bf16.msra.mxu1 %v5656_v28  ;;  %v8382_v28 = vmax.f32 %v7257_v5, 0.0 }
 0x278   : > { %v7426_v35 = vpop.f32.mrb[124].mxu0  ;;  %5658 = vmatprep.subr.bf16.mxu1 %v8378_v31 }
 0x279   : > { %v7421_v52 = vld [vmem:[#allocation2 + $0x129] sm:$0xff]  ;;  %2790 = vmatmul.mubr.f32.gmra.mrb[146].mxu0 %v7419_v43  ;;  %v7424_v54 = vld [vmem:[#allocation2 + $0x131] sm:$0xff]  ;;  %2378 = vst [vmem:[#allocation2 + $0x150] sm:$0xff] %v8347_v51  ;;  %v7432_v33 = vadd.f32 %v7151_v24, %v2276_v12  ;;  %v2238_v49 = vadd.f32 %v2164_v56, %v7112_v34  ;;  %v7438_v63 = vpop.f32.mrb[125].mxu0  ;;  %v5662_v34 = vpack.c.bf16 %v2508_v2, %v2507_v1 }
 0x27a   : > { %8380 = vst [vmem:[#allocation19_spill] sm:$0xff] %v7421_v52  ;;  %8381 = vst [vmem:[#allocation20_spill] sm:$0xff] %v7424_v54  ;;  %5127 = vmatprep.mubr.f32.mxu1 %v7421_v52  ;;  %2794 = vmatprep.mubr.f32.mxu0 %v8382_v28  ;;  %v1943_v47 = vpop.f32.mrb[140].mxu1  ;;  %v7444_v51 = vld [vmem:[#allocation2 + $0xc7] sm:$0xff]  ;;  %v2509_v56 = vld [vmem:[#allocation8 + $0xb0] sm:$0xff] }
 0x27b   : > { %5128 = vmatmul.mubr.f32.gmra.mrb[176].mxu1 %v7424_v54  ;;  %v8351_v14 = vmax.f32 %v7432_v33, 0.0  ;;  %v2277_v15 = vmul.f32 %v7145_v59, %v2238_v49  ;;  %v2169_v58 = vadd.f32 %v7370_v16, %v1943_v47  ;;  %v1945_v12 = vpop.f32.mrb[141].mxu1  ;;  %v2510_v28 = vld [vmem:[#allocation8 + $0xb8] sm:$0xff]  ;;  %v8383_v47 = vmax.f32 %v7248_v10, 0.0  ;;  %v2512_v10 = vld [vmem:[#allocation8 + $0xc8] sm:$0xff] }
 0x27c   : > { %5660 = vmatpush1.bf16.msra.mxu1 %v5659_v29  ;;  %v7447_v5 = vpop.f32.mrb[126].mxu0 }
 0x27d   : > { %2795 = vmatmul.mubr.f32.gmra.mrb[148].mxu0 %v7444_v51  ;;  %5661 = vmatprep.subr.bf16.mxu1 %v8378_v31  ;;  %2379 = vst [vmem:[#allocation2 + $0x168] sm:$0xff] %v8351_v14  ;;  %v7453_v49 = vadd.f32 %v7151_v24, %v2277_v15  ;;  %v2239_v16 = vadd.f32 %v2169_v58, %v7121_v41  ;;  %v7458_v1 = vpop.f32.mrb[127].mxu0  ;;  %v2511_v14 = vld [vmem:[#allocation8 + $0xc0] sm:$0xff]  ;;  %v8384_v58 = vmax.f32 %v7283_v19, 0.0  ;;  %v2514_v19 = vld [vmem:[#allocation8 + $0xd8] sm:$0xff] }
 0x27e   : > { %2799 = vmatprep.mubr.f32.mxu0 %v8383_v47  ;;  %v1948_v29 = vpop.f32.mrb[142].mxu1  ;;  %v5665_v15 = vpack.c.bf16 %v2510_v28, %v2509_v56 }
 0x27f   : > { %v8354_v2 = vmax.f32 %v7453_v49, 0.0  ;;  %v2278_v12 = vmul.f32 %v7145_v59, %v2239_v16  ;;  %v2174_v54 = vadd.f32 %v7359_v44, %v1948_v29  ;;  %v1950_v52 = vpop.f32.mrb[143].mxu1  ;;  %v7484_v29 = vld [vmem:[#allocation2 + $0xe7] sm:$0xff] }
 0x280   : > { %5663 = vmatpush1.bf16.msra.mxu1 %v5662_v34  ;;  %v7465_v36 = vld [vmem:[#allocation2 + $0x149] sm:$0xff]  ;;  %v7468_v41 = vld [vmem:[#allocation2 + $0x151] sm:$0xff] }
 0x281   : > { %2800 = vmatmul.mubr.f32.gmra.mrb[150].mxu0 %v7463_v8  ;;  %5664 = vmatprep.subr.bf16.mxu1 %v8378_v31  ;;  %2380 = vst [vmem:[#allocation2 + $0x170] sm:$0xff] %v8354_v2  ;;  %v7474_v44 = vadd.f32 %v7151_v24, %v2278_v12  ;;  %v2240_v52 = vadd.f32 %v2174_v54, %v7118_v18  ;;  %v2513_v18 = vld [vmem:[#allocation8 + $0xd0] sm:$0xff]  ;;  %v2515_v2 = vld [vmem:[#allocation8 + $0xe0] sm:$0xff] }
 0x282   : > { %5130 = vmatprep.mubr.f32.mxu1 %v7465_v36  ;;  %2804 = vmatprep.mubr.f32.mxu0 %v8384_v58  ;;  %v1953_v34 = vpop.f32.mrb[144].mxu1  ;;  %v5668_v12 = vpack.c.bf16 %v2512_v10, %v2511_v14 }
 0x283   : > { %5131 = vmatmul.mubr.f32.gmra.mrb[178].mxu1 %v7468_v41  ;;  %v8353_v56 = vmax.f32 %v7474_v44, 0.0  ;;  %v2279_v28 = vmul.f32 %v7145_v59, %v2240_v52  ;;  %v2179_v16 = vadd.f32 %v7394_v55, %v1953_v34  ;;  %v1955_v47 = vpop.f32.mrb[145].mxu1  ;;  %v8385_v55 = vmax.f32 %v7273_v45, 0.0  ;;  %v2516_v45 = vld [vmem:[#allocation8 + $0xe8] sm:$0xff] }
 0x284   : > { %5666 = vmatpush1.bf16.msra.mxu1 %v5665_v15  ;;  %v7499_v47 = vld [vmem:[#allocation2 + $0xef] sm:$0xff] }
 0x285   : > { %2805 = vmatmul.mubr.f32.gmra.mrb[152].mxu0 %v7484_v29  ;;  %5667 = vmatprep.subr.bf16.mxu1 %v8378_v31  ;;  %2381 = vst [vmem:[#allocation2 + $0x188] sm:$0xff] %v8353_v56  ;;  %v7491_v54 = vadd.f32 %v7151_v24, %v2279_v28  ;;  %v2241_v52 = vadd.f32 %v2179_v16, %v7127_v42 }
 0x286   : > { %2809 = vmatprep.mubr.f32.mxu0 %v8385_v55  ;;  %v1958_v58 = vpop.f32.mrb[146].mxu1  ;;  %v5671_v56 = vpack.c.bf16 %v2514_v19, %v2513_v18 }
 0x287   : > { %v8355_v14 = vmax.f32 %v7491_v54, 0.0  ;;  %v2280_v15 = vmul.f32 %v7145_v59, %v2241_v52  ;;  %v2184_v10 = vadd.f32 %v7383_v21, %v1958_v58  ;;  %v1960_v34 = vpop.f32.mrb[147].mxu1 }
 0x288   : > { %5669 = vmatpush1.bf16.msra.mxu1 %v5668_v12  ;;  %v7501_v28 = vld [vmem:[#allocation2 + $0x169] sm:$0xff]  ;;  %v7504_v42 = vld [vmem:[#allocation2 + $0x171] sm:$0xff]  ;;  %v8387_v12 = vmax.f32 %v7308_v9, 0.0 }
 0x289   : > { %2810 = vmatmul.mubr.f32.gmra.mrb[154].mxu0 %v7499_v47  ;;  %8386 = vst [vmem:[#allocation21_spill] sm:$0xff] %v7504_v42  ;;  %5670 = vmatprep.subr.bf16.mxu1 %v8378_v31  ;;  %2382 = vst [vmem:[#allocation2 + $0x190] sm:$0xff] %v8355_v14  ;;  %v7510_v21 = vadd.f32 %v7151_v24, %v2280_v15  ;;  %v2242_v16 = vadd.f32 %v2184_v10, %v7124_v20  ;;  %v7520_v34 = vld [vmem:[#allocation2 + $0x107] sm:$0xff]  ;;  %v2517_v20 = vld [vmem:[#allocation8 + $0xf0] sm:$0xff] }
 0x28a   : > { %5133 = vmatprep.mubr.f32.mxu1 %v7501_v28  ;;  %2814 = vmatprep.mubr.f32.mxu0 %v8387_v12  ;;  %v1963_v18 = vpop.f32.mrb[148].mxu1  ;;  %v5674_v15 = vpack.c.bf16 %v2516_v45, %v2515_v2  ;;  %v2518_v9 = vld [vmem:[#allocation8 + $0xf8] sm:$0xff]  ;;  %v3709_v12 = vld [vmem:[#allocation8 + $0x400] sm:$0xff] }
 0x28b   : > { %5134 = vmatmul.mubr.f32.gmra.mrb[180].mxu1 %v7504_v42  ;;  %v8357_v19 = vmax.f32 %v7510_v21, 0.0  ;;  %v2281_v52 = vmul.f32 %v7145_v59, %v2242_v16  ;;  %v2189_v55 = vadd.f32 %v7414_v17, %v1963_v18  ;;  %v1965_v58 = vpop.f32.mrb[149].mxu1  ;;  %v8388_v17 = vmax.f32 %v7317_v7, 0.0  ;;  %v7535_v42 = vld [vmem:[#allocation2 + $0x10f] sm:$0xff] }
 0x28c   : > { %5672 = vmatpush1.bf16.msra.mxu1 %v5671_v56  ;;  %v3710_v56 = vld [vmem:[#allocation8 + $0x408] sm:$0xff] }
 0x28d   : > { %2815 = vmatmul.mubr.f32.gmra.mrb[156].mxu0 %v7520_v34  ;;  %5673 = vmatprep.subr.bf16.mxu1 %v8378_v31  ;;  %2383 = vst [vmem:[#allocation2 + $0x1a8] sm:$0xff] %v8357_v19  ;;  %v7527_v10 = vadd.f32 %v7151_v24, %v2281_v52  ;;  %v2243_v16 = vadd.f32 %v2189_v55, %v7132_v30  ;;  %v8389_v55 = vmax.f32 %v7342_v39, 0.0 }
 0x28e   : > { %2819 = vmatprep.mubr.f32.mxu0 %v8388_v17  ;;  %v1968_v2 = vpop.f32.mrb[150].mxu1  ;;  %v5677_v52 = vpack.c.bf16 %v2518_v9, %v2517_v20  ;;  %v7543_v7 = vpack.c.bf16 %v3710_v56, %v3709_v12  ;;  %v7558_v12 = vld [vmem:[#allocation2 + $0x127] sm:$0xff]  ;;  %v8390_v56 = vmax.f32 %v7364_v26, 0.0 }
 0x28f   : > { %v2352_v45 = vmax.f32 %v7527_v10, 0.0  ;;  %v2282_v18 = vmul.f32 %v7145_v59, %v2243_v16  ;;  %v2194_v58 = vadd.f32 %v7403_v62, %v1968_v2  ;;  %v1970_v14 = vpop.f32.mrb[151].mxu1  ;;  %v2425_v10 = vld [vmem:[#allocation2 + $0x28] sm:$0xff] }
 0x290   : > { %5675 = vmatpush1.bf16.msra.mxu1 %v5674_v15  ;;  %v7537_v19 = vld [vmem:[#allocation2 + $0x189] sm:$0xff]  ;;  %v7540_v30 = vld [vmem:[#allocation2 + $0x191] sm:$0xff] }
 0x291   : > { %2820 = vmatmul.mubr.f32.gmra.mrb[158].mxu0 %v7535_v42  ;;  %5676 = vmatprep.subr.bf16.mxu1 %v8378_v31  ;;  %2384 = vst [vmem:[#allocation2 + $0x1b0] sm:$0xff] %v2352_v45  ;;  %v7548_v62 = vadd.f32 %v7151_v24, %v2282_v18  ;;  %v2244_v14 = vadd.f32 %v2194_v58, %v7129_v38 }
 0x292   : > { %5136 = vmatprep.mubr.f32.mxu1 %v7537_v19  ;;  %2824 = vmatprep.mubr.f32.mxu0 %v8389_v55  ;;  %v1973_v15 = vpop.f32.mrb[152].mxu1 }
 0x293   : > { %5137 = vmatmul.mubr.f32.gmra.mrb[182].mxu1 %v7540_v30  ;;  %v2353_v20 = vmax.f32 %v7548_v62, 0.0  ;;  %v2283_v9 = vmul.f32 %v7145_v59, %v2244_v14  ;;  %v2199_v16 = vadd.f32 %v7438_v63, %v1973_v15  ;;  %v1975_v17 = vpop.f32.mrb[153].mxu1  ;;  %v7572_v14 = vld [vmem:[#allocation2 + $0x12f] sm:$0xff] }
 0x294   : > { %5678 = vmatpush1.bf16.msra.mxu1 %v5677_v52  ;;  %v2426_v62 = vld [vmem:[#allocation2 + $0x30] sm:$0xff] }
 0x295   : > { %2825 = vmatmul.mubr.f32.gmra.mrb[160].mxu0 %v7558_v12  ;;  %5760 = vmatprep.subr.bf16.mxu1 %v7543_v7  ;;  %2385 = vst [vmem:[#allocation2 + $0x1c8] sm:$0xff] %v2353_v20  ;;  %v2322_v38 = vadd.f32 %v7151_v24, %v2283_v9  ;;  %v2245_v39 = vadd.f32 %v2199_v16, %v7136_v46  ;;  %v8391_v9 = vmax.f32 %v7388_v48, 0.0 }
 0x296   : > { %2829 = vmatprep.mubr.f32.mxu0 %v8390_v56  ;;  %v1978_v2 = vpop.f32.mrb[154].mxu1  ;;  %v7590_v56 = vld [vmem:[#allocation2 + $0x147] sm:$0xff] }
 0x297   : > { %v7568_v63 = vmax.f32 %v2322_v38, 0.0  ;;  %v2284_v18 = vmul.f32 %v7145_v59, %v2245_v39  ;;  %v2204_v58 = vadd.f32 %v7426_v35, %v1978_v2  ;;  %v1980_v52 = vpop.f32.mrb[155].mxu1  ;;  %v8392_v2 = vmax.f32 %v7409_v23, 0.0 }
 0x298   : > { %v7574_v55 = vld [vmem:[#allocation2 + $0x1a9] sm:$0xff]  ;;  %v7577_v15 = vld [vmem:[#allocation2 + $0x1b1] sm:$0xff] }
 0x299   : > { %2830 = vmatmul.mubr.f32.gmra.mrb[162].mxu0 %v7572_v14  ;;  %2386 = vst [vmem:[#allocation2 + $0x1d0] sm:$0xff] %v7568_v63  ;;  %v2323_v46 = vadd.f32 %v7151_v24, %v2284_v18  ;;  %v2246_v26 = vadd.f32 %v2204_v58, %v7134_v60  ;;  %5139 = vmatprep.mubr.f32.mxu1 %v7574_v55 }
 0x29a   : > { %2834 = vmatprep.mubr.f32.mxu0 %v8391_v9  ;;  %v1983_v35 = vpop.f32.mrb[156].mxu1  ;;  %5140 = vmatmul.mubr.f32.gmra.mrb[184].mxu1 %v7577_v15 }
 0x29b   : > { %v7586_v16 = vmax.f32 %v2323_v46, 0.0  ;;  %v2285_v17 = vmul.f32 %v7145_v59, %v2246_v26  ;;  %v2209_v38 = vadd.f32 %v7458_v1, %v1983_v35  ;;  %v1985_v39 = vpop.f32.mrb[157].mxu1  ;;  %v7602_v46 = vld [vmem:[#allocation2 + $0x14f] sm:$0xff] }
 0x29c   : > { %v7620_v39 = vld [vmem:[#allocation2 + $0x167] sm:$0xff] }
 0x29d   : > { %2835 = vmatmul.mubr.f32.gmra.mrb[164].mxu0 %v7590_v56  ;;  %2387 = vst [vmem:[#allocation2 + $0x1e8] sm:$0xff] %v7586_v16  ;;  %v2324_v60 = vadd.f32 %v7151_v24, %v2285_v17  ;;  %v2247_v48 = vadd.f32 %v2209_v38, %v7140_v37 }
 0x29e   : > { %2839 = vmatprep.mubr.f32.mxu0 %v8392_v2  ;;  %v1988_v18 = vpop.f32.mrb[158].mxu1 }
 0x29f   : > { %v7598_v58 = vmax.f32 %v2324_v60, 0.0  ;;  %v2286_v52 = vmul.f32 %v7145_v59, %v2247_v48  ;;  %v2214_v1 = vadd.f32 %v7447_v5, %v1988_v18  ;;  %v1990_v26 = vpop.f32.mrb[159].mxu1  ;;  %v8393_v5 = vmax.f32 %v7432_v33, 0.0  ;;  %v7631_v48 = vld [vmem:[#allocation2 + $0x16f] sm:$0xff] }
 0x2a0   : > { %v7604_v9 = vld [vmem:[#allocation2 + $0x1c9] sm:$0xff]  ;;  %v7607_v35 = vld [vmem:[#allocation2 + $0x1d1] sm:$0xff]  ;;  %v8394_v60 = vmax.f32 %v7453_v49, 0.0  ;;  %v8396_v18 = vmax.f32 %v7491_v54, 0.0 }
 0x2a1   : > { %2840 = vmatmul.mubr.f32.gmra.mrb[166].mxu0 %v7602_v46  ;;  %2388 = vst [vmem:[#allocation2 + $0x1f0] sm:$0xff] %v7598_v58  ;;  %v7611_v37 = vadd.f32 %v7151_v24, %v2286_v52  ;;  %v2248_v23 = vadd.f32 %v2214_v1, %v7138_v3  ;;  %5142 = vmatprep.mubr.f32.mxu1 %v7604_v9  ;;  %v7644_v49 = vld [vmem:[#allocation2 + $0x187] sm:$0xff]  ;;  %v7649_v52 = vld [vmem:[#allocation2 + $0x18f] sm:$0xff] }
 0x2a2   : > { %2844 = vmatprep.mubr.f32.mxu0 %v8393_v5  ;;  %5143 = vmatmul.mubr.f32.gmra.mrb[186].mxu1 %v7607_v35  ;;  %v3712_v5 = vld [vmem:[#allocation8 + $0x418] sm:$0xff] }
 0x2a3   : > { %v2357_v17 = vmax.f32 %v7611_v37, 0.0  ;;  %v2287_v38 = vmul.f32 %v7145_v59, %v2248_v23  ;;  %v8397_v23 = vmax.f32 %v7510_v21, 0.0  ;;  %v7659_v21 = vld [vmem:[#allocation2 + $0x1af] sm:$0xff] }
 0x2a4   : > { %v7698_v37 = vld [vmem:[#allocation2 + $0x70] sm:$0xff] }
 0x2a5   : > { %2845 = vmatmul.mubr.f32.gmra.mrb[168].mxu0 %v7620_v39  ;;  %2389 = vst [vmem:[#allocation2 + $0x208] sm:$0xff] %v2357_v17  ;;  %v7626_v3 = vadd.f32 %v7151_v24, %v2287_v38  ;;  %v8395_v24 = vmax.f32 %v7474_v44, 0.0  ;;  %v3711_v44 = vld [vmem:[#allocation8 + $0x410] sm:$0xff]  ;;  %v5865_v38 = vld [vmem:[#allocation2] sm:$0xff] }
 0x2a6   : > { %2849 = vmatprep.mubr.f32.mxu0 %v8394_v60  ;;  %v7654_v60 = vld [vmem:[#allocation2 + $0x1a7] sm:$0xff]  ;;  %v5763_v54 = vpack.c.bf16 %v3712_v5, %v3711_v44  ;;  %v3716_v44 = vld [vmem:[#allocation8 + $0x438] sm:$0xff] }
 0x2a7   : > { %v8358_v33 = vmax.f32 %v7626_v3, 0.0 }
 0x2a8   : > { %v7633_v2 = vld [vmem:[#allocation2 + $0x1e9] sm:$0xff]  ;;  %v7636_v59 = vld [vmem:[#allocation2 + $0x1f1] sm:$0xff] }
 0x2a9   : > { %2850 = vmatmul.mubr.f32.gmra.mrb[170].mxu0 %v7631_v48  ;;  %2390 = vst [vmem:[#allocation2 + $0x210] sm:$0xff] %v8358_v33  ;;  %5145 = vmatprep.mubr.f32.mxu1 %v7633_v2  ;;  %v3714_v33 = vld [vmem:[#allocation8 + $0x428] sm:$0xff] }
 0x2aa   : > { %2854 = vmatprep.mubr.f32.mxu0 %v8395_v24  ;;  %5146 = vmatmul.mubr.f32.gmra.mrb[188].mxu1 %v7636_v59  ;;  %v2391_v24 = vld [vmem:[#allocation2 + $0x7] sm:$0xff] }
 0x2ad   : > { %2855 = vmatmul.mubr.f32.gmra.mrb[172].mxu0 %v7644_v49 }
 0x2ae   : > { %2859 = vmatprep.mubr.f32.mxu0 %v8396_v18  ;;  %v3713_v18 = vld [vmem:[#allocation8 + $0x420] sm:$0xff] }
 0x2b0   : > { %v2629_v1 = vld [vmem:[#allocation2 + $0x209] sm:$0xff]  ;;  %v2630_v26 = vld [vmem:[#allocation2 + $0x211] sm:$0xff] }
 0x2b1   : > { %2860 = vmatmul.mubr.f32.gmra.mrb[174].mxu0 %v7649_v52  ;;  %5148 = vmatprep.mubr.f32.mxu1 %v2629_v1  ;;  %v2392_v1 = vld [vmem:[#allocation2 + $0xf] sm:$0xff] }
 0x2b2   : > { %2864 = vmatprep.mubr.f32.mxu0 %v8397_v23  ;;  %5149 = vmatmul.mubr.f32.gmra.mrb[190].mxu1 %v2630_v26  ;;  %v5767_v26 = vpack.c.bf16 %v3714_v33, %v3713_v18  ;;  %v3715_v23 = vld [vmem:[#allocation8 + $0x430] sm:$0xff]  ;;  %v7675_v18 = vld [vmem:[#allocation2 + $0x48] sm:$0xff] }
 0x2b3   : > { %3194 = vmatprep.mubr.f32.mxu1 %v5865_v38  ;;  %v5771_v5 = vpack.c.bf16 %v3716_v44, %v3715_v23  ;;  %v3722_v23 = vld [vmem:[#allocation8 + $0x468] sm:$0xff]  ;;  %v7683_v44 = vld [vmem:[#allocation2 + $0x50] sm:$0xff] }
 0x2b5   : > { %2865 = vmatmul.mubr.f32.gmra.mrb[176].mxu0 %v7654_v60 }
 0x2b6   : > { %2869 = vmatprep.mubr.f32.mxu0 %v2352_v45  ;;  %3195 = vmatmul.mubr.f32.vlgmr.msra.gmra.mrb[192].mxu1 %v2391_v24  ;;  %v7665_v45 = vld [vmem:[#allocation2 + $0x1c7] sm:$0xff]  ;;  %v3719_v24 = vld [vmem:[#allocation8 + $0x450] sm:$0xff] }
 0x2b7   : > { %3199 = vmatprep.mubr.f32.mxu1 %v5865_v38  ;;  %5762 = vmatpush3.bf16.msra.mxu1 %v7543_v7  ;;  %v3717_v7 = vld [vmem:[#allocation8 + $0x440] sm:$0xff]  ;;  %v3718_v38 = vld [vmem:[#allocation8 + $0x448] sm:$0xff] }
 0x2b8   : > { %5764 = vmatprep.subr.bf16.mxu1 %v5763_v54  ;;  %v5775_v33 = vpack.c.bf16 %v3718_v38, %v3717_v7  ;;  %v3724_v7 = vld [vmem:[#allocation8 + $0x478] sm:$0xff]  ;;  %v7692_v38 = vld [vmem:[#allocation2 + $0x68] sm:$0xff] }
 0x2b9   : > { %2870 = vmatmul.mubr.f32.gmra.mrb[178].mxu0 %v7659_v21 }
 0x2ba   : > { %2874 = vmatprep.mubr.f32.mxu0 %v2353_v20  ;;  %3200 = vmatmul.mubr.f32.gmra.mrb[194].mxu1 %v2392_v1  ;;  %v7670_v20 = vld [vmem:[#allocation2 + $0x1cf] sm:$0xff] }
 0x2bb   : > { %3204 = vmatprep.mubr.f32.mxu1 %v2425_v10  ;;  %5766 = vmatpush3.bf16.msra.mxu1 %v5763_v54  ;;  %v3720_v54 = vld [vmem:[#allocation8 + $0x458] sm:$0xff] }
 0x2bc   : > { %5768 = vmatprep.subr.bf16.mxu1 %v5767_v26  ;;  %v5779_v1 = vpack.c.bf16 %v3720_v54, %v3719_v24  ;;  %v2455_v24 = vld [vmem:[#allocation2 + $0x9] sm:$0xff] }
 0x2bd   : > { %2875 = vmatmul.mubr.f32.gmra.mrb[180].mxu0 %v7665_v45  ;;  %v3678_v54 = vld [vmem:[#allocation8 + $0x308] sm:$0xff] }
 0x2be   : > { %2879 = vmatprep.mubr.f32.mxu0 %v7568_v63  ;;  %3205 = vmatmul.mubr.f32.gmra.mrb[196].mxu1 %v7203_v57  ;;  %v7678_v57 = vld [vmem:[#allocation2 + $0x1e7] sm:$0xff] }
 0x2bf   : > { %3209 = vmatprep.mubr.f32.mxu1 %v2426_v62  ;;  %5770 = vmatpush3.bf16.msra.mxu1 %v5767_v26  ;;  %v3721_v26 = vld [vmem:[#allocation8 + $0x460] sm:$0xff] }
 0x2c0   : > { %5772 = vmatprep.subr.bf16.mxu1 %v5771_v5  ;;  %v5783_v10 = vpack.c.bf16 %v3722_v23, %v3721_v26  ;;  %v3679_v23 = vld [vmem:[#allocation8 + $0x310] sm:$0xff] }
 0x2c1   : > { %2880 = vmatmul.mubr.f32.gmra.mrb[182].mxu0 %v7670_v20 }
 0x2c2   : > { %2884 = vmatprep.mubr.f32.mxu0 %v7586_v16  ;;  %3210 = vmatmul.mubr.f32.gmra.mrb[198].mxu1 %v7228_v13  ;;  %v7686_v13 = vld [vmem:[#allocation2 + $0x1ef] sm:$0xff] }
 0x2c3   : > { %3214 = vmatprep.mubr.f32.mxu1 %v7675_v18  ;;  %5774 = vmatpush3.bf16.msra.mxu1 %v5771_v5  ;;  %v3723_v5 = vld [vmem:[#allocation8 + $0x470] sm:$0xff] }
 0x2c4   : > { %5776 = vmatprep.subr.bf16.mxu1 %v5775_v33  ;;  %v5787_v62 = vpack.c.bf16 %v3724_v7, %v3723_v5  ;;  %v3680_v5 = vld [vmem:[#allocation8 + $0x318] sm:$0xff] }
 0x2c5   : > { %2885 = vmatmul.mubr.f32.gmra.mrb[184].mxu0 %v7678_v57  ;;  %v5715_v7 = vpack.c.bf16 %v3680_v5, %v3679_v23  ;;  %v3685_v23 = vld [vmem:[#allocation8 + $0x340] sm:$0xff]  ;;  %v3686_v5 = vld [vmem:[#allocation8 + $0x348] sm:$0xff] }
 0x2c6   : > { %2889 = vmatprep.mubr.f32.mxu0 %v7598_v58  ;;  %3215 = vmatmul.mubr.f32.gmra.mrb[200].mxu1 %v7251_v50  ;;  %v2565_v50 = vld [vmem:[#allocation2 + $0x207] sm:$0xff] }
 0x2c7   : > { %3219 = vmatprep.mubr.f32.mxu1 %v7683_v44  ;;  %5778 = vmatpush3.bf16.msra.mxu1 %v5775_v33  ;;  %v8398_v33 = vmax.f32 %v7626_v3, 0.0  ;;  %v7702_v3 = vld [vmem:[#allocation2 + $0x88] sm:$0xff] }
 0x2c8   : > { %5780 = vmatprep.subr.bf16.mxu1 %v5779_v1 }
 0x2c9   : > { %2890 = vmatmul.mubr.f32.gmra.mrb[186].mxu0 %v7686_v13 }
 0x2ca   : > { %2894 = vmatprep.mubr.f32.mxu0 %v2357_v17  ;;  %3220 = vmatmul.mubr.f32.gmra.mrb[202].mxu1 %v7277_v6  ;;  %v3677_v17 = vld [vmem:[#allocation8 + $0x300] sm:$0xff]  ;;  %v2566_v6 = vld [vmem:[#allocation2 + $0x20f] sm:$0xff] }
 0x2cb   : > { %3224 = vmatprep.mubr.f32.mxu1 %v7692_v38  ;;  %5782 = vmatpush3.bf16.msra.mxu1 %v5779_v1  ;;  %v2456_v1 = vld [vmem:[#allocation2 + $0x11] sm:$0xff]  ;;  %v5712_v26 = vpack.c.bf16 %v3678_v54, %v3677_v17  ;;  %v7714_v17 = vld [vmem:[#allocation2 + $0xa8] sm:$0xff] }
 0x2cc   : > { %5784 = vmatprep.subr.bf16.mxu1 %v5783_v10  ;;  %v3684_v54 = vld [vmem:[#allocation8 + $0x338] sm:$0xff] }
 0x2cd   : > { %2895 = vmatmul.mubr.f32.gmra.mrb[188].mxu0 %v2565_v50  ;;  %v3681_v50 = vld [vmem:[#allocation8 + $0x320] sm:$0xff] }
 0x2ce   : > { %2899 = vmatprep.mubr.f32.mxu0 %v8398_v33  ;;  %3225 = vmatmul.mubr.f32.gmra.mrb[204].mxu1 %v7302_v61  ;;  %v2457_v61 = vld [vmem:[#allocation2 + $0x29] sm:$0xff]  ;;  %v2458_v33 = vld [vmem:[#allocation2 + $0x31] sm:$0xff] }
 0x2cf   : > { %3229 = vmatprep.mubr.f32.mxu1 %v7698_v37  ;;  %5786 = vmatpush3.bf16.msra.mxu1 %v5783_v10  ;;  %v7706_v10 = vld [vmem:[#allocation2 + $0x90] sm:$0xff] }
 0x2d0   : > { %5788 = vmatprep.subr.bf16.mxu1 %v5787_v62 }
 0x2d1   : > { %2900 = vmatmul.mubr.f32.gmra.mrb[190].mxu0 %v2566_v6  ;;  %v7718_v6 = vld [vmem:[#allocation2 + $0x51] sm:$0xff] }
 0x2d2   : > { %5183 = vmatprep.mubr.f32.mxu0 %v2455_v24  ;;  %3230 = vmatmul.mubr.f32.gmra.mrb[206].mxu1 %v7328_v53  ;;  %v3682_v53 = vld [vmem:[#allocation8 + $0x328] sm:$0xff] }
 0x2d3   : > { %3234 = vmatprep.mubr.f32.mxu1 %v7702_v3  ;;  %5790 = vmatpush3.bf16.msra.mxu1 %v5787_v62  ;;  %v7710_v24 = vld [vmem:[#allocation2 + $0x49] sm:$0xff]  ;;  %v5718_v62 = vpack.c.bf16 %v3682_v53, %v3681_v50  ;;  %v3688_v50 = vld [vmem:[#allocation8 + $0x358] sm:$0xff] }
 0x2d4   : > { %v3690_v53 = vld [vmem:[#allocation8 + $0x368] sm:$0xff] }
 0x2d5   : > { %5184 = vmatmul.mubr.f32.vlgmr.msra.gmra.mrb[192].mxu0 %v2456_v1  ;;  %v7721_v1 = vld [vmem:[#allocation2 + $0x69] sm:$0xff] }
 0x2d6   : > { %5186 = vmatprep.mubr.f32.mxu0 %v2457_v61  ;;  %5713 = vmatpush1.bf16.msra.mxu0 %v5712_v26  ;;  %v5724_v61 = vpack.c.bf16 %v3686_v5, %v3685_v23  ;;  %v3694_v23 = vld [vmem:[#allocation8 + $0x388] sm:$0xff]  ;;  %v8402_v5 = vld [vmem:[#allocation16_spill] sm:$0xff] }
 0x2d7   : > { %3235 = vmatmul.mubr.f32.gmra.mrb[208].mxu1 %v7352_v32  ;;  %5714 = vmatprep.subr.bf16.mxu0 %v8378_v31  ;;  %v3683_v32 = vld [vmem:[#allocation8 + $0x330] sm:$0xff] }
 0x2d8   : > { %3239 = vmatprep.mubr.f32.mxu1 %v7706_v10  ;;  %v5721_v26 = vpack.c.bf16 %v3684_v54, %v3683_v32  ;;  %v8400_v32 = vld [vmem:[#allocation14_spill] sm:$0xff]  ;;  %v8401_v54 = vld [vmem:[#allocation15_spill] sm:$0xff] }
 0x2d9   : > { %5187 = vmatmul.mubr.f32.gmra.mrb[194].mxu0 %v2458_v33  ;;  %v8399_v33 = vld [vmem:[#allocation13_spill] sm:$0xff] }
 0x2da   : > { %5189 = vmatprep.mubr.f32.mxu0 %v7710_v24  ;;  %5716 = vmatpush1.bf16.msra.mxu0 %v5715_v7  ;;  %v7732_v7 = vld [vmem:[#allocation2 + $0xc8] sm:$0xff] }
 0x2db   : > { %3240 = vmatmul.mubr.f32.gmra.mrb[210].mxu1 %v7375_v40  ;;  %5717 = vmatprep.subr.bf16.mxu0 %v8378_v31  ;;  %v7725_v40 = vld [vmem:[#allocation2 + $0xb0] sm:$0xff] }
 0x2dc   : > { %3244 = vmatprep.mubr.f32.mxu1 %v7714_v17 }
 0x2dd   : > { %5190 = vmatmul.mubr.f32.gmra.mrb[196].mxu0 %v7718_v6 }
 0x2de   : > { %5192 = vmatprep.mubr.f32.mxu0 %v7721_v1  ;;  %5719 = vmatpush1.bf16.msra.mxu0 %v5718_v62  ;;  %v3692_v62 = vld [vmem:[#allocation8 + $0x378] sm:$0xff] }
 0x2df   : > { %3245 = vmatmul.mubr.f32.gmra.mrb[212].mxu1 %v7399_v0  ;;  %5720 = vmatprep.subr.bf16.mxu0 %v8378_v31  ;;  %v3687_v0 = vld [vmem:[#allocation8 + $0x350] sm:$0xff] }
 0x2e0   : > { %3249 = vmatprep.mubr.f32.mxu1 %v7725_v40 }
 0x2e1   : > { %5193 = vmatmul.mubr.f32.gmra.mrb[198].mxu0 %v7261_v4  ;;  %v5727_v4 = vpack.c.bf16 %v3688_v50, %v3687_v0  ;;  %v7760_v50 = vld [vmem:[#allocation2 + $0x108] sm:$0xff] }
 0x2e2   : > { %5195 = vmatprep.mubr.f32.mxu0 %v7275_v22  ;;  %5722 = vmatpush1.bf16.msra.mxu0 %v5721_v26  ;;  %v7739_v22 = vld [vmem:[#allocation2 + $0xd0] sm:$0xff] }
 0x2e3   : > { %3250 = vmatmul.mubr.f32.gmra.mrb[214].mxu1 %v7419_v43  ;;  %5723 = vmatprep.subr.bf16.mxu0 %v8378_v31  ;;  %v3689_v43 = vld [vmem:[#allocation8 + $0x360] sm:$0xff]  ;;  %v7753_v26 = vld [vmem:[#allocation2 + $0xf0] sm:$0xff] }
 0x2e4   : > { %3254 = vmatprep.mubr.f32.mxu1 %v7732_v7 }
 0x2e5   : > { %5196 = vmatmul.mubr.f32.gmra.mrb[200].mxu0 %v7288_v25  ;;  %v5730_v25 = vpack.c.bf16 %v3690_v53, %v3689_v43  ;;  %v8404_v43 = vld [vmem:[#allocation18_spill] sm:$0xff]  ;;  %v8405_v53 = vld [vmem:[#allocation19_spill] sm:$0xff] }
 0x2e6   : > { %5198 = vmatprep.mubr.f32.mxu0 %v7300_v11  ;;  %5725 = vmatpush1.bf16.msra.mxu0 %v5724_v61  ;;  %v7746_v11 = vld [vmem:[#allocation2 + $0xe8] sm:$0xff]  ;;  %v8403_v61 = vld [vmem:[#allocation17_spill] sm:$0xff] }
 0x2e7   : > { %3255 = vmatmul.mubr.f32.gmra.mrb[216].mxu1 %v7444_v51  ;;  %5726 = vmatprep.subr.bf16.mxu0 %v8378_v31  ;;  %v3691_v51 = vld [vmem:[#allocation8 + $0x370] sm:$0xff] }
 0x2e8   : > { %3259 = vmatprep.mubr.f32.mxu1 %v7739_v22 }
 0x2e9   : > { %5199 = vmatmul.mubr.f32.gmra.mrb[202].mxu0 %v7312_v27  ;;  %v5733_v27 = vpack.c.bf16 %v3692_v62, %v3691_v51  ;;  %v3698_v51 = vld [vmem:[#allocation8 + $0x3a8] sm:$0xff]  ;;  %v8406_v62 = vld [vmem:[#allocation20_spill] sm:$0xff] }
 0x2ea   : > { %5201 = vmatprep.mubr.f32.mxu0 %v8399_v33  ;;  %5728 = vmatpush1.bf16.msra.mxu0 %v5727_v4  ;;  %v3696_v4 = vld [vmem:[#allocation8 + $0x398] sm:$0xff] }
 0x2eb   : > { %3260 = vmatmul.mubr.f32.gmra.mrb[218].mxu1 %v7463_v8  ;;  %5729 = vmatprep.subr.bf16.mxu0 %v8378_v31  ;;  %v3693_v8 = vld [vmem:[#allocation8 + $0x380] sm:$0xff] }
 0x2ec   : > { %3264 = vmatprep.mubr.f32.mxu1 %v7746_v11  ;;  %v5736_v0 = vpack.c.bf16 %v3694_v23, %v3693_v8  ;;  %v3702_v23 = vld [vmem:[#allocation8 + $0x3c8] sm:$0xff] }
 0x2ed   : > { %5202 = vmatmul.mubr.f32.gmra.mrb[204].mxu0 %v8400_v32 }
 0x2ee   : > { %5204 = vmatprep.mubr.f32.mxu0 %v8401_v54  ;;  %5731 = vmatpush1.bf16.msra.mxu0 %v5730_v25  ;;  %v7767_v25 = vld [vmem:[#allocation2 + $0x110] sm:$0xff]  ;;  %v7774_v54 = vld [vmem:[#allocation2 + $0x128] sm:$0xff] }
 0x2ef   : > { %3265 = vmatmul.mubr.f32.gmra.mrb[220].mxu1 %v7484_v29  ;;  %5732 = vmatprep.subr.bf16.mxu0 %v8378_v31  ;;  %v3695_v29 = vld [vmem:[#allocation8 + $0x390] sm:$0xff] }
 0x2f0   : > { %3269 = vmatprep.mubr.f32.mxu1 %v7753_v26  ;;  %v5739_v33 = vpack.c.bf16 %v3696_v4, %v3695_v29  ;;  %v3706_v29 = vld [vmem:[#allocation8 + $0x3e8] sm:$0xff]  ;;  %v3708_v4 = vld [vmem:[#allocation8 + $0x3f8] sm:$0xff] }
 0x2f1   : > { %5205 = vmatmul.mubr.f32.gmra.mrb[206].mxu0 %v8402_v5  ;;  %v8407_v5 = vld [vmem:[#allocation21_spill] sm:$0xff] }
 0x2f2   : > { %5207 = vmatprep.mubr.f32.mxu0 %v8403_v61  ;;  %5734 = vmatpush1.bf16.msra.mxu0 %v5733_v27  ;;  %v3700_v27 = vld [vmem:[#allocation8 + $0x3b8] sm:$0xff] }
 0x2f3   : > { %3270 = vmatmul.mubr.f32.gmra.mrb[222].mxu1 %v7499_v47  ;;  %5735 = vmatprep.subr.bf16.mxu0 %v8378_v31  ;;  %v3697_v47 = vld [vmem:[#allocation8 + $0x3a0] sm:$0xff]  ;;  %v3704_v61 = vld [vmem:[#allocation8 + $0x3d8] sm:$0xff] }
 0x2f4   : > { %3274 = vmatprep.mubr.f32.mxu1 %v7760_v50  ;;  %v5742_v32 = vpack.c.bf16 %v3698_v51, %v3697_v47  ;;  %v3587_v47 = vld [vmem:[#allocation2 + $0xaf] sm:$0xff] }
 0x2f5   : > { %5208 = vmatmul.mubr.f32.gmra.mrb[208].mxu0 %v8404_v43 }
 0x2f6   : > { %5210 = vmatprep.mubr.f32.mxu0 %v8405_v53  ;;  %5737 = vmatpush1.bf16.msra.mxu0 %v5736_v0 }
 0x2f7   : > { %3275 = vmatmul.mubr.f32.gmra.mrb[224].mxu1 %v7520_v34  ;;  %5738 = vmatprep.subr.bf16.mxu0 %v8378_v31  ;;  %v3699_v34 = vld [vmem:[#allocation8 + $0x3b0] sm:$0xff] }
 0x2f8   : > { %3279 = vmatprep.mubr.f32.mxu1 %v7767_v25  ;;  %v5745_v8 = vpack.c.bf16 %v3700_v27, %v3699_v34 }
 0x2f9   : > { %5211 = vmatmul.mubr.f32.gmra.mrb[210].mxu0 %v8406_v62 }
 0x2fa   : > { %5213 = vmatprep.mubr.f32.mxu0 %v7465_v36  ;;  %5740 = vmatpush1.bf16.msra.mxu0 %v5739_v33  ;;  %v7781_v36 = vld [vmem:[#allocation2 + $0x130] sm:$0xff] }
 0x2fb   : > { %3280 = vmatmul.mubr.f32.gmra.mrb[226].mxu1 %v7535_v42  ;;  %5741 = vmatprep.subr.bf16.mxu0 %v8378_v31  ;;  %v3701_v42 = vld [vmem:[#allocation8 + $0x3c0] sm:$0xff] }
 0x2fc   : > { %3284 = vmatprep.mubr.f32.mxu1 %v7774_v54 }
 0x2fd   : > { %5214 = vmatmul.mubr.f32.gmra.mrb[212].mxu0 %v7468_v41  ;;  %v5748_v41 = vpack.c.bf16 %v3702_v23, %v3701_v42 }
 0x2fe   : > { %5216 = vmatprep.mubr.f32.mxu0 %v7501_v28  ;;  %5743 = vmatpush1.bf16.msra.mxu0 %v5742_v32  ;;  %v7788_v28 = vld [vmem:[#allocation2 + $0x148] sm:$0xff] }
 0x2ff   : > { %3285 = vmatmul.mubr.f32.gmra.mrb[228].mxu1 %v7558_v12  ;;  %5744 = vmatprep.subr.bf16.mxu0 %v8378_v31  ;;  %v3703_v12 = vld [vmem:[#allocation8 + $0x3d0] sm:$0xff] }
 0x300   : > { %3289 = vmatprep.mubr.f32.mxu1 %v7781_v36  ;;  %v5751_v0 = vpack.c.bf16 %v3704_v61, %v3703_v12 }
 0x301   : > { %5217 = vmatmul.mubr.f32.gmra.mrb[214].mxu0 %v8407_v5  ;;  %v3647_v5 = vld [vmem:[#allocation2 + $0x71] sm:$0xff] }
 0x302   : > { %5219 = vmatprep.mubr.f32.mxu0 %v7537_v19  ;;  %5746 = vmatpush1.bf16.msra.mxu0 %v5745_v8  ;;  %v7795_v19 = vld [vmem:[#allocation2 + $0x150] sm:$0xff] }
 0x303   : > { %3290 = vmatmul.mubr.f32.gmra.mrb[230].mxu1 %v7572_v14  ;;  %5747 = vmatprep.subr.bf16.mxu0 %v8378_v31  ;;  %v3705_v14 = vld [vmem:[#allocation8 + $0x3e0] sm:$0xff] }
 0x304   : > { %3294 = vmatprep.mubr.f32.mxu1 %v7788_v28 }
 0x305   : > { %5220 = vmatmul.mubr.f32.gmra.mrb[216].mxu0 %v7540_v30  ;;  %v5754_v30 = vpack.c.bf16 %v3706_v29, %v3705_v14  ;;  %v3649_v14 = vld [vmem:[#allocation2 + $0x91] sm:$0xff]  ;;  %v3650_v29 = vld [vmem:[#allocation2 + $0xa9] sm:$0xff] }
 0x306   : > { %5222 = vmatprep.mubr.f32.mxu0 %v7574_v55  ;;  %5749 = vmatpush1.bf16.msra.mxu0 %v5748_v41  ;;  %v7802_v55 = vld [vmem:[#allocation2 + $0x168] sm:$0xff] }
 0x307   : > { %3295 = vmatmul.mubr.f32.gmra.mrb[232].mxu1 %v7590_v56  ;;  %5750 = vmatprep.subr.bf16.mxu0 %v8378_v31  ;;  %v3707_v56 = vld [vmem:[#allocation8 + $0x3f0] sm:$0xff] }
 0x308   : > { %3299 = vmatprep.mubr.f32.mxu1 %v7795_v19  ;;  %v3648_v41 = vld [vmem:[#allocation2 + $0x89] sm:$0xff] }
 0x309   : > { %5223 = vmatmul.mubr.f32.gmra.mrb[218].mxu0 %v7577_v15  ;;  %v5757_v15 = vpack.c.bf16 %v3708_v4, %v3707_v56 }
 0x30a   : > { %5225 = vmatprep.mubr.f32.mxu0 %v7604_v9  ;;  %5752 = vmatpush1.bf16.msra.mxu0 %v5751_v0  ;;  %v7809_v9 = vld [vmem:[#allocation2 + $0x170] sm:$0xff] }
 0x30b   : > { %3300 = vmatmul.mubr.f32.gmra.mrb[234].mxu1 %v7602_v46  ;;  %5753 = vmatprep.subr.bf16.mxu0 %v8378_v31  ;;  %v7816_v46 = vld [vmem:[#allocation2 + $0x188] sm:$0xff] }
 0x30c   : > { %3304 = vmatprep.mubr.f32.mxu1 %v7802_v55 }
 0x30d   : > { %5226 = vmatmul.mubr.f32.gmra.mrb[220].mxu0 %v7607_v35  ;;  %v3580_v35 = vld [vmem:[#allocation2 + $0x47] sm:$0xff] }
 0x30e   : > { %5228 = vmatprep.mubr.f32.mxu0 %v7633_v2  ;;  %5755 = vmatpush1.bf16.msra.mxu0 %v5754_v30  ;;  %v3582_v2 = vld [vmem:[#allocation2 + $0x67] sm:$0xff] }
 0x30f   : > { %3305 = vmatmul.mubr.f32.gmra.mrb[236].mxu1 %v7620_v39  ;;  %5756 = vmatprep.subr.bf16.mxu0 %v8378_v31  ;;  %v7821_v31 = vld [vmem:[#allocation2 + $0x190] sm:$0xff] }
 0x310   : > { %3309 = vmatprep.mubr.f32.mxu1 %v7809_v9  ;;  %v3581_v39 = vld [vmem:[#allocation2 + $0x4f] sm:$0xff] }
 0x311   : > { %5229 = vmatmul.mubr.f32.gmra.mrb[222].mxu0 %v7636_v59  ;;  %v7831_v59 = vld [vmem:[#allocation2 + $0x1b0] sm:$0xff] }
 0x312   : > { %5758 = vmatpush1.bf16.msra.mxu0 %v5757_v15  ;;  %3789 = vmatprep.mubr.f32.mxu0 %v7675_v18  ;;  %v3584_v18 = vld [vmem:[#allocation2 + $0x87] sm:$0xff] }
 0x313   : > { %3310 = vmatmul.mubr.f32.gmra.mrb[238].mxu1 %v7631_v48  ;;  %v7826_v48 = vld [vmem:[#allocation2 + $0x1a8] sm:$0xff] }
 0x314   : > { %3314 = vmatprep.mubr.f32.mxu1 %v7816_v46 }
 0x315   : > { %3790 = vmatmul.mubr.f32.vlgmr.msra.gmra.mrb[224].mxu0 %v3580_v35 }
 0x316   : > { %3794 = vmatprep.mubr.f32.mxu0 %v7683_v44  ;;  %v3585_v44 = vld [vmem:[#allocation2 + $0x8f] sm:$0xff] }
 0x317   : > { %3315 = vmatmul.mubr.f32.gmra.mrb[240].mxu1 %v7644_v49  ;;  %v3583_v49 = vld [vmem:[#allocation2 + $0x6f] sm:$0xff] }
 0x318   : > { %3319 = vmatprep.mubr.f32.mxu1 %v7821_v31 }
 0x319   : > { %3795 = vmatmul.mubr.f32.gmra.mrb[226].mxu0 %v3581_v39  ;;  %v3651_v39 = vld [vmem:[#allocation2 + $0xb1] sm:$0xff] }
 0x31a   : > { %3799 = vmatprep.mubr.f32.mxu0 %v7692_v38 }
 0x31b   : > { %3320 = vmatmul.mubr.f32.gmra.mrb[242].mxu1 %v7649_v52  ;;  %v7836_v52 = vld [vmem:[#allocation2 + $0x1c8] sm:$0xff] }
 0x31c   : > { %3324 = vmatprep.mubr.f32.mxu1 %v7826_v48 }
 0x31d   : > { %3800 = vmatmul.mubr.f32.gmra.mrb[228].mxu0 %v3582_v2  ;;  %v3652_v2 = vld [vmem:[#allocation2 + $0xc9] sm:$0xff] }
 0x31e   : > { %3804 = vmatprep.mubr.f32.mxu0 %v7698_v37 }
 0x31f   : > { %3325 = vmatmul.mubr.f32.gmra.mrb[244].mxu1 %v7654_v60 }
 0x320   : > { %3329 = vmatprep.mubr.f32.mxu1 %v7831_v59 }
 0x321   : > { %3805 = vmatmul.mubr.f32.gmra.mrb[230].mxu0 %v3583_v49  ;;  %v3592_v49 = vld [vmem:[#allocation2 + $0x107] sm:$0xff] }
 0x322   : > { %3809 = vmatprep.mubr.f32.mxu0 %v7702_v3 }
 0x323   : > { %3330 = vmatmul.mubr.f32.gmra.mrb[246].mxu1 %v7659_v21 }
 0x324   : > { %3334 = vmatprep.mubr.f32.mxu1 %v7836_v52 }
 0x325   : > { %3810 = vmatmul.mubr.f32.gmra.mrb[232].mxu0 %v3584_v18 }
 0x326   : > { %3814 = vmatprep.mubr.f32.mxu0 %v7706_v10  ;;  %v3586_v10 = vld [vmem:[#allocation2 + $0xa7] sm:$0xff] }
 0x327   : > { %3335 = vmatmul.mubr.f32.gmra.mrb[248].mxu1 %v7665_v45 }
 0x328   : > { %3339 = vmatprep.mubr.f32.mxu1 %v7568_v63  ;;  %v2746_v60 = vpop.f32.mrb[128].mxu0  ;;  %v5105_v38 = vpop.f32.mrb[160].mxu1 }
 0x329   : > { %v2748_v37 = vpop.f32.mrb[129].mxu0  ;;  %3815 = vmatmul.mubr.f32.gmra.mrb[234].mxu0 %v3585_v44  ;;  %v2971_v3 = vpop.f32.mrb[161].mxu1 }
 0x32a   : > { %3819 = vmatprep.mubr.f32.mxu0 %v7714_v17  ;;  %v7843_v21 = vadd.f32 %v2971_v3, %v2746_v60  ;;  %v3654_v3 = vld [vmem:[#allocation2 + $0xe9] sm:$0xff] }
 0x32b   : > { %3340 = vmatmul.mubr.f32.gmra.mrb[250].mxu1 %v7670_v20 }
 0x32c   : > { %3344 = vmatprep.mubr.f32.mxu1 %v7586_v16  ;;  %v2751_v43 = vpop.f32.mrb[130].mxu0  ;;  %v5108_v45 = vpop.f32.mrb[162].mxu1 }
 0x32d   : > { %v7847_v53 = vadd.f32 %v5105_v38, %v2751_v43  ;;  %v2753_v63 = vpop.f32.mrb[131].mxu0  ;;  %3820 = vmatmul.mubr.f32.gmra.mrb[236].mxu0 %v3586_v10  ;;  %v2981_v33 = vpop.f32.mrb[163].mxu1  ;;  %v3653_v38 = vld [vmem:[#allocation2 + $0xd1] sm:$0xff] }
 0x32e   : > { %3824 = vmatprep.mubr.f32.mxu0 %v7725_v40  ;;  %v3588_v40 = vld [vmem:[#allocation2 + $0xc7] sm:$0xff]  ;;  %v3593_v43 = vld [vmem:[#allocation2 + $0x10f] sm:$0xff] }
 0x32f   : > { %3345 = vmatmul.mubr.f32.gmra.mrb[252].mxu1 %v7678_v57  ;;  %v3655_v63 = vld [vmem:[#allocation2 + $0xf1] sm:$0xff] }
 0x330   : > { %3349 = vmatprep.mubr.f32.mxu1 %v7598_v58  ;;  %v2756_v17 = vpop.f32.mrb[132].mxu0  ;;  %v5111_v20 = vpop.f32.mrb[164].mxu1 }
 0x331   : > { %v7852_v51 = vadd.f32 %v2981_v33, %v2756_v17  ;;  %v2758_v16 = vpop.f32.mrb[133].mxu0  ;;  %3825 = vmatmul.mubr.f32.gmra.mrb[238].mxu0 %v3587_v47  ;;  %v2991_v62 = vpop.f32.mrb[165].mxu1  ;;  %v3656_v33 = vld [vmem:[#allocation2 + $0x109] sm:$0xff] }
 0x332   : > { %3829 = vmatprep.mubr.f32.mxu0 %v7732_v7  ;;  %v3589_v7 = vld [vmem:[#allocation2 + $0xcf] sm:$0xff]  ;;  %v3594_v47 = vld [vmem:[#allocation2 + $0x127] sm:$0xff] }
 0x333   : > { %3350 = vmatmul.mubr.f32.gmra.mrb[254].mxu1 %v7686_v13 }
 0x334   : > { %5263 = vmatprep.mubr.f32.mxu1 %v7710_v24  ;;  %v2761_v32 = vpop.f32.mrb[134].mxu0  ;;  %v5114_v57 = vpop.f32.mrb[166].mxu1 }
 0x335   : > { %v7857_v34 = vadd.f32 %v5108_v45, %v2761_v32  ;;  %v2763_v58 = vpop.f32.mrb[135].mxu0  ;;  %3830 = vmatmul.mubr.f32.gmra.mrb[240].mxu0 %v3588_v40  ;;  %v3001_v27 = vpop.f32.mrb[167].mxu1  ;;  %v3658_v40 = vld [vmem:[#allocation2 + $0x129] sm:$0xff] }
 0x336   : > { %3834 = vmatprep.mubr.f32.mxu0 %v7739_v22  ;;  %v3590_v22 = vld [vmem:[#allocation2 + $0xe7] sm:$0xff] }
 0x337   : > { %5264 = vmatmul.mubr.f32.vlgmr.msra.gmra.mrb[0].mxu1 %v7718_v6 }
 0x338   : > { %5266 = vmatprep.mubr.f32.mxu1 %v7721_v1  ;;  %v2766_v8 = vpop.f32.mrb[136].mxu0  ;;  %v5117_v13 = vpop.f32.mrb[168].mxu1 }
 0x339   : > { %v7862_v42 = vadd.f32 %v2991_v62, %v2766_v8  ;;  %v2768_v24 = vpop.f32.mrb[137].mxu0  ;;  %3835 = vmatmul.mubr.f32.gmra.mrb[242].mxu0 %v3589_v7  ;;  %v3011_v23 = vpop.f32.mrb[169].mxu1  ;;  %v3657_v62 = vld [vmem:[#allocation2 + $0x111] sm:$0xff]  ;;  %v3660_v7 = vld [vmem:[#allocation2 + $0x149] sm:$0xff] }
 0x33a   : > { %3839 = vmatprep.mubr.f32.mxu0 %v7746_v11  ;;  %v3591_v11 = vld [vmem:[#allocation2 + $0xef] sm:$0xff]  ;;  %v3596_v24 = vld [vmem:[#allocation2 + $0x147] sm:$0xff] }
 0x33b   : > { %5267 = vmatmul.mubr.f32.gmra.mrb[2].mxu1 %v3647_v5  ;;  %v3659_v8 = vld [vmem:[#allocation2 + $0x131] sm:$0xff] }
 0x33c   : > { %5269 = vmatprep.mubr.f32.mxu1 %v3648_v41  ;;  %v2771_v12 = vpop.f32.mrb[138].mxu0  ;;  %v7867_v6 = vpop.f32.mrb[170].mxu1  ;;  %v3661_v41 = vld [vmem:[#allocation2 + $0x151] sm:$0xff] }
 0x33d   : > { %v7865_v61 = vadd.f32 %v5111_v20, %v2771_v12  ;;  %v2773_v1 = vpop.f32.mrb[139].mxu0  ;;  %3840 = vmatmul.mubr.f32.gmra.mrb[244].mxu0 %v3590_v22  ;;  %v3021_v0 = vpop.f32.mrb[171].mxu1  ;;  %v3662_v22 = vld [vmem:[#allocation2 + $0x169] sm:$0xff] }
 0x33e   : > { %3844 = vmatprep.mubr.f32.mxu0 %v7753_v26  ;;  %v3597_v1 = vld [vmem:[#allocation2 + $0x14f] sm:$0xff] }
 0x33f   : > { %5270 = vmatmul.mubr.f32.gmra.mrb[4].mxu1 %v3649_v14 }
 0x340   : > { %5272 = vmatprep.mubr.f32.mxu1 %v3650_v29  ;;  %v2776_v30 = vpop.f32.mrb[140].mxu0  ;;  %v7872_v4 = vpop.f32.mrb[172].mxu1  ;;  %v3664_v29 = vld [vmem:[#allocation2 + $0x189] sm:$0xff] }
 0x341   : > { %v7870_v56 = vadd.f32 %v3001_v27, %v2776_v30  ;;  %v2778_v15 = vpop.f32.mrb[141].mxu0  ;;  %3845 = vmatmul.mubr.f32.gmra.mrb[246].mxu0 %v3591_v11  ;;  %v7874_v35 = vpop.f32.mrb[173].mxu1 }
 0x342   : > { %3849 = vmatprep.mubr.f32.mxu0 %v7760_v50 }
 0x343   : > { %5273 = vmatmul.mubr.f32.gmra.mrb[6].mxu1 %v3651_v39 }
 0x344   : > { %5275 = vmatprep.mubr.f32.mxu1 %v3652_v2  ;;  %v2781_v26 = vpop.f32.mrb[142].mxu0  ;;  %v3665_v2 = vld [vmem:[#allocation2 + $0x191] sm:$0xff] }
 0x345   : > { %v7877_v18 = vadd.f32 %v5114_v57, %v2781_v26  ;;  %v2783_v60 = vpop.f32.mrb[143].mxu0  ;;  %3850 = vmatmul.mubr.f32.gmra.mrb[248].mxu0 %v3592_v49  ;;  %v7879_v44 = vpop.f32.mrb[174].mxu1  ;;  %v3595_v57 = vld [vmem:[#allocation2 + $0x12f] sm:$0xff] }
 0x346   : > { %3854 = vmatprep.mubr.f32.mxu0 %v7767_v25  ;;  %v7882_v37 = vpop.f32.mrb[175].mxu1  ;;  %v3666_v26 = vld [vmem:[#allocation2 + $0x1a9] sm:$0xff] }
 0x347   : > { %5276 = vmatmul.mubr.f32.gmra.mrb[8].mxu1 %v3653_v38  ;;  %v3599_v49 = vld [vmem:[#allocation2 + $0x16f] sm:$0xff] }
 0x348   : > { %5278 = vmatprep.mubr.f32.mxu1 %v3654_v3  ;;  %v2786_v50 = vpop.f32.mrb[144].mxu0  ;;  %v3668_v3 = vld [vmem:[#allocation2 + $0x1c9] sm:$0xff] }
 0x349   : > { %v7884_v10 = vadd.f32 %v3011_v23, %v2786_v50  ;;  %v2788_v45 = vpop.f32.mrb[145].mxu0  ;;  %3855 = vmatmul.mubr.f32.gmra.mrb[250].mxu0 %v3593_v43 }
 0x34a   : > { %3859 = vmatprep.mubr.f32.mxu0 %v7774_v54 }
 0x34b   : > { %5279 = vmatmul.mubr.f32.gmra.mrb[10].mxu1 %v3655_v63 }
 0x34c   : > { %5281 = vmatprep.mubr.f32.mxu1 %v3656_v33  ;;  %v2791_v17 = vpop.f32.mrb[146].mxu0  ;;  %v3669_v33 = vld [vmem:[#allocation2 + $0x1d1] sm:$0xff] }
 0x34d   : > { %v7887_v25 = vadd.f32 %v5117_v13, %v2791_v17  ;;  %v2793_v20 = vpop.f32.mrb[147].mxu0  ;;  %3860 = vmatmul.mubr.f32.gmra.mrb[252].mxu0 %v3594_v47  ;;  %v3670_v17 = vld [vmem:[#allocation2 + $0x1e9] sm:$0xff] }
 0x34e   : > { %v7889_v16 = vpop.f32.mrb[176].mxu1  ;;  %3864 = vmatprep.mubr.f32.mxu0 %v7781_v36  ;;  %v3601_v47 = vld [vmem:[#allocation2 + $0x18f] sm:$0xff] }
 0x34f   : > { %v7892_v32 = vpop.f32.mrb[177].mxu1  ;;  %5282 = vmatmul.mubr.f32.gmra.mrb[12].mxu1 %v3657_v62 }
 0x350   : > { %5284 = vmatprep.mubr.f32.mxu1 %v3658_v40  ;;  %v2796_v54 = vpop.f32.mrb[148].mxu0  ;;  %v3672_v40 = vld [vmem:[#allocation2 + $0x209] sm:$0xff] }
 0x351   : > { %v7894_v58 = vadd.f32 %v3021_v0, %v2796_v54  ;;  %v2798_v27 = vpop.f32.mrb[149].mxu0  ;;  %3865 = vmatmul.mubr.f32.gmra.mrb[254].mxu0 %v3595_v57  ;;  %v3602_v57 = vld [vmem:[#allocation2 + $0x1a7] sm:$0xff] }
 0x352   : > { %3869 = vmatprep.mubr.f32.mxu0 %v7788_v28 }
 0x353   : > { %5285 = vmatmul.mubr.f32.gmra.mrb[14].mxu1 %v3659_v8  ;;  %v3674_v8 = vld [vmem:[#allocation2 + $0x229] sm:$0xff] }
 0x354   : > { %5287 = vmatprep.mubr.f32.mxu1 %v3660_v7  ;;  %v2801_v13 = vpop.f32.mrb[150].mxu0 }
 0x355   : > { %v7898_v36 = vadd.f32 %v7867_v6, %v2801_v13  ;;  %v2803_v23 = vpop.f32.mrb[151].mxu0  ;;  %3870 = vmatmul.mubr.f32.gmra.mrb[0].mxu0 %v3596_v24  ;;  %v3663_v6 = vld [vmem:[#allocation2 + $0x171] sm:$0xff] }
 0x356   : > { %v7900_v5 = vpop.f32.mrb[178].mxu1  ;;  %3874 = vmatprep.mubr.f32.mxu0 %v7795_v19  ;;  %v3598_v19 = vld [vmem:[#allocation2 + $0x167] sm:$0xff]  ;;  %v3675_v23 = vld [vmem:[#allocation2 + $0x231] sm:$0xff] }
 0x357   : > { %v7903_v12 = vpop.f32.mrb[179].mxu1  ;;  %5288 = vmatmul.mubr.f32.gmra.mrb[16].mxu1 %v3661_v41 }
 0x358   : > { %5290 = vmatprep.mubr.f32.mxu1 %v3662_v22  ;;  %v2806_v28 = vpop.f32.mrb[152].mxu0 }
 0x359   : > { %v7906_v0 = vadd.f32 %v7874_v35, %v2806_v28  ;;  %v2808_v14 = vpop.f32.mrb[153].mxu0  ;;  %3875 = vmatmul.mubr.f32.gmra.mrb[2].mxu0 %v3597_v1  ;;  %v3604_v28 = vld [vmem:[#allocation2 + $0x1c7] sm:$0xff] }
 0x35a   : > { %3879 = vmatprep.mubr.f32.mxu0 %v7802_v55  ;;  %v3637_v14 = vld [vmem:[#allocation2 + $0x1d0] sm:$0xff] }
 0x35b   : > { %5291 = vmatmul.mubr.f32.gmra.mrb[18].mxu1 %v3663_v6 }
 0x35c   : > { %5293 = vmatprep.mubr.f32.mxu1 %v3664_v29  ;;  %v2811_v30 = vpop.f32.mrb[154].mxu0 }
 0x35d   : > { %v7910_v11 = vadd.f32 %v7872_v4, %v2811_v30  ;;  %v2813_v15 = vpop.f32.mrb[155].mxu0  ;;  %3880 = vmatmul.mubr.f32.gmra.mrb[4].mxu0 %v3598_v19  ;;  %v3667_v4 = vld [vmem:[#allocation2 + $0x1b1] sm:$0xff] }
 0x35e   : > { %v7912_v39 = vpop.f32.mrb[180].mxu1  ;;  %3884 = vmatprep.mubr.f32.mxu0 %v7809_v9  ;;  %v3600_v9 = vld [vmem:[#allocation2 + $0x187] sm:$0xff] }
 0x35f   : > { %v7915_v35 = vpop.f32.mrb[181].mxu1  ;;  %5294 = vmatmul.mubr.f32.gmra.mrb[20].mxu1 %v3665_v2 }
 0x360   : > { %5296 = vmatprep.mubr.f32.mxu1 %v3666_v26  ;;  %v2816_v55 = vpop.f32.mrb[156].mxu0  ;;  %v3606_v26 = vld [vmem:[#allocation2 + $0x1e7] sm:$0xff] }
 0x361   : > { %v7918_v60 = vadd.f32 %v7882_v37, %v2816_v55  ;;  %v2818_v38 = vpop.f32.mrb[157].mxu0  ;;  %3885 = vmatmul.mubr.f32.gmra.mrb[6].mxu0 %v3599_v49  ;;  %v3639_v49 = vld [vmem:[#allocation2 + $0x1f0] sm:$0xff] }
 0x362   : > { %3889 = vmatprep.mubr.f32.mxu0 %v7816_v46 }
 0x363   : > { %5297 = vmatmul.mubr.f32.gmra.mrb[22].mxu1 %v3667_v4 }
 0x364   : > { %5299 = vmatprep.mubr.f32.mxu1 %v3668_v3  ;;  %v2821_v50 = vpop.f32.mrb[158].mxu0 }
 0x365   : > { %v7922_v43 = vadd.f32 %v7879_v44, %v2821_v50  ;;  %v2823_v45 = vpop.f32.mrb[159].mxu0  ;;  %3890 = vmatmul.mubr.f32.gmra.mrb[8].mxu0 %v3600_v9  ;;  %v3671_v44 = vld [vmem:[#allocation2 + $0x1f1] sm:$0xff] }
 0x366   : > { %v7924_v63 = vpop.f32.mrb[182].mxu1  ;;  %3894 = vmatprep.mubr.f32.mxu0 %v7821_v31  ;;  %v3607_v50 = vld [vmem:[#allocation2 + $0x1ef] sm:$0xff] }
 0x367   : > { %v3081_v37 = vpop.f32.mrb[183].mxu1  ;;  %5300 = vmatmul.mubr.f32.gmra.mrb[24].mxu1 %v3669_v33  ;;  %v3640_v45 = vld [vmem:[#allocation2 + $0x208] sm:$0xff] }
 0x368   : > { %5302 = vmatprep.mubr.f32.mxu1 %v3670_v17  ;;  %v2826_v46 = vpop.f32.mrb[160].mxu0  ;;  %v3608_v17 = vld [vmem:[#allocation2 + $0x207] sm:$0xff] }
 0x369   : > { %v7928_v20 = vadd.f32 %v7892_v32, %v2826_v46  ;;  %v2828_v62 = vpop.f32.mrb[161].mxu0  ;;  %3895 = vmatmul.mubr.f32.gmra.mrb[10].mxu0 %v3601_v47  ;;  %v3673_v32 = vld [vmem:[#allocation2 + $0x211] sm:$0xff] }
 0x36a   : > { %3899 = vmatprep.mubr.f32.mxu0 %v7826_v48  ;;  %v3603_v48 = vld [vmem:[#allocation2 + $0x1af] sm:$0xff] }
 0x36b   : > { %5303 = vmatmul.mubr.f32.gmra.mrb[26].mxu1 %v3671_v44  ;;  %v3641_v47 = vld [vmem:[#allocation2 + $0x210] sm:$0xff] }
 0x36c   : > { %5305 = vmatprep.mubr.f32.mxu1 %v3672_v40  ;;  %v2831_v54 = vpop.f32.mrb[162].mxu0 }
 0x36d   : > { %v7932_v31 = vadd.f32 %v7889_v16, %v2831_v54  ;;  %v2833_v27 = vpop.f32.mrb[163].mxu0  ;;  %3900 = vmatmul.mubr.f32.gmra.mrb[12].mxu0 %v3602_v57  ;;  %v7934_v7 = vpop.f32.mrb[184].mxu1  ;;  %v3609_v54 = vld [vmem:[#allocation2 + $0x20f] sm:$0xff] }
 0x36e   : > { %3904 = vmatprep.mubr.f32.mxu0 %v7831_v59  ;;  %v3091_v13 = vpop.f32.mrb[185].mxu1 }
 0x36f   : > { %5306 = vmatmul.mubr.f32.gmra.mrb[28].mxu1 %v3673_v32  ;;  %v3610_v32 = vld [vmem:[#allocation2 + $0x227] sm:$0xff] }
 0x370   : > { %v2836_v24 = vpop.f32.mrb[164].mxu0  ;;  %5308 = vmatprep.mubr.f32.mxu1 %v3674_v8  ;;  %v5866_v8 = vld [vmem:[#allocation2] sm:$0xff] }
 0x371   : > { %v7938_v41 = vadd.f32 %v7903_v12, %v2836_v24  ;;  %v2838_v22 = vpop.f32.mrb[165].mxu0  ;;  %3905 = vmatmul.mubr.f32.gmra.mrb[14].mxu0 %v3603_v48  ;;  %v3605_v12 = vld [vmem:[#allocation2 + $0x1cf] sm:$0xff] }
 0x372   : > { %3909 = vmatprep.mubr.f32.mxu0 %v7836_v52  ;;  %v3638_v52 = vld [vmem:[#allocation2 + $0x1e8] sm:$0xff] }
 0x373   : > { %5309 = vmatmul.mubr.f32.gmra.mrb[30].mxu1 %v3675_v23 }
 0x374   : > { %v2841_v16 = vpop.f32.mrb[166].mxu0 }
 0x375   : > { %v7942_v1 = vadd.f32 %v7900_v5, %v2841_v16  ;;  %v2843_v59 = vpop.f32.mrb[167].mxu0  ;;  %3910 = vmatmul.mubr.f32.gmra.mrb[16].mxu0 %v3604_v28  ;;  %v7944_v6 = vpop.f32.mrb[186].mxu1  ;;  %v3611_v28 = vld [vmem:[#allocation2 + $0x22f] sm:$0xff] }
 0x376   : > { %3914 = vmatprep.mubr.f32.mxu0 %v3637_v14  ;;  %v3101_v29 = vpop.f32.mrb[187].mxu1 }
 0x378   : > { %v2846_v30 = vpop.f32.mrb[168].mxu0 }
 0x379   : > { %v7947_v19 = vadd.f32 %v7915_v35, %v2846_v30  ;;  %v2848_v15 = vpop.f32.mrb[169].mxu0  ;;  %3915 = vmatmul.mubr.f32.gmra.mrb[18].mxu0 %v3605_v12 }
 0x37a   : > { %3919 = vmatprep.mubr.f32.mxu0 %v3638_v52 }
 0x37c   : > { %v2851_v2 = vpop.f32.mrb[170].mxu0 }
 0x37d   : > { %v7950_v5 = vadd.f32 %v7912_v39, %v2851_v2  ;;  %v2853_v55 = vpop.f32.mrb[171].mxu0  ;;  %3920 = vmatmul.mubr.f32.gmra.mrb[20].mxu0 %v3606_v26  ;;  %v5147_v38 = vpop.f32.mrb[188].mxu1 }
 0x37e   : > { %3924 = vmatprep.mubr.f32.mxu0 %v3639_v49  ;;  %v3111_v4 = vpop.f32.mrb[189].mxu1 }
 0x380   : > { %v2856_v3 = vpop.f32.mrb[172].mxu0 }
 0x381   : > { %v7952_v9 = vadd.f32 %v3081_v37, %v2856_v3  ;;  %v2858_v35 = vpop.f32.mrb[173].mxu0  ;;  %3925 = vmatmul.mubr.f32.gmra.mrb[22].mxu0 %v3607_v50 }
 0x382   : > { %3929 = vmatprep.mubr.f32.mxu0 %v3640_v45 }
 0x384   : > { %v2861_v33 = vpop.f32.mrb[174].mxu0 }
 0x385   : > { %v7955_v46 = vadd.f32 %v7924_v63, %v2861_v33  ;;  %v2863_v39 = vpop.f32.mrb[175].mxu0  ;;  %3930 = vmatmul.mubr.f32.gmra.mrb[24].mxu0 %v3608_v17  ;;  %v5150_v62 = vpop.f32.mrb[190].mxu1 }
 0x386   : > { %3934 = vmatprep.mubr.f32.mxu0 %v3641_v47  ;;  %v3121_v44 = vpop.f32.mrb[191].mxu1 }
 0x388   : > { %v2866_v40 = vpop.f32.mrb[176].mxu0 }
 0x389   : > { %v7957_v57 = vadd.f32 %v3091_v13, %v2866_v40  ;;  %v2868_v37 = vpop.f32.mrb[177].mxu0  ;;  %3935 = vmatmul.mubr.f32.gmra.mrb[26].mxu0 %v3609_v54  ;;  %v3196_v27 = vpop.f32.mrb[192].mxu1 }
 0x38a   : > { %3939 = vmatprep.mubr.f32.mxu0 %v5866_v8  ;;  %v3197_v24 = vadd.f32 %v3196_v27, %v7843_v21  ;;  %v3198_v63 = vpop.f32.mrb[193].mxu1 }
 0x38c   : > { %v2871_v48 = vpop.f32.mrb[178].mxu0 }
 0x38d   : > { %v7961_v23 = vadd.f32 %v7934_v7, %v2871_v48  ;;  %v2873_v22 = vpop.f32.mrb[179].mxu0  ;;  %3940 = vmatmul.mubr.f32.gmra.mrb[28].mxu0 %v3610_v32  ;;  %v3201_v16 = vpop.f32.mrb[194].mxu1 }
 0x38e   : > { %3944 = vmatprep.mubr.f32.mxu0 %v5866_v8  ;;  %v3202_v13 = vadd.f32 %v3201_v16, %v7847_v53  ;;  %v3203_v59 = vpop.f32.mrb[195].mxu1 }
 0x390   : > { %v2876_v14 = vpop.f32.mrb[180].mxu0 }
 0x391   : > { %v7964_v30 = vadd.f32 %v3101_v29, %v2876_v14  ;;  %v2878_v12 = vpop.f32.mrb[181].mxu0  ;;  %3945 = vmatmul.mubr.f32.gmra.mrb[30].mxu0 %v3611_v28  ;;  %v3206_v15 = vpop.f32.mrb[196].mxu1 }
 0x392   : > { %v3207_v21 = vadd.f32 %v3206_v15, %v7852_v51  ;;  %v3208_v52 = vpop.f32.mrb[197].mxu1 }
 0x394   : > { %v2881_v2 = vpop.f32.mrb[182].mxu0 }
 0x395   : > { %v7968_v7 = vadd.f32 %v7944_v6, %v2881_v2  ;;  %v2883_v26 = vpop.f32.mrb[183].mxu0  ;;  %v3211_v55 = vpop.f32.mrb[198].mxu1 }
 0x396   : > { %v3212_v49 = vadd.f32 %v3211_v55, %v7857_v34  ;;  %v3213_v3 = vpop.f32.mrb[199].mxu1 }
 0x398   : > { %v2886_v53 = vpop.f32.mrb[184].mxu0 }
 0x399   : > { %v7971_v50 = vadd.f32 %v3111_v4, %v2886_v53  ;;  %v2888_v29 = vpop.f32.mrb[185].mxu0  ;;  %v3216_v35 = vpop.f32.mrb[200].mxu1 }
 0x39a   : > { %v3217_v45 = vadd.f32 %v3216_v35, %v7862_v42  ;;  %v3218_v33 = vpop.f32.mrb[201].mxu1 }
 0x39c   : > { %v2891_v17 = vpop.f32.mrb[186].mxu0 }
 0x39d   : > { %v7974_v51 = vadd.f32 %v5147_v38, %v2891_v17  ;;  %v2893_v39 = vpop.f32.mrb[187].mxu0  ;;  %v3221_v47 = vpop.f32.mrb[202].mxu1 }
 0x39e   : > { %v3222_v6 = vadd.f32 %v3221_v47, %v7865_v61  ;;  %v3223_v40 = vpop.f32.mrb[203].mxu1 }
 0x3a0   : > { %v2896_v54 = vpop.f32.mrb[188].mxu0 }
 0x3a1   : > { %v7977_v37 = vadd.f32 %v3121_v44, %v2896_v54  ;;  %v2898_v34 = vpop.f32.mrb[189].mxu0  ;;  %v3226_v27 = vpop.f32.mrb[204].mxu1 }
 0x3a2   : > { %v3227_v4 = vadd.f32 %v3226_v27, %v7870_v56  ;;  %v3228_v8 = vpop.f32.mrb[205].mxu1 }
 0x3a4   : > { %v2901_v32 = vpop.f32.mrb[190].mxu0 }
 0x3a5   : > { %v7980_v63 = vadd.f32 %v5150_v62, %v2901_v32  ;;  %v2903_v42 = vpop.f32.mrb[191].mxu0  ;;  %v3231_v48 = vpop.f32.mrb[206].mxu1 }
 0x3a6   : > { %v3232_v38 = vadd.f32 %v3231_v48, %v7877_v18  ;;  %v3233_v22 = vpop.f32.mrb[207].mxu1 }
 0x3a8   : > { %v5185_v16 = vpop.f32.mrb[192].mxu0 }
 0x3a9   : > { %v7983_v28 = vadd.f32 %v5185_v16, %v3202_v13  ;;  %v3421_v61 = vpop.f32.mrb[193].mxu0 }
 0x3aa   : > { %v3236_v59 = vpop.f32.mrb[208].mxu1  ;;  %v7985_v44 = vadd.f32 %v3421_v61, %v3197_v24 }
 0x3ab   : > { %v3237_v14 = vadd.f32 %v3236_v59, %v7884_v10  ;;  %v3238_v12 = vpop.f32.mrb[209].mxu1 }
 0x3ac   : > { %v5188_v56 = vpop.f32.mrb[194].mxu0 }
 0x3ad   : > { %v7988_v15 = vadd.f32 %v5188_v56, %v3212_v49  ;;  %v3431_v62 = vpop.f32.mrb[195].mxu0 }
 0x3ae   : > { %v3241_v52 = vpop.f32.mrb[210].mxu1  ;;  %v7990_v2 = vadd.f32 %v3431_v62, %v3207_v21 }
 0x3af   : > { %v3242_v18 = vadd.f32 %v3241_v52, %v7887_v25  ;;  %v3243_v26 = vpop.f32.mrb[211].mxu1 }
 0x3b0   : > { %v5191_v55 = vpop.f32.mrb[196].mxu0 }
 0x3b1   : > { %v7993_v13 = vadd.f32 %v5191_v55, %v3222_v6  ;;  %v3441_v3 = vpop.f32.mrb[197].mxu0 }
 0x3b2   : > { %v3246_v53 = vpop.f32.mrb[212].mxu1  ;;  %v7995_v24 = vadd.f32 %v3441_v3, %v3217_v45 }
 0x3b3   : > { %v3247_v10 = vadd.f32 %v3246_v53, %v7894_v58  ;;  %v3248_v29 = vpop.f32.mrb[213].mxu1 }
 0x3b4   : > { %v5194_v35 = vpop.f32.mrb[198].mxu0 }
 0x3b5   : > { %v7998_v49 = vadd.f32 %v5194_v35, %v3232_v38  ;;  %v3451_v33 = vpop.f32.mrb[199].mxu0 }
 0x3b6   : > { %v3251_v17 = vpop.f32.mrb[214].mxu1  ;;  %v8000_v21 = vadd.f32 %v3451_v33, %v3227_v4 }
 0x3b7   : > { %v3252_v25 = vadd.f32 %v3251_v17, %v7898_v36  ;;  %v3253_v39 = vpop.f32.mrb[215].mxu1 }
 0x3b8   : > { %v5197_v47 = vpop.f32.mrb[200].mxu0 }
 0x3b9   : > { %v8003_v6 = vadd.f32 %v5197_v47, %v3242_v18  ;;  %v3461_v40 = vpop.f32.mrb[201].mxu0 }
 0x3ba   : > { %v3256_v54 = vpop.f32.mrb[216].mxu1  ;;  %v8005_v45 = vadd.f32 %v3461_v40, %v3237_v14 }
 0x3bb   : > { %v3257_v58 = vadd.f32 %v3256_v54, %v7906_v0  ;;  %v3258_v34 = vpop.f32.mrb[217].mxu1 }
 0x3bc   : > { %v5200_v27 = vpop.f32.mrb[202].mxu0 }
 0x3bd   : > { %v8008_v8 = vadd.f32 %v5200_v27, %v3252_v25  ;;  %v3471_v32 = vpop.f32.mrb[203].mxu0 }
 0x3be   : > { %v3261_v42 = vpop.f32.mrb[218].mxu1  ;;  %v8010_v4 = vadd.f32 %v3471_v32, %v3247_v10 }
 0x3bf   : > { %v3262_v36 = vadd.f32 %v3261_v42, %v7910_v11  ;;  %v3263_v48 = vpop.f32.mrb[219].mxu1 }
 0x3c0   : > { %v5203_v38 = vpop.f32.mrb[204].mxu0 }
 0x3c1   : > { %v8013_v22 = vadd.f32 %v5203_v38, %v3262_v36  ;;  %v3481_v16 = vpop.f32.mrb[205].mxu0 }
 0x3c2   : > { %v3266_v61 = vpop.f32.mrb[220].mxu1  ;;  %v8015_v59 = vadd.f32 %v3481_v16, %v3257_v58 }
 0x3c3   : > { %v3267_v0 = vadd.f32 %v3266_v61, %v7918_v60  ;;  %v3268_v14 = vpop.f32.mrb[221].mxu1 }
 0x3c4   : > { %v5206_v12 = vpop.f32.mrb[206].mxu0 }
 0x3c5   : > { %v3491_v56 = vpop.f32.mrb[207].mxu0 }
 0x3c6   : > { %v3271_v62 = vpop.f32.mrb[222].mxu1  ;;  %v8018_v52 = vadd.f32 %v3491_v56, %v3267_v0 }
 0x3c7   : > { %v3272_v18 = vadd.f32 %v3271_v62, %v7922_v43  ;;  %v3273_v26 = vpop.f32.mrb[223].mxu1 }
 0x3c8   : > { %v5209_v11 = vpop.f32.mrb[208].mxu0 }
 0x3c9   : > { %v8021_v55 = vadd.f32 %v5206_v12, %v3272_v18  ;;  %v3501_v3 = vpop.f32.mrb[209].mxu0 }
 0x3ca   : > { %v3276_v53 = vpop.f32.mrb[224].mxu1 }
 0x3cb   : > { %v3277_v10 = vadd.f32 %v3276_v53, %v7928_v20  ;;  %v3278_v29 = vpop.f32.mrb[225].mxu1 }
 0x3cc   : > { %v5212_v35 = vpop.f32.mrb[210].mxu0 }
 0x3cd   : > { %v8024_v33 = vadd.f32 %v3501_v3, %v3277_v10  ;;  %v3511_v60 = vpop.f32.mrb[211].mxu0 }
 0x3ce   : > { %v3281_v17 = vpop.f32.mrb[226].mxu1 }
 0x3cf   : > { %v3282_v25 = vadd.f32 %v3281_v17, %v7932_v31  ;;  %v3283_v39 = vpop.f32.mrb[227].mxu1 }
 0x3d0   : > { %v5215_v47 = vpop.f32.mrb[212].mxu0 }
 0x3d1   : > { %v8027_v40 = vadd.f32 %v5209_v11, %v3282_v25  ;;  %v3521_v43 = vpop.f32.mrb[213].mxu0 }
 0x3d2   : > { %v3286_v54 = vpop.f32.mrb[228].mxu1 }
 0x3d3   : > { %v3287_v58 = vadd.f32 %v3286_v54, %v7938_v41  ;;  %v3288_v34 = vpop.f32.mrb[229].mxu1 }
 0x3d4   : > { %v5218_v27 = vpop.f32.mrb[214].mxu0 }
 0x3d5   : > { %v8030_v32 = vadd.f32 %v3511_v60, %v3287_v58  ;;  %v3531_v20 = vpop.f32.mrb[215].mxu0 }
 0x3d6   : > { %v3291_v42 = vpop.f32.mrb[230].mxu1 }
 0x3d7   : > { %v3292_v36 = vadd.f32 %v3291_v42, %v7942_v1  ;;  %v3293_v48 = vpop.f32.mrb[231].mxu1 }
 0x3d8   : > { %v5221_v38 = vpop.f32.mrb[216].mxu0 }
 0x3d9   : > { %v8033_v16 = vadd.f32 %v5212_v35, %v3292_v36  ;;  %v3541_v31 = vpop.f32.mrb[217].mxu0 }
 0x3da   : > { %v3296_v61 = vpop.f32.mrb[232].mxu1 }
 0x3db   : > { %v3297_v0 = vadd.f32 %v3296_v61, %v7947_v19  ;;  %v3298_v14 = vpop.f32.mrb[233].mxu1 }
 0x3dc   : > { %v5224_v12 = vpop.f32.mrb[218].mxu0 }
 0x3dd   : > { %v8036_v56 = vadd.f32 %v3521_v43, %v3297_v0  ;;  %v3551_v41 = vpop.f32.mrb[219].mxu0 }
 0x3de   : > { %v3301_v62 = vpop.f32.mrb[234].mxu1 }
 0x3df   : > { %v3302_v18 = vadd.f32 %v3301_v62, %v7950_v5  ;;  %v3303_v26 = vpop.f32.mrb[235].mxu1 }
 0x3e0   : > { %v5227_v11 = vpop.f32.mrb[220].mxu0 }
 0x3e1   : > { %v8039_v3 = vadd.f32 %v5215_v47, %v3302_v18  ;;  %v3561_v1 = vpop.f32.mrb[221].mxu0 }
 0x3e2   : > { %v3306_v53 = vpop.f32.mrb[236].mxu1 }
 0x3e3   : > { %v3307_v10 = vadd.f32 %v3306_v53, %v7952_v9  ;;  %v3308_v29 = vpop.f32.mrb[237].mxu1 }
 0x3e4   : > { %v5230_v35 = vpop.f32.mrb[222].mxu0 }
 0x3e5   : > { %v8042_v60 = vadd.f32 %v3531_v20, %v3307_v10  ;;  %v3571_v19 = vpop.f32.mrb[223].mxu0 }
 0x3e6   : > { %v3311_v17 = vpop.f32.mrb[238].mxu1 }
 0x3e7   : > { %v3312_v25 = vadd.f32 %v3311_v17, %v7955_v46  ;;  %v3313_v39 = vpop.f32.mrb[239].mxu1 }
 0x3e8   : > { %v3791_v43 = vpop.f32.mrb[224].mxu0 }
 0x3e9   : > { %v8045_v54 = vadd.f32 %v5218_v27, %v3312_v25  ;;  %v3793_v5 = vpop.f32.mrb[225].mxu0 }
 0x3ea   : > { %v3316_v58 = vpop.f32.mrb[240].mxu1 }
 0x3eb   : > { %v3317_v47 = vadd.f32 %v3316_v58, %v7957_v57  ;;  %v3318_v34 = vpop.f32.mrb[241].mxu1 }
 0x3ec   : > { %v3796_v42 = vpop.f32.mrb[226].mxu0 }
 0x3ed   : > { %v8048_v36 = vadd.f32 %v3541_v31, %v3317_v47  ;;  %v3798_v9 = vpop.f32.mrb[227].mxu0 }
 0x3ee   : > { %v3321_v48 = vpop.f32.mrb[242].mxu1 }
 0x3ef   : > { %v3322_v20 = vadd.f32 %v3321_v48, %v7961_v23  ;;  %v3323_v61 = vpop.f32.mrb[243].mxu1 }
 0x3f0   : > { %v3801_v0 = vpop.f32.mrb[228].mxu0 }
 0x3f1   : > { %v8051_v14 = vadd.f32 %v5221_v38, %v3322_v20  ;;  %v3803_v46 = vpop.f32.mrb[229].mxu0 }
 0x3f2   : > { %v3326_v62 = vpop.f32.mrb[244].mxu1 }
 0x3f3   : > { %v3327_v27 = vadd.f32 %v3326_v62, %v7964_v30  ;;  %v3328_v18 = vpop.f32.mrb[245].mxu1 }
 0x3f4   : > { %v3806_v26 = vpop.f32.mrb[230].mxu0 }
 0x3f5   : > { %v8054_v53 = vadd.f32 %v3551_v41, %v3327_v27  ;;  %v3808_v57 = vpop.f32.mrb[231].mxu0 }
 0x3f6   : > { %v3331_v10 = vpop.f32.mrb[246].mxu1 }
 0x3f7   : > { %v3332_v31 = vadd.f32 %v3331_v10, %v7968_v7  ;;  %v3333_v29 = vpop.f32.mrb[247].mxu1 }
 0x3f8   : > { %v3811_v17 = vpop.f32.mrb[232].mxu0 }
 0x3f9   : > { %v8057_v25 = vadd.f32 %v5224_v12, %v3332_v31  ;;  %v3813_v23 = vpop.f32.mrb[233].mxu0 }
 0x3fa   : > { %v3336_v39 = vpop.f32.mrb[248].mxu1 }
 0x3fb   : > { %v3337_v38 = vadd.f32 %v3336_v39, %v7971_v50  ;;  %v3338_v5 = vpop.f32.mrb[249].mxu1 }
 0x3fc   : > { %v3816_v58 = vpop.f32.mrb[234].mxu0 }
 0x3fd   : > { %v8060_v47 = vadd.f32 %v3561_v1, %v3337_v38  ;;  %v3818_v30 = vpop.f32.mrb[235].mxu0 }
 0x3fe   : > { %v3341_v34 = vpop.f32.mrb[250].mxu1 }
 0x3ff   : > { %v3342_v41 = vadd.f32 %v3341_v34, %v7974_v51  ;;  %v3343_v9 = vpop.f32.mrb[251].mxu1 }
 0x400   : > { %v8063_v48 = vpop.f32.mrb[236].mxu0  ;;  %v4286_v9 = vld [vmem:[%s6262_s13 + $0x8] sm:$0xff] }
 0x401   : > { %v8065_v7 = vadd.f32 %v5227_v11, %v3342_v41  ;;  %v3823_v20 = vpop.f32.mrb[237].mxu0 }
 0x402   : > { %v3346_v12 = vpop.f32.mrb[252].mxu1 }
 0x403   : > { %v3347_v61 = vadd.f32 %v3346_v12, %v7977_v37  ;;  %v3348_v46 = vpop.f32.mrb[253].mxu1  ;;  %v8078_v37 = vld [vmem:[%s8322_s5] ss:$0 sm:$0xff] }
 0x404   : > { %v3826_v62 = vpop.f32.mrb[238].mxu0 }
 0x405   : > { %v8068_v50 = vadd.f32 %v3571_v19, %v3347_v61  ;;  %v3828_v27 = vpop.f32.mrb[239].mxu0  ;;  %v4285_v61 = vld [vmem:[%s6262_s13] sm:$0xff] }
 0x406   : > { %v3351_v1 = vpop.f32.mrb[254].mxu1 }
 0x407   : > { %v3352_v18 = vadd.f32 %v3351_v1, %v7980_v63  ;;  %v3353_v57 = vpop.f32.mrb[255].mxu1 }
 0x408   : > { %v8071_v10 = vpop.f32.mrb[240].mxu0 }
 0x409   : > { %v8073_v51 = vadd.f32 %v5230_v35, %v3352_v18  ;;  %v3833_v11 = vpop.f32.mrb[241].mxu0  ;;  %v8084_v35 = vld [vmem:[%s8323_s6] ss:$0 sm:$0xff] }
 0x40a   : > { %v5265_v31 = vpop.f32.mrb[0].mxu1 }
 0x40b   : > { %v4022_v29 = vadd.f32 %v5265_v31, %v3796_v42  ;;  %v4016_v23 = vpop.f32.mrb[1].mxu1 }
 0x40c   : > { %v4017_v19 = vadd.f32 %v4016_v23, %v3791_v43  ;;  %v3836_v39 = vpop.f32.mrb[242].mxu0 }
 0x40d   : > { %v4176_v63 = vadd.f32 %v4022_v29, %v7983_v28  ;;  %v3838_v38 = vpop.f32.mrb[243].mxu0  ;;  %v4288_v29 = vld [vmem:[%s6262_s13 + $0x18] sm:$0xff] }
 0x40e   : > { %v4175_v5 = vadd.f32 %v4017_v19, %v7985_v44  ;;  %v5268_v42 = vpop.f32.mrb[2].mxu1 }
 0x40f   : > { %v4215_v30 = vmul.f32 %v8078_v37, %v4176_v63  ;;  %v4032_v34 = vadd.f32 %v5268_v42, %v3806_v26  ;;  %v4026_v41 = vpop.f32.mrb[3].mxu1 }
 0x410   : > { %v4214_v43 = vmul.f32 %v8078_v37, %v4175_v5  ;;  %v4027_v20 = vadd.f32 %v4026_v41, %v3801_v0  ;;  %v8090_v12 = vpop.f32.mrb[244].mxu0  ;;  %v4287_v5 = vld [vmem:[%s6262_s13 + $0x10] sm:$0xff] }
 0x411   : > { %v4254_v28 = vadd.f32 %v8084_v35, %v4215_v30  ;;  %v4178_v46 = vadd.f32 %v4032_v34, %v7988_v15  ;;  %v3843_v27 = vpop.f32.mrb[245].mxu0 }
 0x412   : > { %v4253_v44 = vadd.f32 %v8084_v35, %v4214_v43  ;;  %v4177_v1 = vadd.f32 %v4027_v20, %v7990_v2  ;;  %v5271_v26 = vpop.f32.mrb[4].mxu1 }
 0x413   : > { %v4318_v18 = vadd.f32 %v4286_v9, %v4254_v28  ;;  %v4217_v57 = vmul.f32 %v8078_v37, %v4178_v46  ;;  %v4042_v11 = vadd.f32 %v5271_v26, %v3816_v58  ;;  %v4036_v0 = vpop.f32.mrb[5].mxu1  ;;  %v4290_v28 = vld [vmem:[%s6262_s13 + $0x28] sm:$0xff] }
 0x414   : > { %v4317_v31 = vadd.f32 %v4285_v61, %v4253_v44  ;;  %v4216_v23 = vmul.f32 %v8078_v37, %v4177_v1  ;;  %v4037_v19 = vadd.f32 %v4036_v0, %v3811_v17  ;;  %v3846_v63 = vpop.f32.mrb[246].mxu0  ;;  %v4289_v1 = vld [vmem:[%s6262_s13 + $0x20] sm:$0xff] }
 0x415   : > { %v4350_v15 = vmax.f32 %v4318_v18, 0.0  ;;  %v4256_v38 = vadd.f32 %v8084_v35, %v4217_v57  ;;  %v4180_v2 = vadd.f32 %v4042_v11, %v7993_v13  ;;  %v3848_v42 = vpop.f32.mrb[247].mxu0 }
 0x416   : > { %v4349_v30 = vmax.f32 %v4317_v31, 0.0  ;;  %v4255_v34 = vadd.f32 %v8084_v35, %v4216_v23  ;;  %v4179_v58 = vadd.f32 %v4037_v19, %v7995_v24  ;;  %v5274_v41 = vpop.f32.mrb[6].mxu1  ;;  %v4291_v42 = vld [vmem:[%s6262_s13 + $0x30] sm:$0xff] }
 0x417   : > { %4382 = vst [vmem:[%s8107_s21 + $0x8] sm:$0xff] %v4350_v15  ;;  %v4320_v17 = vadd.f32 %v4288_v29, %v4256_v38  ;;  %v4219_v9 = vmul.f32 %v8078_v37, %v4180_v2  ;;  %v4052_v43 = vadd.f32 %v5274_v41, %v3826_v62  ;;  %v4046_v20 = vpop.f32.mrb[7].mxu1  ;;  %v4292_v15 = vld [vmem:[%s6262_s13 + $0x38] sm:$0xff] }
 0x418   : > { %4381 = vst [vmem:[%s8107_s21] sm:$0xff] %v4349_v30  ;;  %v4319_v13 = vadd.f32 %v4287_v5, %v4255_v34  ;;  %v4218_v61 = vmul.f32 %v8078_v37, %v4179_v58  ;;  %v4047_v24 = vadd.f32 %v4046_v20, %v8063_v48  ;;  %v3851_v46 = vpop.f32.mrb[248].mxu0 }
 0x419   : > { %v4352_v27 = vmax.f32 %v4320_v17, 0.0  ;;  %v4258_v44 = vadd.f32 %v8084_v35, %v4219_v9  ;;  %v4182_v26 = vadd.f32 %v4052_v43, %v7998_v49  ;;  %v3853_v18 = vpop.f32.mrb[249].mxu0 }
 0x41a   : > { %v4351_v62 = vmax.f32 %v4319_v13, 0.0  ;;  %v4257_v57 = vadd.f32 %v8084_v35, %v4218_v61  ;;  %v4181_v11 = vadd.f32 %v4047_v24, %v8000_v21  ;;  %v5277_v0 = vpop.f32.mrb[8].mxu1 }
 0x41b   : > { %4384 = vst [vmem:[%s8107_s21 + $0x18] sm:$0xff] %v4352_v27  ;;  %v4322_v31 = vadd.f32 %v4290_v28, %v4258_v44  ;;  %v4221_v48 = vmul.f32 %v8078_v37, %v4182_v26  ;;  %v4062_v29 = vadd.f32 %v5277_v0, %v3836_v39  ;;  %v4056_v23 = vpop.f32.mrb[9].mxu1  ;;  %v4294_v28 = vld [vmem:[%s6262_s13 + $0x48] sm:$0xff]  ;;  %v4293_v44 = vld [vmem:[%s6262_s13 + $0x40] sm:$0xff] }
 0x41c   : > { %4383 = vst [vmem:[%s8107_s21 + $0x10] sm:$0xff] %v4351_v62  ;;  %v4321_v19 = vadd.f32 %v4289_v1, %v4257_v57  ;;  %v4220_v49 = vmul.f32 %v8078_v37, %v4181_v11  ;;  %v4057_v38 = vadd.f32 %v4056_v23, %v8071_v10  ;;  %v3856_v5 = vpop.f32.mrb[250].mxu0 }
 0x41d   : > { %v4354_v2 = vmax.f32 %v4322_v31, 0.0  ;;  %v4260_v21 = vadd.f32 %v8084_v35, %v4221_v48  ;;  %v4184_v30 = vadd.f32 %v4062_v29, %v8003_v6  ;;  %v3858_v34 = vpop.f32.mrb[251].mxu0  ;;  %v4296_v29 = vld [vmem:[%s6262_s13 + $0x58] sm:$0xff] }
 0x41e   : > { %v4353_v39 = vmax.f32 %v4321_v19, 0.0  ;;  %v4259_v58 = vadd.f32 %v8084_v35, %v4220_v49  ;;  %v4183_v41 = vadd.f32 %v4057_v38, %v8005_v45  ;;  %v5280_v17 = vpop.f32.mrb[10].mxu1  ;;  %v4295_v49 = vld [vmem:[%s6262_s13 + $0x50] sm:$0xff] }
 0x41f   : > { %4386 = vst [vmem:[%s8107_s21 + $0x28] sm:$0xff] %v4354_v2  ;;  %v4324_v9 = vadd.f32 %v4292_v15, %v4260_v21  ;;  %v4223_v10 = vmul.f32 %v8078_v37, %v4184_v30  ;;  %v4072_v43 = vadd.f32 %v5280_v17, %v3846_v63  ;;  %v4066_v20 = vpop.f32.mrb[11].mxu1  ;;  %v4298_v17 = vld [vmem:[%s6262_s13 + $0x68] sm:$0xff] }
 0x420   : > { %4385 = vst [vmem:[%s8107_s21 + $0x20] sm:$0xff] %v4353_v39  ;;  %v4323_v13 = vadd.f32 %v4291_v42, %v4259_v58  ;;  %v4222_v6 = vmul.f32 %v8078_v37, %v4183_v41  ;;  %v4067_v61 = vadd.f32 %v4066_v20, %v8090_v12  ;;  %v3861_v24 = vpop.f32.mrb[252].mxu0  ;;  %v4297_v20 = vld [vmem:[%s6262_s13 + $0x60] sm:$0xff] }
 0x421   : > { %v4356_v27 = vmax.f32 %v4324_v9, 0.0  ;;  %v4262_v45 = vadd.f32 %v8084_v35, %v4223_v10  ;;  %v4186_v1 = vadd.f32 %v4072_v43, %v8008_v8  ;;  %v3863_v26 = vpop.f32.mrb[253].mxu0 }
 0x422   : > { %v4355_v63 = vmax.f32 %v4323_v13, 0.0  ;;  %v4261_v18 = vadd.f32 %v8084_v35, %v4222_v6  ;;  %v4185_v62 = vadd.f32 %v4067_v61, %v8010_v4  ;;  %v5283_v57 = vpop.f32.mrb[12].mxu1 }
 0x423   : > { %4388 = vst [vmem:[%s8107_s21 + $0x38] sm:$0xff] %v4356_v27  ;;  %v4326_v11 = vadd.f32 %v4294_v28, %v4262_v45  ;;  %v4225_v12 = vmul.f32 %v8078_v37, %v4186_v1  ;;  %v4082_v0 = vadd.f32 %v5283_v57, %v3856_v5  ;;  %v4076_v31 = vpop.f32.mrb[13].mxu1 }
 0x424   : > { %4387 = vst [vmem:[%s8107_s21 + $0x30] sm:$0xff] %v4355_v63  ;;  %v4325_v48 = vadd.f32 %v4293_v44, %v4261_v18  ;;  %v4224_v8 = vmul.f32 %v8078_v37, %v4185_v62  ;;  %v4077_v23 = vadd.f32 %v4076_v31, %v3851_v46  ;;  %v3866_v19 = vpop.f32.mrb[254].mxu0  ;;  %v4300_v63 = vld [vmem:[%s6262_s13 + $0x78] sm:$0xff] }
 0x425   : > { %v4358_v15 = vmax.f32 %v4326_v11, 0.0  ;;  %v4264_v4 = vadd.f32 %v8084_v35, %v4225_v12  ;;  %v4188_v38 = vadd.f32 %v4082_v0, %v8013_v22  ;;  %v3868_v2 = vpop.f32.mrb[255].mxu0  ;;  %v4299_v12 = vld [vmem:[%s6262_s13 + $0x70] sm:$0xff] }
 0x426   : > { %v4357_v21 = vmax.f32 %v4325_v48, 0.0  ;;  %v4263_v5 = vadd.f32 %v8084_v35, %v4224_v8  ;;  %v4187_v42 = vadd.f32 %v4077_v23, %v8015_v59  ;;  %v5286_v30 = vpop.f32.mrb[14].mxu1 }
 0x427   : > { %4390 = vst [vmem:[%s8107_s21 + $0x48] sm:$0xff] %v4358_v15  ;;  %v4328_v34 = vadd.f32 %v4296_v29, %v4264_v4  ;;  %v4227_v46 = vmul.f32 %v8078_v37, %v4188_v38  ;;  %v4092_v39 = vadd.f32 %v5286_v30, %v3866_v19  ;;  %v4086_v58 = vpop.f32.mrb[15].mxu1 }
 0x428   : > { %4389 = vst [vmem:[%s8107_s21 + $0x40] sm:$0xff] %v4357_v21  ;;  %v4327_v41 = vadd.f32 %v4295_v49, %v4263_v5  ;;  %v4226_v22 = vmul.f32 %v8078_v37, %v4187_v42  ;;  %v4087_v9 = vadd.f32 %v4086_v58, %v3861_v24  ;;  %v3871_v10 = vpop.f32.mrb[0].mxu0  ;;  %v4301_v21 = vld [vmem:[%s6262_s13 + $0x80] sm:$0xff] }
 0x429   : > { %v4360_v43 = vmax.f32 %v4328_v34, 0.0  ;;  %v4266_v59 = vadd.f32 %v8084_v35, %v4227_v46  ;;  %v4190_v13 = vadd.f32 %v4092_v39, %v8021_v55  ;;  %v3873_v28 = vpop.f32.mrb[1].mxu0  ;;  %v4302_v46 = vld [vmem:[%s6262_s13 + $0x88] sm:$0xff] }
 0x42a   : > { %v4359_v6 = vmax.f32 %v4327_v41, 0.0  ;;  %v4265_v61 = vadd.f32 %v8084_v35, %v4226_v22  ;;  %v4189_v27 = vadd.f32 %v4087_v9, %v8018_v52  ;;  %v5289_v45 = vpop.f32.mrb[16].mxu1 }
 0x42b   : > { %4392 = vst [vmem:[%s8107_s21 + $0x58] sm:$0xff] %v4360_v43  ;;  %v4330_v44 = vadd.f32 %v4298_v17, %v4266_v59  ;;  %v4229_v24 = vmul.f32 %v8078_v37, %v4190_v13  ;;  %v4096_v1 = vpop.f32.mrb[17].mxu1  ;;  %v4303_v13 = vld [vmem:[%s6262_s13 + $0x90] sm:$0xff] }
 0x42c   : > { %4391 = vst [vmem:[%s8107_s21 + $0x50] sm:$0xff] %v4359_v6  ;;  %v4329_v26 = vadd.f32 %v4297_v20, %v4265_v61  ;;  %v4228_v18 = vmul.f32 %v8078_v37, %v4189_v27  ;;  %v4097_v55 = vadd.f32 %v4096_v1, %v3871_v10  ;;  %v3876_v62 = vpop.f32.mrb[2].mxu0 }
 0x42d   : > { %v4362_v57 = vmax.f32 %v4330_v44, 0.0  ;;  %v4268_v11 = vadd.f32 %v8084_v35, %v4229_v24  ;;  %v4102_v52 = vadd.f32 %v5289_v45, %v3876_v62  ;;  %v3878_v0 = vpop.f32.mrb[3].mxu0 }
 0x42e   : > { %v4361_v31 = vmax.f32 %v4329_v26, 0.0  ;;  %v4267_v48 = vadd.f32 %v8084_v35, %v4228_v18  ;;  %v4191_v29 = vadd.f32 %v4097_v55, %v8024_v33  ;;  %v5292_v8 = vpop.f32.mrb[18].mxu1 }
 0x42f   : > { %4394 = vst [vmem:[%s8107_s21 + $0x68] sm:$0xff] %v4362_v57  ;;  %v4332_v23 = vadd.f32 %v4300_v63, %v4268_v11  ;;  %v4192_v19 = vadd.f32 %v4102_v52, %v8027_v40  ;;  %v4106_v15 = vpop.f32.mrb[19].mxu1  ;;  %v4304_v63 = vld [vmem:[%s6262_s13 + $0x98] sm:$0xff] }
 0x430   : > { %4393 = vst [vmem:[%s8107_s21 + $0x60] sm:$0xff] %v4361_v31  ;;  %v4331_v4 = vadd.f32 %v4299_v12, %v4267_v48  ;;  %v4230_v49 = vmul.f32 %v8078_v37, %v4191_v29  ;;  %v3881_v38 = vpop.f32.mrb[4].mxu0  ;;  %v4305_v48 = vld [vmem:[%s6262_s13 + $0xa0] sm:$0xff] }
 0x431   : > { %v4364_v2 = vmax.f32 %v4332_v23, 0.0  ;;  %v4231_v5 = vmul.f32 %v8078_v37, %v4192_v19  ;;  %v4107_v42 = vadd.f32 %v4106_v15, %v3881_v38  ;;  %v3883_v33 = vpop.f32.mrb[5].mxu0 }
 0x432   : > { %v4363_v30 = vmax.f32 %v4331_v4, 0.0  ;;  %v4269_v34 = vadd.f32 %v8084_v35, %v4230_v49  ;;  %v5295_v39 = vpop.f32.mrb[20].mxu1 }
 0x433   : > { %4396 = vst [vmem:[%s8107_s21 + $0x78] sm:$0xff] %v4364_v2  ;;  %v4270_v40 = vadd.f32 %v8084_v35, %v4231_v5  ;;  %v4193_v58 = vadd.f32 %v4107_v42, %v8030_v32  ;;  %v4116_v41 = vpop.f32.mrb[21].mxu1 }
 0x434   : > { %4395 = vst [vmem:[%s8107_s21 + $0x70] sm:$0xff] %v4363_v30  ;;  %v4333_v17 = vadd.f32 %v4301_v21, %v4269_v34  ;;  %v3886_v22 = vpop.f32.mrb[6].mxu0  ;;  %v4306_v21 = vld [vmem:[%s6262_s13 + $0xa8] sm:$0xff] }
 0x435   : > { %v4334_v9 = vadd.f32 %v4302_v46, %v4270_v40  ;;  %v4232_v10 = vmul.f32 %v8078_v37, %v4193_v58  ;;  %v4112_v43 = vadd.f32 %v5292_v8, %v3886_v22  ;;  %v3888_v59 = vpop.f32.mrb[7].mxu0 }
 0x436   : > { %v4365_v20 = vmax.f32 %v4333_v17, 0.0  ;;  %v5298_v28 = vpop.f32.mrb[22].mxu1 }
 0x437   : > { %v4366_v6 = vmax.f32 %v4334_v9, 0.0  ;;  %v4271_v61 = vadd.f32 %v8084_v35, %v4232_v10  ;;  %v4194_v32 = vadd.f32 %v4112_v43, %v8033_v16  ;;  %v4126_v27 = vpop.f32.mrb[23].mxu1 }
 0x438   : > { %4397 = vst [vmem:[%s8107_s21 + $0x80] sm:$0xff] %v4365_v20  ;;  %v3891_v45 = vpop.f32.mrb[8].mxu0 }
 0x439   : > { %4398 = vst [vmem:[%s8107_s21 + $0x88] sm:$0xff] %v4366_v6  ;;  %v4335_v44 = vadd.f32 %v4303_v13, %v4271_v61  ;;  %v4233_v24 = vmul.f32 %v8078_v37, %v4194_v32  ;;  %v4117_v1 = vadd.f32 %v4116_v41, %v3891_v45  ;;  %v3893_v26 = vpop.f32.mrb[9].mxu0  ;;  %v4307_v41 = vld [vmem:[%s6262_s13 + $0xb0] sm:$0xff]  ;;  %v4308_v6 = vld [vmem:[%s6262_s13 + $0xb8] sm:$0xff] }
 0x43a   : > { %v5301_v18 = vpop.f32.mrb[24].mxu1  ;;  %v4309_v26 = vld [vmem:[%s6262_s13 + $0xc0] sm:$0xff] }
 0x43b   : > { %v4367_v55 = vmax.f32 %v4335_v44, 0.0  ;;  %v4272_v62 = vadd.f32 %v8084_v35, %v4233_v24  ;;  %v4195_v57 = vadd.f32 %v4117_v1, %v8036_v56  ;;  %v4136_v16 = vpop.f32.mrb[25].mxu1 }
 0x43c   : > { %v3896_v11 = vpop.f32.mrb[10].mxu0 }
 0x43d   : > { %4399 = vst [vmem:[%s8107_s21 + $0x90] sm:$0xff] %v4367_v55  ;;  %v4336_v12 = vadd.f32 %v4304_v63, %v4272_v62  ;;  %v4234_v52 = vmul.f32 %v8078_v37, %v4195_v57  ;;  %v4122_v0 = vadd.f32 %v5295_v39, %v3896_v11  ;;  %v3898_v31 = vpop.f32.mrb[11].mxu0 }
 0x43e   : > { %v8196_v29 = vpop.f32.mrb[26].mxu1 }
 0x43f   : > { %v4368_v8 = vmax.f32 %v4336_v12, 0.0  ;;  %v4273_v23 = vadd.f32 %v8084_v35, %v4234_v52  ;;  %v4196_v19 = vadd.f32 %v4122_v0, %v8039_v3  ;;  %v4146_v15 = vpop.f32.mrb[27].mxu1  ;;  %v4310_v52 = vld [vmem:[%s6262_s13 + $0xc8] sm:$0xff] }
 0x440   : > { %v3901_v56 = vpop.f32.mrb[12].mxu0 }
 0x441   : > { %4400 = vst [vmem:[%s8107_s21 + $0x98] sm:$0xff] %v4368_v8  ;;  %v4337_v4 = vadd.f32 %v4305_v48, %v4273_v23  ;;  %v4235_v49 = vmul.f32 %v8078_v37, %v4196_v19  ;;  %v4127_v38 = vadd.f32 %v4126_v27, %v3901_v56  ;;  %v3903_v2 = vpop.f32.mrb[13].mxu0  ;;  %v4311_v56 = vld [vmem:[%s6262_s13 + $0xd0] sm:$0xff] }
 0x442   : > { %v8203_v5 = vpop.f32.mrb[28].mxu1 }
 0x443   : > { %v4369_v42 = vmax.f32 %v4337_v4, 0.0  ;;  %v4274_v33 = vadd.f32 %v8084_v35, %v4235_v49  ;;  %v4197_v30 = vadd.f32 %v4127_v38, %v8042_v60  ;;  %v4156_v34 = vpop.f32.mrb[29].mxu1 }
 0x444   : > { %v3906_v3 = vpop.f32.mrb[14].mxu0 }
 0x445   : > { %4401 = vst [vmem:[%s8107_s21 + $0xa0] sm:$0xff] %v4369_v42  ;;  %v4338_v46 = vadd.f32 %v4306_v21, %v4274_v33  ;;  %v4236_v39 = vmul.f32 %v8078_v37, %v4197_v30  ;;  %v4132_v40 = vadd.f32 %v5298_v28, %v3906_v3  ;;  %v3908_v58 = vpop.f32.mrb[15].mxu0  ;;  %v4312_v33 = vld [vmem:[%s6262_s13 + $0xd8] sm:$0xff] }
 0x446   : > { %v8210_v17 = vpop.f32.mrb[30].mxu1 }
 0x447   : > { %v4370_v22 = vmax.f32 %v4338_v46, 0.0  ;;  %v4275_v9 = vadd.f32 %v8084_v35, %v4236_v39  ;;  %v4198_v10 = vadd.f32 %v4132_v40, %v8045_v54  ;;  %v8214_v43 = vpop.f32.mrb[31].mxu1 }
 0x448   : > { %v3911_v60 = vpop.f32.mrb[16].mxu0 }
 0x449   : > { %4402 = vst [vmem:[%s8107_s21 + $0xa8] sm:$0xff] %v4370_v22  ;;  %v4339_v59 = vadd.f32 %v4307_v41, %v4275_v9  ;;  %v4237_v20 = vmul.f32 %v8078_v37, %v4198_v10  ;;  %v4137_v13 = vadd.f32 %v4136_v16, %v3911_v60  ;;  %v3913_v28 = vpop.f32.mrb[17].mxu0  ;;  %v4313_v41 = vld [vmem:[%s6262_s13 + $0xe0] sm:$0xff] }
 0x44b   : > { %v4371_v61 = vmax.f32 %v4339_v59, 0.0  ;;  %v4276_v32 = vadd.f32 %v8084_v35, %v4237_v20  ;;  %v4199_v27 = vadd.f32 %v4137_v13, %v8048_v36  ;;  %v4314_v13 = vld [vmem:[%s6262_s13 + $0xe8] sm:$0xff] }
 0x44c   : > { %v3916_v45 = vpop.f32.mrb[18].mxu0 }
 0x44d   : > { %4403 = vst [vmem:[%s8107_s21 + $0xb0] sm:$0xff] %v4371_v61  ;;  %v4340_v54 = vadd.f32 %v4308_v6, %v4276_v32  ;;  %v4238_v44 = vmul.f32 %v8078_v37, %v4199_v27  ;;  %v4142_v24 = vadd.f32 %v5301_v18, %v3916_v45  ;;  %v3918_v1 = vpop.f32.mrb[19].mxu0  ;;  %v4315_v45 = vld [vmem:[%s6262_s13 + $0xf0] sm:$0xff] }
 0x44f   : > { %v4372_v63 = vmax.f32 %v4340_v54, 0.0  ;;  %v4277_v55 = vadd.f32 %v8084_v35, %v4238_v44  ;;  %v4200_v62 = vadd.f32 %v4142_v24, %v8051_v14 }
 0x450   : > { %v3921_v57 = vpop.f32.mrb[20].mxu0 }
 0x451   : > { %4404 = vst [vmem:[%s8107_s21 + $0xb8] sm:$0xff] %v4372_v63  ;;  %v4341_v16 = vadd.f32 %v4309_v26, %v4277_v55  ;;  %v4239_v36 = vmul.f32 %v8078_v37, %v4200_v62  ;;  %v4147_v11 = vadd.f32 %v4146_v15, %v3921_v57  ;;  %v3923_v12 = vpop.f32.mrb[21].mxu0  ;;  %v4316_v26 = vld [vmem:[%s6262_s13 + $0xf8] sm:$0xff]  ;;  %s4414_s13 = scalar_lea.sflag [#allocation5], %s6256_s20 }
 0x453   : > { %v4373_v0 = vmax.f32 %v4341_v16, 0.0  ;;  %v4278_v18 = vadd.f32 %v8084_v35, %v4239_v36  ;;  %v4201_v31 = vadd.f32 %v4147_v11, %v8054_v53 }
 0x454   : > { %v3926_v48 = vpop.f32.mrb[22].mxu0 }
 0x455   : > { %4405 = vst [vmem:[%s8107_s21 + $0xc0] sm:$0xff] %v4373_v0  ;;  %v4342_v8 = vadd.f32 %v4310_v52, %v4278_v18  ;;  %v4240_v14 = vmul.f32 %v8078_v37, %v4201_v31  ;;  %v4152_v23 = vadd.f32 %v8196_v29, %v3926_v48  ;;  %v3928_v19 = vpop.f32.mrb[23].mxu0 }
 0x457   : > { %v4374_v15 = vmax.f32 %v4342_v8, 0.0  ;;  %v4279_v4 = vadd.f32 %v8084_v35, %v4240_v14  ;;  %v4202_v49 = vadd.f32 %v4152_v23, %v8057_v25 }
 0x458   : > { %v3931_v38 = vpop.f32.mrb[24].mxu0 }
 0x459   : > { %4406 = vst [vmem:[%s8107_s21 + $0xc8] sm:$0xff] %v4374_v15  ;;  %v4343_v53 = vadd.f32 %v4311_v56, %v4279_v4  ;;  %v4241_v2 = vmul.f32 %v8078_v37, %v4202_v49  ;;  %v4157_v21 = vadd.f32 %v4156_v34, %v3931_v38  ;;  %v3933_v42 = vpop.f32.mrb[25].mxu0 }
 0x45b   : > { %v4375_v30 = vmax.f32 %v4343_v53, 0.0  ;;  %v4280_v29 = vadd.f32 %v8084_v35, %v4241_v2  ;;  %v4203_v3 = vadd.f32 %v4157_v21, %v8060_v47 }
 0x45c   : > { %v3936_v46 = vpop.f32.mrb[26].mxu0 }
 0x45d   : > { %4407 = vst [vmem:[%s8107_s21 + $0xd0] sm:$0xff] %v4375_v30  ;;  %v4344_v39 = vadd.f32 %v4312_v33, %v4280_v29  ;;  %v4242_v25 = vmul.f32 %v8078_v37, %v4203_v3  ;;  %v4162_v40 = vadd.f32 %v8203_v5, %v3936_v46  ;;  %v3938_v58 = vpop.f32.mrb[27].mxu0 }
 0x45f   : > { %v4376_v34 = vmax.f32 %v4344_v39, 0.0  ;;  %v4281_v22 = vadd.f32 %v8084_v35, %v4242_v25  ;;  %v4204_v9 = vadd.f32 %v4162_v40, %v8065_v7 }
 0x460   : > { %v3941_v10 = vpop.f32.mrb[28].mxu0 }
 0x461   : > { %4408 = vst [vmem:[%s8107_s21 + $0xd8] sm:$0xff] %v4376_v34  ;;  %v4345_v47 = vadd.f32 %v4313_v41, %v4281_v22  ;;  %v4243_v60 = vmul.f32 %v8078_v37, %v4204_v9  ;;  %v4167_v59 = vadd.f32 %v8214_v43, %v3941_v10  ;;  %v3943_v20 = vpop.f32.mrb[29].mxu0 }
 0x463   : > { %v4377_v5 = vmax.f32 %v4345_v47, 0.0  ;;  %v4282_v28 = vadd.f32 %v8084_v35, %v4243_v60  ;;  %v4205_v6 = vadd.f32 %v4167_v59, %v8068_v50 }
 0x464   : > { %v3946_v61 = vpop.f32.mrb[30].mxu0 }
 0x465   : > { %4409 = vst [vmem:[%s8107_s21 + $0xe0] sm:$0xff] %v4377_v5  ;;  %v4346_v7 = vadd.f32 %v4314_v13, %v4282_v28  ;;  %v4244_v32 = vmul.f32 %v8078_v37, %v4205_v6  ;;  %v4172_v27 = vadd.f32 %v8210_v17, %v3946_v61  ;;  %v3948_v43 = vpop.f32.mrb[31].mxu0 }
 0x467   : > { %v4378_v54 = vmax.f32 %v4346_v7, 0.0  ;;  %v4283_v44 = vadd.f32 %v8084_v35, %v4244_v32  ;;  %v4206_v24 = vadd.f32 %v4172_v27, %v8073_v51 }
 0x469   : > { %4410 = vst [vmem:[%s8107_s21 + $0xe8] sm:$0xff] %v4378_v54  ;;  %v4347_v50 = vadd.f32 %v4315_v45, %v4283_v44  ;;  %v4245_v1 = vmul.f32 %v8078_v37, %v4206_v24 }
 0x46b   : > { %v4379_v63 = vmax.f32 %v4347_v50, 0.0  ;;  %v4284_v55 = vadd.f32 %v8084_v35, %v4245_v1 }
 0x46d   : > { %4411 = vst [vmem:[%s8107_s21 + $0xf0] sm:$0xff] %v4379_v63  ;;  %v4348_v17 = vadd.f32 %v4316_v26, %v4284_v55 }
 0x46f   : > { %v4380_v51 = vmax.f32 %v4348_v17, 0.0 }
 0x471   : > { %4412 = vst [vmem:[%s8107_s21 + $0xf8] sm:$0xff] %v4380_v51 }
 0x472   : > { %5966 = shalt.err (!%p5963_p1)
}
 0x473   : > { %s5967_s15 = scalar_lea.hbm %s8270_s9, 4096  ;;  %s5971_s21 = scalar_lea.hbm %s8324_s7, 8192 }
 0x474   : > { %p5968_p13 = scmp.ne.s32.totalorder %s8270_s9, %s5967_s15  ;;  %p5972_p4 = scmp.lt.u32.totalorder %s8270_s9, %s8324_s7 }
 0x475   : > { %p5973_p5 = scmp.lt.u32.totalorder %s5971_s21, %s5967_s15  ;;  %p5975_p11 = scmp.lt.u32.totalorder %s5967_s15, %s8270_s9 }
 0x476   : > { %p5969_p6 = pnand %p5968_p13, %p8408_p0 }
 0x477   : > { %p5974_p8 = por %p5973_p5, %p5972_p4 }
 0x478   : > { %p5970_p10 = pneg %p5969_p6 }
 0x479   : > { %p5976_p2 = por %p5975_p11, %p5974_p8 }
 0x47b   : > { %p5977_p3 = pnand %p5976_p2, %p5970_p10 }
 0x47d   : > { %5980 = shalt.err (!%p5977_p3)
}
 0x47e   : > { %s6033_s30 = smov 128   ;;  %s6034_s29 = smov 8  }
 0x47f   : > { %5801 = dma.vmem_to_hbm [thread:$0]  (%p8408_p0), %s8272_s22, 4096, %s8270_s9, %s4414_s13, %s6033_s30, %s6033_s30, %s6034_s29  }
 0x480 PF: > { %s4442_s28 = sand.u32 1, %s6011_s24   ;;  %p8409_p7 = scmp.ne.s32.totalorder %s8360_s8, 0 }
 0x481   : > { %p8410_p9 = scmp.ge.s32.totalorder %s6023_s27, 2  ;;  %s4443_s11 = scalar_lea.sflag [#allocation5], %s4442_s28 }
 0x483   : > { %p5815_p12 = pnand %p8410_p9, %p8409_p7 }
 0x485   : > { %6006 = dma.done.wait (!%p5815_p12), %s4443_s11, 4096  }
 0x486   : > { %6008 = vsyncadd (!%p5815_p12), %s4443_s11, 4294963200  ;;  %p21_p1 = scmp.ge.s32.totalorder %s6191_s12, 4   ;;  %s8411_s24 = smov %s6015_s25 }
 0x487   : > { %s8412_s25 = smov %s6019_s26  ;;  %s8413_s26 = smov %s6207_s17 }
 0x488   : > { %s8414_s27 = smov %s6191_s12  ;;  %23 = sbr.rel (!%p21_p1) target bundleno = 6 (0x6), region = 108 }
 0x48f   :  { %4448 = vsyncpa [#allocation4], 1 }
 0x490   :  { %4450 = vsyncpa [#allocation4 + $0x1], 1 }
 0x491   :  { %4451 = vsyncpa [#allocation7], 1 }
 0x492   :  { %4452 = vsyncpa [#allocation5], 1 }
 0x493   :  { %4454 = vsyncpa [#allocation5 + $0x1], 1 }

</bundles_post_ra>
